<compile_context>
chip_gen: v7x
topology: tpu7x:2x2x1
jax: 0.10.0
libtpu: 0.0.40
codegen_flags: <defaults>
</compile_context>

<pallas_src>
import numpy as np
import jax
import jax.numpy as jnp
from jax.experimental import pallas as pl
from jax.experimental.pallas import tpu as pltpu

# ----- static geometry (28x28 single-channel input, as required for 320 feats) -----
H0 = W0 = 28                   # input
KH = KW = 5                    # conv kernel
C1, C2 = 10, 20                # conv1 / conv2 output channels
H1 = W1 = H0 - KH + 1          # 24  (conv1 out)
HP1 = WP1 = H1 // 2            # 12  (after pool1)
H2 = W2 = HP1 - KH + 1         # 8   (conv2 out)
HP2 = WP2 = H2 // 2            # 4   (after pool2)
NCLS = 10
NFEAT = C2 * HP2 * WP2         # 320


# ---------------------------------------------------------------------------
# Fused per-block kernel: for each of the TB images in the block:
# conv1 -> pool+relu -> conv2 -> pool+relu -> fc -> relu -> log_softmax.
# Activation layout: rows = H (sublanes), lanes = channel-major (c*W + w).
# ---------------------------------------------------------------------------
def _net_block_kernel(x_ref, t1_ref, b1_ref, sw1e_ref, sw1o_ref, sh1e_ref, sh1o_ref,
                      t2_ref, b2_ref, sw2e_ref, sw2o_ref, sh2e_ref, sh2o_ref,
                      wfc_ref, bfc_ref, o_ref):
    f32 = jnp.float32
    tb = x_ref.shape[0]                      # images per grid step (static)

    # Hoist only the tiny constants (few vregs) out of the per-image loop.
    b1 = b1_ref[...]                         # (1, 240)
    b2 = b2_ref[...]                         # (1, 160)
    bfc = bfc_ref[...]                       # (1, 10)
    sh1e = sh1e_ref[...]                     # (12, 24)
    sh1o = sh1o_ref[...]
    sh2e = sh2e_ref[...]                     # (4, 8)
    sh2o = sh2o_ref[...]

    for b in range(tb):
        x = x_ref[b]                                                 # (28, 28)

        # ---- conv1 (+bias): a1[h, c*24+w] = b1[c] + sum_ij x[h+i, w+j] k1[c,i,j]
        a1 = jnp.dot(x[0:H1, :], t1_ref[0], preferred_element_type=f32)
        for i in range(1, KH):
            a1 = a1 + jnp.dot(x[i:i + H1, :], t1_ref[i], preferred_element_type=f32)
        a1 = a1 + b1                                                 # (24, 240)

        # ---- 2x2 maxpool + relu  (exact even/odd selection matmuls) ----
        cm1 = jnp.maximum(
            jnp.dot(a1, sw1e_ref[...], preferred_element_type=f32),
            jnp.dot(a1, sw1o_ref[...], preferred_element_type=f32))  # (24, 120)
        p1 = jnp.maximum(jnp.dot(sh1e, cm1, preferred_element_type=f32),
                         jnp.dot(sh1o, cm1, preferred_element_type=f32))  # (12, 120)
        p1 = jnp.maximum(p1, 0.0)

        # ---- conv2 (+bias): a2[y, o*8+t] = b2[o] + sum_cij p1[y+i, c*12+t+j] k2[o,c,i,j]
        a2 = jnp.dot(p1[0:H2, :], t2_ref[0], preferred_element_type=f32)
        for i in range(1, KH):
            a2 = a2 + jnp.dot(p1[i:i + H2, :], t2_ref[i], preferred_element_type=f32)
        a2 = a2 + b2                                                 # (8, 160)

        # ---- 2x2 maxpool + relu ----
        cm2 = jnp.maximum(
            jnp.dot(a2, sw2e_ref[...], preferred_element_type=f32),
            jnp.dot(a2, sw2o_ref[...], preferred_element_type=f32))  # (8, 80)
        p2 = jnp.maximum(jnp.dot(sh2e, cm2, preferred_element_type=f32),
                         jnp.dot(sh2o, cm2, preferred_element_type=f32))  # (4, 80)
        p2 = jnp.maximum(p2, 0.0)

        # ---- fc (weights pre-permuted to this layout) + relu + log_softmax ----
        z = bfc                                                      # (1, 10)
        for u in range(HP2):
            z = z + jnp.dot(p2[u:u + 1, :], wfc_ref[u], preferred_element_type=f32)
        z = jnp.maximum(z, 0.0)
        m = jnp.max(z, axis=-1, keepdims=True)
        lse = jnp.log(jnp.sum(jnp.exp(z - m), axis=-1, keepdims=True)) + m
        o_ref[b] = (z - lse).astype(o_ref.dtype)


# ---------------------------------------------------------------------------
# One-time weight repacking (Toeplitz conv matrices, pooling selection
# matrices, permuted FC weight).  Done once, outside the per-step hot path.
# ---------------------------------------------------------------------------
def _pool_sel_lanes(nchan, win, parity):
    # (nchan*win, nchan*win//2): selects column w == 2v+parity inside each
    # per-channel block of `win` lanes.
    m = np.zeros((nchan * win, nchan * (win // 2)), np.float32)
    for c in range(nchan):
        for v in range(win // 2):
            m[c * win + 2 * v + parity, c * (win // 2) + v] = 1.0
    return jnp.asarray(m)


def _pool_sel_rows(hin, parity):
    # (hin//2, hin): out[y, h] = 1 iff h == 2y+parity
    m = np.zeros((hin // 2, hin), np.float32)
    for y in range(hin // 2):
        m[y, 2 * y + parity] = 1.0
    return jnp.asarray(m)


def pack_params(params):
    w1 = params["conv1_w"].astype(jnp.float32).reshape(C1, KH, KW)   # (10,5,5)
    b1 = params["conv1_b"].astype(jnp.float32)
    w2 = params["conv2_w"].astype(jnp.float32)                       # (20,10,5,5)
    b2 = params["conv2_b"].astype(jnp.float32)
    fw = params["fc_w"].astype(jnp.float32)                          # (10,320)
    fb = params["fc_b"].astype(jnp.float32)

    # conv1 Toeplitz: t1[i, w+j, c*W1 + w] = w1[c, i, j]
    c, i, j, w = np.meshgrid(np.arange(C1), np.arange(KH), np.arange(KW),
                             np.arange(W1), indexing="ij")
    c, i, j, w = (a.reshape(-1) for a in (c, i, j, w))
    t1 = jnp.zeros((KH, W0, C1 * W1), jnp.float32)
    t1 = t1.at[i, w + j, c * W1 + w].set(w1[c, i, j])

    # conv2 Toeplitz: t2[i, cin*WP1 + (t+j), o*W2 + t] = w2[o, cin, i, j]
    o, cc, i2, j2, t = np.meshgrid(np.arange(C2), np.arange(C1), np.arange(KH),
                                   np.arange(KW), np.arange(W2), indexing="ij")
    o, cc, i2, j2, t = (a.reshape(-1) for a in (o, cc, i2, j2, t))
    t2 = jnp.zeros((KH, C1 * WP1, C2 * W2), jnp.float32)
    t2 = t2.at[i2, cc * WP1 + t + j2, o * W2 + t].set(w2[o, cc, i2, j2])

    # fc weight permuted to the kernel's (u, o*WP2 + s, n) layout; torch order
    # for view(-1,320) is feature = o*16 + u*4 + s.
    wfc = fw.reshape(NCLS, C2, HP2, WP2).transpose(2, 1, 3, 0).reshape(HP2, C2 * WP2, NCLS)

    return {
        "t1": t1,
        "b1r": jnp.repeat(b1, W1).reshape(1, C1 * W1),
        "sw1e": _pool_sel_lanes(C1, W1, 0), "sw1o": _pool_sel_lanes(C1, W1, 1),
        "sh1e": _pool_sel_rows(H1, 0), "sh1o": _pool_sel_rows(H1, 1),
        "t2": t2,
        "b2r": jnp.repeat(b2, W2).reshape(1, C2 * W2),
        "sw2e": _pool_sel_lanes(C2, W2, 0), "sw2o": _pool_sel_lanes(C2, W2, 1),
        "sh2e": _pool_sel_rows(H2, 0), "sh2o": _pool_sel_rows(H2, 1),
        "wfc": wfc,
        "bfc": fb.reshape(1, NCLS),
    }


# ---------------------------------------------------------------------------
# Forward pass: single fused pallas_call, grid over batch *blocks* (parallel).
# ---------------------------------------------------------------------------
def net_forward(x_nchw, packed, block_images=8):
    B = x_nchw.shape[0]
    x = x_nchw.astype(jnp.float32).reshape(B, H0, W0)   # single input channel

    tb = max(1, min(block_images, B))                   # images per grid step
    nblk = -(-B // tb)                                  # cdiv(B, tb)
    Bp = nblk * tb
    if Bp != B:                                         # pad batch to block multiple
        x = jnp.concatenate([x, jnp.zeros((Bp - B, H0, W0), jnp.float32)], axis=0)

    vmem = pl.BlockSpec(memory_space=pltpu.MemorySpace.VMEM)  # whole array in VMEM
    out = pl.pallas_call(
        _net_block_kernel,
        out_shape=jax.ShapeDtypeStruct((Bp, 1, NCLS), jnp.float32),
        grid=(nblk,),
        in_specs=[pl.BlockSpec((tb, H0, W0), lambda n: (n, 0, 0))] + [vmem] * 14,
        out_specs=pl.BlockSpec((tb, 1, NCLS), lambda n: (n, 0, 0)),
        compiler_params=pltpu.CompilerParams(
            dimension_semantics=("parallel",),        # v7x: shard blocks across TCs
            vmem_limit_bytes=32 * 1024 * 1024,        # ~1 MiB actually resident
        ),
    )(x, packed["t1"], packed["b1r"], packed["sw1e"], packed["sw1o"],
      packed["sh1e"], packed["sh1o"], packed["t2"], packed["b2r"],
      packed["sw2e"], packed["sw2o"], packed["sh2e"], packed["sh2o"],
      packed["wfc"], packed["bfc"])
    return out[:B].reshape(B, NCLS)


# ---------------------------------------------------------------------------
# Plain-JAX reference (for correctness validation only)
# ---------------------------------------------------------------------------
def net_reference(x_nchw, params):
    hi = jax.lax.Precision.HIGHEST
    x = x_nchw.astype(jnp.float32)

    def conv(x, w, b):
        y = jax.lax.conv_general_dilated(
            x, w, (1, 1), "VALID",
            dimension_numbers=("NCHW", "OIHW", "NCHW"), precision=hi)
        return y + b.reshape(1, -1, 1, 1)

    def pool(x):
        return jax.lax.reduce_window(x, -jnp.inf, jax.lax.max,
                                     (1, 1, 2, 2), (1, 1, 2, 2), "VALID")

    x = jax.nn.relu(pool(conv(x, params["conv1_w"], params["conv1_b"])))
    x = jax.nn.relu(pool(conv(x, params["conv2_w"], params["conv2_b"])))
    x = x.reshape(x.shape[0], -1)
    x = jax.nn.relu(jnp.dot(x, params["fc_w"].T, precision=hi) + params["fc_b"])
    return jax.nn.log_softmax(x, axis=-1)


def init_params(key):
    ks = jax.random.split(key, 6)
    scale = 0.1
    return {
        "conv1_w": scale * jax.random.normal(ks[0], (10, 1, 5, 5), jnp.float32),
        "conv1_b": scale * jax.random.normal(ks[1], (10,), jnp.float32),
        "conv2_w": scale * jax.random.normal(ks[2], (20, 10, 5, 5), jnp.float32),
        "conv2_b": scale * jax.random.normal(ks[3], (20,), jnp.float32),
        "fc_w":    scale * jax.random.normal(ks[4], (10, 320), jnp.float32),
        "fc_b":    scale * jax.random.normal(ks[5], (10,), jnp.float32),
    }


if __name__ == "__main__":
    key = jax.random.PRNGKey(0)
    k_x, k_p = jax.random.split(key)
    # Input spatial size must be 28x28 so the flatten yields 320 features.
    x = jax.random.normal(k_x, (2, 1, 28, 28), jnp.float32)
    params = init_params(k_p)
    packed = pack_params(params)          # one-time weight repacking

    out = jax.block_until_ready(jax.jit(net_forward)(x, packed))

    # structural sanity checks
    assert out.shape == (2, NCLS), out.shape
    assert bool(jnp.all(jnp.isfinite(out)))
    row_sums = jnp.sum(jnp.exp(out), axis=-1)
    assert bool(jnp.allclose(row_sums, 1.0, rtol=1e-3, atol=1e-3)), row_sums

    # numerical check against plain-JAX reference (tolerance covers TPU matmul
    # default-precision differences)
    ref = net_reference(x, params)
    assert bool(jnp.allclose(out, ref, rtol=5e-2, atol=5e-2)), \
        float(jnp.max(jnp.abs(out - ref)))

    print("KERNEL_OK")
</pallas_src>

<mosaic_0001>
module attributes {stable_mosaic.version = 11 : i64} {
  func.func @_net_block_kernel(%arg0: i32, %arg1: memref<2x28x28xf32, #tpu.memory_space<vmem>>, %arg2: memref<5x28x240xf32, #tpu.memory_space<vmem>>, %arg3: memref<1x240xf32, #tpu.memory_space<vmem>>, %arg4: memref<240x120xf32, #tpu.memory_space<vmem>>, %arg5: memref<240x120xf32, #tpu.memory_space<vmem>>, %arg6: memref<12x24xf32, #tpu.memory_space<vmem>>, %arg7: memref<12x24xf32, #tpu.memory_space<vmem>>, %arg8: memref<5x120x160xf32, #tpu.memory_space<vmem>>, %arg9: memref<1x160xf32, #tpu.memory_space<vmem>>, %arg10: memref<160x80xf32, #tpu.memory_space<vmem>>, %arg11: memref<160x80xf32, #tpu.memory_space<vmem>>, %arg12: memref<4x8xf32, #tpu.memory_space<vmem>>, %arg13: memref<4x8xf32, #tpu.memory_space<vmem>>, %arg14: memref<4x80x10xf32, #tpu.memory_space<vmem>>, %arg15: memref<1x10xf32, #tpu.memory_space<vmem>>, %arg16: memref<2x1x10xf32, #tpu.memory_space<vmem>>) attributes {dimension_semantics = [#tpu.dimension_semantics<parallel>], iteration_bounds = array<i64: 1>, scalar_prefetch = 0 : i64, scratch_operands = 0 : i64, tpu.core_type = #tpu.core_type<tc>, window_params = [{transform_indices = @transform_0, window_bounds = array<i64: 2, 28, 28>}, {pipeline_mode = #tpu.pipeline_mode<synchronous>, transform_indices = @transform_1, window_bounds = array<i64: 5, 28, 240>}, {pipeline_mode = #tpu.pipeline_mode<synchronous>, transform_indices = @transform_2, window_bounds = array<i64: 1, 240>}, {pipeline_mode = #tpu.pipeline_mode<synchronous>, transform_indices = @transform_3, window_bounds = array<i64: 240, 120>}, {pipeline_mode = #tpu.pipeline_mode<synchronous>, transform_indices = @transform_4, window_bounds = array<i64: 240, 120>}, {pipeline_mode = #tpu.pipeline_mode<synchronous>, transform_indices = @transform_5, window_bounds = array<i64: 12, 24>}, {pipeline_mode = #tpu.pipeline_mode<synchronous>, transform_indices = @transform_6, window_bounds = array<i64: 12, 24>}, {pipeline_mode = #tpu.pipeline_mode<synchronous>, transform_indices = @transform_7, window_bounds = array<i64: 5, 120, 160>}, {pipeline_mode = #tpu.pipeline_mode<synchronous>, transform_indices = @transform_8, window_bounds = array<i64: 1, 160>}, {pipeline_mode = #tpu.pipeline_mode<synchronous>, transform_indices = @transform_9, window_bounds = array<i64: 160, 80>}, {pipeline_mode = #tpu.pipeline_mode<synchronous>, transform_indices = @transform_10, window_bounds = array<i64: 160, 80>}, {pipeline_mode = #tpu.pipeline_mode<synchronous>, transform_indices = @transform_11, window_bounds = array<i64: 4, 8>}, {pipeline_mode = #tpu.pipeline_mode<synchronous>, transform_indices = @transform_12, window_bounds = array<i64: 4, 8>}, {pipeline_mode = #tpu.pipeline_mode<synchronous>, transform_indices = @transform_13, window_bounds = array<i64: 4, 80, 10>}, {pipeline_mode = #tpu.pipeline_mode<synchronous>, transform_indices = @transform_14, window_bounds = array<i64: 1, 10>}, {transform_indices = @transform_15, window_bounds = array<i64: 2, 1, 10>}]} {
    %c0 = arith.constant 0 : index
    %c0_0 = arith.constant 0 : index
    %0 = vector.load %arg3[%c0, %c0_0] : memref<1x240xf32, #tpu.memory_space<vmem>>, vector<1x240xf32>
    %c0_1 = arith.constant 0 : index
    %c0_2 = arith.constant 0 : index
    %1 = vector.load %arg9[%c0_1, %c0_2] : memref<1x160xf32, #tpu.memory_space<vmem>>, vector<1x160xf32>
    %c0_3 = arith.constant 0 : index
    %c0_4 = arith.constant 0 : index
    %2 = vector.load %arg15[%c0_3, %c0_4] : memref<1x10xf32, #tpu.memory_space<vmem>>, vector<1x10xf32>
    %c0_5 = arith.constant 0 : index
    %c0_6 = arith.constant 0 : index
    %3 = vector.load %arg6[%c0_5, %c0_6] : memref<12x24xf32, #tpu.memory_space<vmem>>, vector<12x24xf32>
    %c0_7 = arith.constant 0 : index
    %c0_8 = arith.constant 0 : index
    %4 = vector.load %arg7[%c0_7, %c0_8] : memref<12x24xf32, #tpu.memory_space<vmem>>, vector<12x24xf32>
    %c0_9 = arith.constant 0 : index
    %c0_10 = arith.constant 0 : index
    %5 = vector.load %arg12[%c0_9, %c0_10] : memref<4x8xf32, #tpu.memory_space<vmem>>, vector<4x8xf32>
    %c0_11 = arith.constant 0 : index
    %c0_12 = arith.constant 0 : index
    %6 = vector.load %arg13[%c0_11, %c0_12] : memref<4x8xf32, #tpu.memory_space<vmem>>, vector<4x8xf32>
    %c0_13 = arith.constant 0 : index
    %c0_14 = arith.constant 0 : index
    %c0_15 = arith.constant 0 : index
    %7 = vector.load %arg1[%c0_13, %c0_14, %c0_15] : memref<2x28x28xf32, #tpu.memory_space<vmem>>, vector<1x28x28xf32>
    %8 = vector.shape_cast %7 : vector<1x28x28xf32> to vector<28x28xf32>
    %9 = vector.extract_strided_slice %8 {offsets = [0, 0], sizes = [24, 28], strides = [1, 1]} : vector<28x28xf32> to vector<24x28xf32>
    %c0_16 = arith.constant 0 : index
    %c0_17 = arith.constant 0 : index
    %c0_18 = arith.constant 0 : index
    %10 = vector.load %arg2[%c0_16, %c0_17, %c0_18] : memref<5x28x240xf32, #tpu.memory_space<vmem>>, vector<1x28x240xf32>
    %11 = vector.shape_cast %10 : vector<1x28x240xf32> to vector<28x240xf32>
    %cst = arith.constant dense<0.000000e+00> : vector<24x240xf32>
    %12 = tpu.matmul %9, %11, %cst {dimension_numbers = #tpu.dot_dimension_numbers<[1], [0], [0], [1], [0, 0, 1, 1], [], []>} : vector<24x28xf32>, vector<28x240xf32>, vector<24x240xf32> -> vector<24x240xf32>
    %13 = vector.extract_strided_slice %8 {offsets = [1, 0], sizes = [24, 28], strides = [1, 1]} : vector<28x28xf32> to vector<24x28xf32>
    %c1 = arith.constant 1 : index
    %c0_19 = arith.constant 0 : index
    %c0_20 = arith.constant 0 : index
    %14 = vector.load %arg2[%c1, %c0_19, %c0_20] : memref<5x28x240xf32, #tpu.memory_space<vmem>>, vector<1x28x240xf32>
    %15 = vector.shape_cast %14 : vector<1x28x240xf32> to vector<28x240xf32>
    %cst_21 = arith.constant dense<0.000000e+00> : vector<24x240xf32>
    %16 = tpu.matmul %13, %15, %cst_21 {dimension_numbers = #tpu.dot_dimension_numbers<[1], [0], [0], [1], [0, 0, 1, 1], [], []>} : vector<24x28xf32>, vector<28x240xf32>, vector<24x240xf32> -> vector<24x240xf32>
    %17 = arith.addf %12, %16 : vector<24x240xf32>
    %18 = vector.extract_strided_slice %8 {offsets = [2, 0], sizes = [24, 28], strides = [1, 1]} : vector<28x28xf32> to vector<24x28xf32>
    %c2 = arith.constant 2 : index
    %c0_22 = arith.constant 0 : index
    %c0_23 = arith.constant 0 : index
    %19 = vector.load %arg2[%c2, %c0_22, %c0_23] : memref<5x28x240xf32, #tpu.memory_space<vmem>>, vector<1x28x240xf32>
    %20 = vector.shape_cast %19 : vector<1x28x240xf32> to vector<28x240xf32>
    %cst_24 = arith.constant dense<0.000000e+00> : vector<24x240xf32>
    %21 = tpu.matmul %18, %20, %cst_24 {dimension_numbers = #tpu.dot_dimension_numbers<[1], [0], [0], [1], [0, 0, 1, 1], [], []>} : vector<24x28xf32>, vector<28x240xf32>, vector<24x240xf32> -> vector<24x240xf32>
    %22 = arith.addf %17, %21 : vector<24x240xf32>
    %23 = vector.extract_strided_slice %8 {offsets = [3, 0], sizes = [24, 28], strides = [1, 1]} : vector<28x28xf32> to vector<24x28xf32>
    %c3 = arith.constant 3 : index
    %c0_25 = arith.constant 0 : index
    %c0_26 = arith.constant 0 : index
    %24 = vector.load %arg2[%c3, %c0_25, %c0_26] : memref<5x28x240xf32, #tpu.memory_space<vmem>>, vector<1x28x240xf32>
    %25 = vector.shape_cast %24 : vector<1x28x240xf32> to vector<28x240xf32>
    %cst_27 = arith.constant dense<0.000000e+00> : vector<24x240xf32>
    %26 = tpu.matmul %23, %25, %cst_27 {dimension_numbers = #tpu.dot_dimension_numbers<[1], [0], [0], [1], [0, 0, 1, 1], [], []>} : vector<24x28xf32>, vector<28x240xf32>, vector<24x240xf32> -> vector<24x240xf32>
    %27 = arith.addf %22, %26 : vector<24x240xf32>
    %28 = vector.extract_strided_slice %8 {offsets = [4, 0], sizes = [24, 28], strides = [1, 1]} : vector<28x28xf32> to vector<24x28xf32>
    %c4 = arith.constant 4 : index
    %c0_28 = arith.constant 0 : index
    %c0_29 = arith.constant 0 : index
    %29 = vector.load %arg2[%c4, %c0_28, %c0_29] : memref<5x28x240xf32, #tpu.memory_space<vmem>>, vector<1x28x240xf32>
    %30 = vector.shape_cast %29 : vector<1x28x240xf32> to vector<28x240xf32>
    %cst_30 = arith.constant dense<0.000000e+00> : vector<24x240xf32>
    %31 = tpu.matmul %28, %30, %cst_30 {dimension_numbers = #tpu.dot_dimension_numbers<[1], [0], [0], [1], [0, 0, 1, 1], [], []>} : vector<24x28xf32>, vector<28x240xf32>, vector<24x240xf32> -> vector<24x240xf32>
    %32 = arith.addf %27, %31 : vector<24x240xf32>
    %33 = vector.broadcast %0 : vector<1x240xf32> to vector<24x240xf32>
    %34 = arith.addf %32, %33 : vector<24x240xf32>
    %c0_31 = arith.constant 0 : index
    %c0_32 = arith.constant 0 : index
    %35 = vector.load %arg4[%c0_31, %c0_32] : memref<240x120xf32, #tpu.memory_space<vmem>>, vector<240x120xf32>
    %cst_33 = arith.constant dense<0.000000e+00> : vector<24x120xf32>
    %36 = tpu.matmul %34, %35, %cst_33 {dimension_numbers = #tpu.dot_dimension_numbers<[1], [0], [0], [1], [0, 0, 1, 1], [], []>} : vector<24x240xf32>, vector<240x120xf32>, vector<24x120xf32> -> vector<24x120xf32>
    %c0_34 = arith.constant 0 : index
    %c0_35 = arith.constant 0 : index
    %37 = vector.load %arg5[%c0_34, %c0_35] : memref<240x120xf32, #tpu.memory_space<vmem>>, vector<240x120xf32>
    %cst_36 = arith.constant dense<0.000000e+00> : vector<24x120xf32>
    %38 = tpu.matmul %34, %37, %cst_36 {dimension_numbers = #tpu.dot_dimension_numbers<[1], [0], [0], [1], [0, 0, 1, 1], [], []>} : vector<24x240xf32>, vector<240x120xf32>, vector<24x120xf32> -> vector<24x120xf32>
    %39 = arith.maximumf %36, %38 : vector<24x120xf32>
    %cst_37 = arith.constant dense<0.000000e+00> : vector<12x120xf32>
    %40 = tpu.matmul %3, %39, %cst_37 {dimension_numbers = #tpu.dot_dimension_numbers<[1], [0], [0], [1], [0, 0, 1, 1], [], []>} : vector<12x24xf32>, vector<24x120xf32>, vector<12x120xf32> -> vector<12x120xf32>
    %cst_38 = arith.constant dense<0.000000e+00> : vector<12x120xf32>
    %41 = tpu.matmul %4, %39, %cst_38 {dimension_numbers = #tpu.dot_dimension_numbers<[1], [0], [0], [1], [0, 0, 1, 1], [], []>} : vector<12x24xf32>, vector<24x120xf32>, vector<12x120xf32> -> vector<12x120xf32>
    %42 = arith.maximumf %40, %41 : vector<12x120xf32>
    %cst_39 = arith.constant 0.000000e+00 : f32
    %43 = vector.broadcast %cst_39 : f32 to vector<12x120xf32>
    %44 = arith.maximumf %42, %43 : vector<12x120xf32>
    %45 = vector.extract_strided_slice %44 {offsets = [0, 0], sizes = [8, 120], strides = [1, 1]} : vector<12x120xf32> to vector<8x120xf32>
    %c0_40 = arith.constant 0 : index
    %c0_41 = arith.constant 0 : index
    %c0_42 = arith.constant 0 : index
    %46 = vector.load %arg8[%c0_40, %c0_41, %c0_42] : memref<5x120x160xf32, #tpu.memory_space<vmem>>, vector<1x120x160xf32>
    %47 = vector.shape_cast %46 : vector<1x120x160xf32> to vector<120x160xf32>
    %cst_43 = arith.constant dense<0.000000e+00> : vector<8x160xf32>
    %48 = tpu.matmul %45, %47, %cst_43 {dimension_numbers = #tpu.dot_dimension_numbers<[1], [0], [0], [1], [0, 0, 1, 1], [], []>} : vector<8x120xf32>, vector<120x160xf32>, vector<8x160xf32> -> vector<8x160xf32>
    %49 = vector.extract_strided_slice %44 {offsets = [1, 0], sizes = [8, 120], strides = [1, 1]} : vector<12x120xf32> to vector<8x120xf32>
    %c1_44 = arith.constant 1 : index
    %c0_45 = arith.constant 0 : index
    %c0_46 = arith.constant 0 : index
    %50 = vector.load %arg8[%c1_44, %c0_45, %c0_46] : memref<5x120x160xf32, #tpu.memory_space<vmem>>, vector<1x120x160xf32>
    %51 = vector.shape_cast %50 : vector<1x120x160xf32> to vector<120x160xf32>
    %cst_47 = arith.constant dense<0.000000e+00> : vector<8x160xf32>
    %52 = tpu.matmul %49, %51, %cst_47 {dimension_numbers = #tpu.dot_dimension_numbers<[1], [0], [0], [1], [0, 0, 1, 1], [], []>} : vector<8x120xf32>, vector<120x160xf32>, vector<8x160xf32> -> vector<8x160xf32>
    %53 = arith.addf %48, %52 : vector<8x160xf32>
    %54 = vector.extract_strided_slice %44 {offsets = [2, 0], sizes = [8, 120], strides = [1, 1]} : vector<12x120xf32> to vector<8x120xf32>
    %c2_48 = arith.constant 2 : index
    %c0_49 = arith.constant 0 : index
    %c0_50 = arith.constant 0 : index
    %55 = vector.load %arg8[%c2_48, %c0_49, %c0_50] : memref<5x120x160xf32, #tpu.memory_space<vmem>>, vector<1x120x160xf32>
    %56 = vector.shape_cast %55 : vector<1x120x160xf32> to vector<120x160xf32>
    %cst_51 = arith.constant dense<0.000000e+00> : vector<8x160xf32>
    %57 = tpu.matmul %54, %56, %cst_51 {dimension_numbers = #tpu.dot_dimension_numbers<[1], [0], [0], [1], [0, 0, 1, 1], [], []>} : vector<8x120xf32>, vector<120x160xf32>, vector<8x160xf32> -> vector<8x160xf32>
    %58 = arith.addf %53, %57 : vector<8x160xf32>
    %59 = vector.extract_strided_slice %44 {offsets = [3, 0], sizes = [8, 120], strides = [1, 1]} : vector<12x120xf32> to vector<8x120xf32>
    %c3_52 = arith.constant 3 : index
    %c0_53 = arith.constant 0 : index
    %c0_54 = arith.constant 0 : index
    %60 = vector.load %arg8[%c3_52, %c0_53, %c0_54] : memref<5x120x160xf32, #tpu.memory_space<vmem>>, vector<1x120x160xf32>
    %61 = vector.shape_cast %60 : vector<1x120x160xf32> to vector<120x160xf32>
    %cst_55 = arith.constant dense<0.000000e+00> : vector<8x160xf32>
    %62 = tpu.matmul %59, %61, %cst_55 {dimension_numbers = #tpu.dot_dimension_numbers<[1], [0], [0], [1], [0, 0, 1, 1], [], []>} : vector<8x120xf32>, vector<120x160xf32>, vector<8x160xf32> -> vector<8x160xf32>
    %63 = arith.addf %58, %62 : vector<8x160xf32>
    %64 = vector.extract_strided_slice %44 {offsets = [4, 0], sizes = [8, 120], strides = [1, 1]} : vector<12x120xf32> to vector<8x120xf32>
    %c4_56 = arith.constant 4 : index
    %c0_57 = arith.constant 0 : index
    %c0_58 = arith.constant 0 : index
    %65 = vector.load %arg8[%c4_56, %c0_57, %c0_58] : memref<5x120x160xf32, #tpu.memory_space<vmem>>, vector<1x120x160xf32>
    %66 = vector.shape_cast %65 : vector<1x120x160xf32> to vector<120x160xf32>
    %cst_59 = arith.constant dense<0.000000e+00> : vector<8x160xf32>
    %67 = tpu.matmul %64, %66, %cst_59 {dimension_numbers = #tpu.dot_dimension_numbers<[1], [0], [0], [1], [0, 0, 1, 1], [], []>} : vector<8x120xf32>, vector<120x160xf32>, vector<8x160xf32> -> vector<8x160xf32>
    %68 = arith.addf %63, %67 : vector<8x160xf32>
    %69 = vector.broadcast %1 : vector<1x160xf32> to vector<8x160xf32>
    %70 = arith.addf %68, %69 : vector<8x160xf32>
    %c0_60 = arith.constant 0 : index
    %c0_61 = arith.constant 0 : index
    %71 = vector.load %arg10[%c0_60, %c0_61] : memref<160x80xf32, #tpu.memory_space<vmem>>, vector<160x80xf32>
    %cst_62 = arith.constant dense<0.000000e+00> : vector<8x80xf32>
    %72 = tpu.matmul %70, %71, %cst_62 {dimension_numbers = #tpu.dot_dimension_numbers<[1], [0], [0], [1], [0, 0, 1, 1], [], []>} : vector<8x160xf32>, vector<160x80xf32>, vector<8x80xf32> -> vector<8x80xf32>
    %c0_63 = arith.constant 0 : index
    %c0_64 = arith.constant 0 : index
    %73 = vector.load %arg11[%c0_63, %c0_64] : memref<160x80xf32, #tpu.memory_space<vmem>>, vector<160x80xf32>
    %cst_65 = arith.constant dense<0.000000e+00> : vector<8x80xf32>
    %74 = tpu.matmul %70, %73, %cst_65 {dimension_numbers = #tpu.dot_dimension_numbers<[1], [0], [0], [1], [0, 0, 1, 1], [], []>} : vector<8x160xf32>, vector<160x80xf32>, vector<8x80xf32> -> vector<8x80xf32>
    %75 = arith.maximumf %72, %74 : vector<8x80xf32>
    %cst_66 = arith.constant dense<0.000000e+00> : vector<4x80xf32>
    %76 = tpu.matmul %5, %75, %cst_66 {dimension_numbers = #tpu.dot_dimension_numbers<[1], [0], [0], [1], [0, 0, 1, 1], [], []>} : vector<4x8xf32>, vector<8x80xf32>, vector<4x80xf32> -> vector<4x80xf32>
    %cst_67 = arith.constant dense<0.000000e+00> : vector<4x80xf32>
    %77 = tpu.matmul %6, %75, %cst_67 {dimension_numbers = #tpu.dot_dimension_numbers<[1], [0], [0], [1], [0, 0, 1, 1], [], []>} : vector<4x8xf32>, vector<8x80xf32>, vector<4x80xf32> -> vector<4x80xf32>
    %78 = arith.maximumf %76, %77 : vector<4x80xf32>
    %cst_68 = arith.constant 0.000000e+00 : f32
    %79 = vector.broadcast %cst_68 : f32 to vector<4x80xf32>
    %80 = arith.maximumf %78, %79 : vector<4x80xf32>
    %81 = vector.extract_strided_slice %80 {offsets = [0, 0], sizes = [1, 80], strides = [1, 1]} : vector<4x80xf32> to vector<1x80xf32>
    %c0_69 = arith.constant 0 : index
    %c0_70 = arith.constant 0 : index
    %c0_71 = arith.constant 0 : index
    %82 = vector.load %arg14[%c0_69, %c0_70, %c0_71] : memref<4x80x10xf32, #tpu.memory_space<vmem>>, vector<1x80x10xf32>
    %83 = vector.shape_cast %82 : vector<1x80x10xf32> to vector<80x10xf32>
    %cst_72 = arith.constant dense<0.000000e+00> : vector<1x10xf32>
    %84 = tpu.matmul %81, %83, %cst_72 {dimension_numbers = #tpu.dot_dimension_numbers<[1], [0], [0], [1], [0, 0, 1, 1], [], []>} : vector<1x80xf32>, vector<80x10xf32>, vector<1x10xf32> -> vector<1x10xf32>
    %85 = arith.addf %2, %84 : vector<1x10xf32>
    %86 = vector.extract_strided_slice %80 {offsets = [1, 0], sizes = [1, 80], strides = [1, 1]} : vector<4x80xf32> to vector<1x80xf32>
    %c1_73 = arith.constant 1 : index
    %c0_74 = arith.constant 0 : index
    %c0_75 = arith.constant 0 : index
    %87 = vector.load %arg14[%c1_73, %c0_74, %c0_75] : memref<4x80x10xf32, #tpu.memory_space<vmem>>, vector<1x80x10xf32>
    %88 = vector.shape_cast %87 : vector<1x80x10xf32> to vector<80x10xf32>
    %cst_76 = arith.constant dense<0.000000e+00> : vector<1x10xf32>
    %89 = tpu.matmul %86, %88, %cst_76 {dimension_numbers = #tpu.dot_dimension_numbers<[1], [0], [0], [1], [0, 0, 1, 1], [], []>} : vector<1x80xf32>, vector<80x10xf32>, vector<1x10xf32> -> vector<1x10xf32>
    %90 = arith.addf %85, %89 : vector<1x10xf32>
    %91 = vector.extract_strided_slice %80 {offsets = [2, 0], sizes = [1, 80], strides = [1, 1]} : vector<4x80xf32> to vector<1x80xf32>
    %c2_77 = arith.constant 2 : index
    %c0_78 = arith.constant 0 : index
    %c0_79 = arith.constant 0 : index
    %92 = vector.load %arg14[%c2_77, %c0_78, %c0_79] : memref<4x80x10xf32, #tpu.memory_space<vmem>>, vector<1x80x10xf32>
    %93 = vector.shape_cast %92 : vector<1x80x10xf32> to vector<80x10xf32>
    %cst_80 = arith.constant dense<0.000000e+00> : vector<1x10xf32>
    %94 = tpu.matmul %91, %93, %cst_80 {dimension_numbers = #tpu.dot_dimension_numbers<[1], [0], [0], [1], [0, 0, 1, 1], [], []>} : vector<1x80xf32>, vector<80x10xf32>, vector<1x10xf32> -> vector<1x10xf32>
    %95 = arith.addf %90, %94 : vector<1x10xf32>
    %96 = vector.extract_strided_slice %80 {offsets = [3, 0], sizes = [1, 80], strides = [1, 1]} : vector<4x80xf32> to vector<1x80xf32>
    %c3_81 = arith.constant 3 : index
    %c0_82 = arith.constant 0 : index
    %c0_83 = arith.constant 0 : index
    %97 = vector.load %arg14[%c3_81, %c0_82, %c0_83] : memref<4x80x10xf32, #tpu.memory_space<vmem>>, vector<1x80x10xf32>
    %98 = vector.shape_cast %97 : vector<1x80x10xf32> to vector<80x10xf32>
    %cst_84 = arith.constant dense<0.000000e+00> : vector<1x10xf32>
    %99 = tpu.matmul %96, %98, %cst_84 {dimension_numbers = #tpu.dot_dimension_numbers<[1], [0], [0], [1], [0, 0, 1, 1], [], []>} : vector<1x80xf32>, vector<80x10xf32>, vector<1x10xf32> -> vector<1x10xf32>
    %100 = arith.addf %95, %99 : vector<1x10xf32>
    %cst_85 = arith.constant 0.000000e+00 : f32
    %101 = vector.broadcast %cst_85 : f32 to vector<1x10xf32>
    %102 = arith.maximumf %100, %101 : vector<1x10xf32>
    %cst_86 = arith.constant dense<0xFF800000> : vector<1xf32>
    %103 = vector.multi_reduction <maximumf>, %102, %cst_86 [1] : vector<1x10xf32> to vector<1xf32>
    %104 = vector.shape_cast %103 : vector<1xf32> to vector<1x1xf32>
    %105 = vector.broadcast %104 : vector<1x1xf32> to vector<1x10xf32>
    %106 = arith.subf %102, %105 : vector<1x10xf32>
    %107 = math.exp %106 : vector<1x10xf32>
    %cst_87 = arith.constant dense<0.000000e+00> : vector<1xf32>
    %108 = vector.multi_reduction <add>, %107, %cst_87 [1] : vector<1x10xf32> to vector<1xf32>
    %109 = vector.shape_cast %108 : vector<1xf32> to vector<1x1xf32>
    %110 = math.log %109 : vector<1x1xf32>
    %111 = arith.addf %110, %104 : vector<1x1xf32>
    %112 = vector.broadcast %111 : vector<1x1xf32> to vector<1x10xf32>
    %113 = arith.subf %102, %112 : vector<1x10xf32>
    %c0_88 = arith.constant 0 : index
    %c0_89 = arith.constant 0 : index
    %c0_90 = arith.constant 0 : index
    %114 = vector.load %arg16[%c0_88, %c0_89, %c0_90] : memref<2x1x10xf32, #tpu.memory_space<vmem>>, vector<1x1x10xf32>
    %115 = vector.shape_cast %114 : vector<1x1x10xf32> to vector<1x10xf32>
    %116 = vector.shape_cast %113 : vector<1x10xf32> to vector<1x1x10xf32>
    tpu.vector_store %arg16[%c0_88, %c0_89, %c0_90], %116 {strides = array<i32>} : memref<2x1x10xf32, #tpu.memory_space<vmem>>, vector<1x1x10xf32>,
    %c1_91 = arith.constant 1 : index
    %c0_92 = arith.constant 0 : index
    %c0_93 = arith.constant 0 : index
    %117 = vector.load %arg1[%c1_91, %c0_92, %c0_93] : memref<2x28x28xf32, #tpu.memory_space<vmem>>, vector<1x28x28xf32>
    %118 = vector.shape_cast %117 : vector<1x28x28xf32> to vector<28x28xf32>
    %119 = vector.extract_strided_slice %118 {offsets = [0, 0], sizes = [24, 28], strides = [1, 1]} : vector<28x28xf32> to vector<24x28xf32>
    %c0_94 = arith.constant 0 : index
    %c0_95 = arith.constant 0 : index
    %c0_96 = arith.constant 0 : index
    %120 = vector.load %arg2[%c0_94, %c0_95, %c0_96] : memref<5x28x240xf32, #tpu.memory_space<vmem>>, vector<1x28x240xf32>
    %121 = vector.shape_cast %120 : vector<1x28x240xf32> to vector<28x240xf32>
    %cst_97 = arith.constant dense<0.000000e+00> : vector<24x240xf32>
    %122 = tpu.matmul %119, %121, %cst_97 {dimension_numbers = #tpu.dot_dimension_numbers<[1], [0], [0], [1], [0, 0, 1, 1], [], []>} : vector<24x28xf32>, vector<28x240xf32>, vector<24x240xf32> -> vector<24x240xf32>
    %123 = vector.extract_strided_slice %118 {offsets = [1, 0], sizes = [24, 28], strides = [1, 1]} : vector<28x28xf32> to vector<24x28xf32>
    %c1_98 = arith.constant 1 : index
    %c0_99 = arith.constant 0 : index
    %c0_100 = arith.constant 0 : index
    %124 = vector.load %arg2[%c1_98, %c0_99, %c0_100] : memref<5x28x240xf32, #tpu.memory_space<vmem>>, vector<1x28x240xf32>
    %125 = vector.shape_cast %124 : vector<1x28x240xf32> to vector<28x240xf32>
    %cst_101 = arith.constant dense<0.000000e+00> : vector<24x240xf32>
    %126 = tpu.matmul %123, %125, %cst_101 {dimension_numbers = #tpu.dot_dimension_numbers<[1], [0], [0], [1], [0, 0, 1, 1], [], []>} : vector<24x28xf32>, vector<28x240xf32>, vector<24x240xf32> -> vector<24x240xf32>
    %127 = arith.addf %122, %126 : vector<24x240xf32>
    %128 = vector.extract_strided_slice %118 {offsets = [2, 0], sizes = [24, 28], strides = [1, 1]} : vector<28x28xf32> to vector<24x28xf32>
    %c2_102 = arith.constant 2 : index
    %c0_103 = arith.constant 0 : index
    %c0_104 = arith.constant 0 : index
    %129 = vector.load %arg2[%c2_102, %c0_103, %c0_104] : memref<5x28x240xf32, #tpu.memory_space<vmem>>, vector<1x28x240xf32>
    %130 = vector.shape_cast %129 : vector<1x28x240xf32> to vector<28x240xf32>
    %cst_105 = arith.constant dense<0.000000e+00> : vector<24x240xf32>
    %131 = tpu.matmul %128, %130, %cst_105 {dimension_numbers = #tpu.dot_dimension_numbers<[1], [0], [0], [1], [0, 0, 1, 1], [], []>} : vector<24x28xf32>, vector<28x240xf32>, vector<24x240xf32> -> vector<24x240xf32>
    %132 = arith.addf %127, %131 : vector<24x240xf32>
    %133 = vector.extract_strided_slice %118 {offsets = [3, 0], sizes = [24, 28], strides = [1, 1]} : vector<28x28xf32> to vector<24x28xf32>
    %c3_106 = arith.constant 3 : index
    %c0_107 = arith.constant 0 : index
    %c0_108 = arith.constant 0 : index
    %134 = vector.load %arg2[%c3_106, %c0_107, %c0_108] : memref<5x28x240xf32, #tpu.memory_space<vmem>>, vector<1x28x240xf32>
    %135 = vector.shape_cast %134 : vector<1x28x240xf32> to vector<28x240xf32>
    %cst_109 = arith.constant dense<0.000000e+00> : vector<24x240xf32>
    %136 = tpu.matmul %133, %135, %cst_109 {dimension_numbers = #tpu.dot_dimension_numbers<[1], [0], [0], [1], [0, 0, 1, 1], [], []>} : vector<24x28xf32>, vector<28x240xf32>, vector<24x240xf32> -> vector<24x240xf32>
    %137 = arith.addf %132, %136 : vector<24x240xf32>
    %138 = vector.extract_strided_slice %118 {offsets = [4, 0], sizes = [24, 28], strides = [1, 1]} : vector<28x28xf32> to vector<24x28xf32>
    %c4_110 = arith.constant 4 : index
    %c0_111 = arith.constant 0 : index
    %c0_112 = arith.constant 0 : index
    %139 = vector.load %arg2[%c4_110, %c0_111, %c0_112] : memref<5x28x240xf32, #tpu.memory_space<vmem>>, vector<1x28x240xf32>
    %140 = vector.shape_cast %139 : vector<1x28x240xf32> to vector<28x240xf32>
    %cst_113 = arith.constant dense<0.000000e+00> : vector<24x240xf32>
    %141 = tpu.matmul %138, %140, %cst_113 {dimension_numbers = #tpu.dot_dimension_numbers<[1], [0], [0], [1], [0, 0, 1, 1], [], []>} : vector<24x28xf32>, vector<28x240xf32>, vector<24x240xf32> -> vector<24x240xf32>
    %142 = arith.addf %137, %141 : vector<24x240xf32>
    %143 = vector.broadcast %0 : vector<1x240xf32> to vector<24x240xf32>
    %144 = arith.addf %142, %143 : vector<24x240xf32>
    %c0_114 = arith.constant 0 : index
    %c0_115 = arith.constant 0 : index
    %145 = vector.load %arg4[%c0_114, %c0_115] : memref<240x120xf32, #tpu.memory_space<vmem>>, vector<240x120xf32>
    %cst_116 = arith.constant dense<0.000000e+00> : vector<24x120xf32>
    %146 = tpu.matmul %144, %145, %cst_116 {dimension_numbers = #tpu.dot_dimension_numbers<[1], [0], [0], [1], [0, 0, 1, 1], [], []>} : vector<24x240xf32>, vector<240x120xf32>, vector<24x120xf32> -> vector<24x120xf32>
    %c0_117 = arith.constant 0 : index
    %c0_118 = arith.constant 0 : index
    %147 = vector.load %arg5[%c0_117, %c0_118] : memref<240x120xf32, #tpu.memory_space<vmem>>, vector<240x120xf32>
    %cst_119 = arith.constant dense<0.000000e+00> : vector<24x120xf32>
    %148 = tpu.matmul %144, %147, %cst_119 {dimension_numbers = #tpu.dot_dimension_numbers<[1], [0], [0], [1], [0, 0, 1, 1], [], []>} : vector<24x240xf32>, vector<240x120xf32>, vector<24x120xf32> -> vector<24x120xf32>
    %149 = arith.maximumf %146, %148 : vector<24x120xf32>
    %cst_120 = arith.constant dense<0.000000e+00> : vector<12x120xf32>
    %150 = tpu.matmul %3, %149, %cst_120 {dimension_numbers = #tpu.dot_dimension_numbers<[1], [0], [0], [1], [0, 0, 1, 1], [], []>} : vector<12x24xf32>, vector<24x120xf32>, vector<12x120xf32> -> vector<12x120xf32>
    %cst_121 = arith.constant dense<0.000000e+00> : vector<12x120xf32>
    %151 = tpu.matmul %4, %149, %cst_121 {dimension_numbers = #tpu.dot_dimension_numbers<[1], [0], [0], [1], [0, 0, 1, 1], [], []>} : vector<12x24xf32>, vector<24x120xf32>, vector<12x120xf32> -> vector<12x120xf32>
    %152 = arith.maximumf %150, %151 : vector<12x120xf32>
    %cst_122 = arith.constant 0.000000e+00 : f32
    %153 = vector.broadcast %cst_122 : f32 to vector<12x120xf32>
    %154 = arith.maximumf %152, %153 : vector<12x120xf32>
    %155 = vector.extract_strided_slice %154 {offsets = [0, 0], sizes = [8, 120], strides = [1, 1]} : vector<12x120xf32> to vector<8x120xf32>
    %c0_123 = arith.constant 0 : index
    %c0_124 = arith.constant 0 : index
    %c0_125 = arith.constant 0 : index
    %156 = vector.load %arg8[%c0_123, %c0_124, %c0_125] : memref<5x120x160xf32, #tpu.memory_space<vmem>>, vector<1x120x160xf32>
    %157 = vector.shape_cast %156 : vector<1x120x160xf32> to vector<120x160xf32>
    %cst_126 = arith.constant dense<0.000000e+00> : vector<8x160xf32>
    %158 = tpu.matmul %155, %157, %cst_126 {dimension_numbers = #tpu.dot_dimension_numbers<[1], [0], [0], [1], [0, 0, 1, 1], [], []>} : vector<8x120xf32>, vector<120x160xf32>, vector<8x160xf32> -> vector<8x160xf32>
    %159 = vector.extract_strided_slice %154 {offsets = [1, 0], sizes = [8, 120], strides = [1, 1]} : vector<12x120xf32> to vector<8x120xf32>
    %c1_127 = arith.constant 1 : index
    %c0_128 = arith.constant 0 : index
    %c0_129 = arith.constant 0 : index
    %160 = vector.load %arg8[%c1_127, %c0_128, %c0_129] : memref<5x120x160xf32, #tpu.memory_space<vmem>>, vector<1x120x160xf32>
    %161 = vector.shape_cast %160 : vector<1x120x160xf32> to vector<120x160xf32>
    %cst_130 = arith.constant dense<0.000000e+00> : vector<8x160xf32>
    %162 = tpu.matmul %159, %161, %cst_130 {dimension_numbers = #tpu.dot_dimension_numbers<[1], [0], [0], [1], [0, 0, 1, 1], [], []>} : vector<8x120xf32>, vector<120x160xf32>, vector<8x160xf32> -> vector<8x160xf32>
    %163 = arith.addf %158, %162 : vector<8x160xf32>
    %164 = vector.extract_strided_slice %154 {offsets = [2, 0], sizes = [8, 120], strides = [1, 1]} : vector<12x120xf32> to vector<8x120xf32>
    %c2_131 = arith.constant 2 : index
    %c0_132 = arith.constant 0 : index
    %c0_133 = arith.constant 0 : index
    %165 = vector.load %arg8[%c2_131, %c0_132, %c0_133] : memref<5x120x160xf32, #tpu.memory_space<vmem>>, vector<1x120x160xf32>
    %166 = vector.shape_cast %165 : vector<1x120x160xf32> to vector<120x160xf32>
    %cst_134 = arith.constant dense<0.000000e+00> : vector<8x160xf32>
    %167 = tpu.matmul %164, %166, %cst_134 {dimension_numbers = #tpu.dot_dimension_numbers<[1], [0], [0], [1], [0, 0, 1, 1], [], []>} : vector<8x120xf32>, vector<120x160xf32>, vector<8x160xf32> -> vector<8x160xf32>
    %168 = arith.addf %163, %167 : vector<8x160xf32>
    %169 = vector.extract_strided_slice %154 {offsets = [3, 0], sizes = [8, 120], strides = [1, 1]} : vector<12x120xf32> to vector<8x120xf32>
    %c3_135 = arith.constant 3 : index
    %c0_136 = arith.constant 0 : index
    %c0_137 = arith.constant 0 : index
    %170 = vector.load %arg8[%c3_135, %c0_136, %c0_137] : memref<5x120x160xf32, #tpu.memory_space<vmem>>, vector<1x120x160xf32>
    %171 = vector.shape_cast %170 : vector<1x120x160xf32> to vector<120x160xf32>
    %cst_138 = arith.constant dense<0.000000e+00> : vector<8x160xf32>
    %172 = tpu.matmul %169, %171, %cst_138 {dimension_numbers = #tpu.dot_dimension_numbers<[1], [0], [0], [1], [0, 0, 1, 1], [], []>} : vector<8x120xf32>, vector<120x160xf32>, vector<8x160xf32> -> vector<8x160xf32>
    %173 = arith.addf %168, %172 : vector<8x160xf32>
    %174 = vector.extract_strided_slice %154 {offsets = [4, 0], sizes = [8, 120], strides = [1, 1]} : vector<12x120xf32> to vector<8x120xf32>
    %c4_139 = arith.constant 4 : index
    %c0_140 = arith.constant 0 : index
    %c0_141 = arith.constant 0 : index
    %175 = vector.load %arg8[%c4_139, %c0_140, %c0_141] : memref<5x120x160xf32, #tpu.memory_space<vmem>>, vector<1x120x160xf32>
    %176 = vector.shape_cast %175 : vector<1x120x160xf32> to vector<120x160xf32>
    %cst_142 = arith.constant dense<0.000000e+00> : vector<8x160xf32>
    %177 = tpu.matmul %174, %176, %cst_142 {dimension_numbers = #tpu.dot_dimension_numbers<[1], [0], [0], [1], [0, 0, 1, 1], [], []>} : vector<8x120xf32>, vector<120x160xf32>, vector<8x160xf32> -> vector<8x160xf32>
    %178 = arith.addf %173, %177 : vector<8x160xf32>
    %179 = vector.broadcast %1 : vector<1x160xf32> to vector<8x160xf32>
    %180 = arith.addf %178, %179 : vector<8x160xf32>
    %c0_143 = arith.constant 0 : index
    %c0_144 = arith.constant 0 : index
    %181 = vector.load %arg10[%c0_143, %c0_144] : memref<160x80xf32, #tpu.memory_space<vmem>>, vector<160x80xf32>
    %cst_145 = arith.constant dense<0.000000e+00> : vector<8x80xf32>
    %182 = tpu.matmul %180, %181, %cst_145 {dimension_numbers = #tpu.dot_dimension_numbers<[1], [0], [0], [1], [0, 0, 1, 1], [], []>} : vector<8x160xf32>, vector<160x80xf32>, vector<8x80xf32> -> vector<8x80xf32>
    %c0_146 = arith.constant 0 : index
    %c0_147 = arith.constant 0 : index
    %183 = vector.load %arg11[%c0_146, %c0_147] : memref<160x80xf32, #tpu.memory_space<vmem>>, vector<160x80xf32>
    %cst_148 = arith.constant dense<0.000000e+00> : vector<8x80xf32>
    %184 = tpu.matmul %180, %183, %cst_148 {dimension_numbers = #tpu.dot_dimension_numbers<[1], [0], [0], [1], [0, 0, 1, 1], [], []>} : vector<8x160xf32>, vector<160x80xf32>, vector<8x80xf32> -> vector<8x80xf32>
    %185 = arith.maximumf %182, %184 : vector<8x80xf32>
    %cst_149 = arith.constant dense<0.000000e+00> : vector<4x80xf32>
    %186 = tpu.matmul %5, %185, %cst_149 {dimension_numbers = #tpu.dot_dimension_numbers<[1], [0], [0], [1], [0, 0, 1, 1], [], []>} : vector<4x8xf32>, vector<8x80xf32>, vector<4x80xf32> -> vector<4x80xf32>
    %cst_150 = arith.constant dense<0.000000e+00> : vector<4x80xf32>
    %187 = tpu.matmul %6, %185, %cst_150 {dimension_numbers = #tpu.dot_dimension_numbers<[1], [0], [0], [1], [0, 0, 1, 1], [], []>} : vector<4x8xf32>, vector<8x80xf32>, vector<4x80xf32> -> vector<4x80xf32>
    %188 = arith.maximumf %186, %187 : vector<4x80xf32>
    %cst_151 = arith.constant 0.000000e+00 : f32
    %189 = vector.broadcast %cst_151 : f32 to vector<4x80xf32>
    %190 = arith.maximumf %188, %189 : vector<4x80xf32>
    %191 = vector.extract_strided_slice %190 {offsets = [0, 0], sizes = [1, 80], strides = [1, 1]} : vector<4x80xf32> to vector<1x80xf32>
    %c0_152 = arith.constant 0 : index
    %c0_153 = arith.constant 0 : index
    %c0_154 = arith.constant 0 : index
    %192 = vector.load %arg14[%c0_152, %c0_153, %c0_154] : memref<4x80x10xf32, #tpu.memory_space<vmem>>, vector<1x80x10xf32>
    %193 = vector.shape_cast %192 : vector<1x80x10xf32> to vector<80x10xf32>
    %cst_155 = arith.constant dense<0.000000e+00> : vector<1x10xf32>
    %194 = tpu.matmul %191, %193, %cst_155 {dimension_numbers = #tpu.dot_dimension_numbers<[1], [0], [0], [1], [0, 0, 1, 1], [], []>} : vector<1x80xf32>, vector<80x10xf32>, vector<1x10xf32> -> vector<1x10xf32>
    %195 = arith.addf %2, %194 : vector<1x10xf32>
    %196 = vector.extract_strided_slice %190 {offsets = [1, 0], sizes = [1, 80], strides = [1, 1]} : vector<4x80xf32> to vector<1x80xf32>
    %c1_156 = arith.constant 1 : index
    %c0_157 = arith.constant 0 : index
    %c0_158 = arith.constant 0 : index
    %197 = vector.load %arg14[%c1_156, %c0_157, %c0_158] : memref<4x80x10xf32, #tpu.memory_space<vmem>>, vector<1x80x10xf32>
    %198 = vector.shape_cast %197 : vector<1x80x10xf32> to vector<80x10xf32>
    %cst_159 = arith.constant dense<0.000000e+00> : vector<1x10xf32>
    %199 = tpu.matmul %196, %198, %cst_159 {dimension_numbers = #tpu.dot_dimension_numbers<[1], [0], [0], [1], [0, 0, 1, 1], [], []>} : vector<1x80xf32>, vector<80x10xf32>, vector<1x10xf32> -> vector<1x10xf32>
    %200 = arith.addf %195, %199 : vector<1x10xf32>
    %201 = vector.extract_strided_slice %190 {offsets = [2, 0], sizes = [1, 80], strides = [1, 1]} : vector<4x80xf32> to vector<1x80xf32>
    %c2_160 = arith.constant 2 : index
    %c0_161 = arith.constant 0 : index
    %c0_162 = arith.constant 0 : index
    %202 = vector.load %arg14[%c2_160, %c0_161, %c0_162] : memref<4x80x10xf32, #tpu.memory_space<vmem>>, vector<1x80x10xf32>
    %203 = vector.shape_cast %202 : vector<1x80x10xf32> to vector<80x10xf32>
    %cst_163 = arith.constant dense<0.000000e+00> : vector<1x10xf32>
    %204 = tpu.matmul %201, %203, %cst_163 {dimension_numbers = #tpu.dot_dimension_numbers<[1], [0], [0], [1], [0, 0, 1, 1], [], []>} : vector<1x80xf32>, vector<80x10xf32>, vector<1x10xf32> -> vector<1x10xf32>
    %205 = arith.addf %200, %204 : vector<1x10xf32>
    %206 = vector.extract_strided_slice %190 {offsets = [3, 0], sizes = [1, 80], strides = [1, 1]} : vector<4x80xf32> to vector<1x80xf32>
    %c3_164 = arith.constant 3 : index
    %c0_165 = arith.constant 0 : index
    %c0_166 = arith.constant 0 : index
    %207 = vector.load %arg14[%c3_164, %c0_165, %c0_166] : memref<4x80x10xf32, #tpu.memory_space<vmem>>, vector<1x80x10xf32>
    %208 = vector.shape_cast %207 : vector<1x80x10xf32> to vector<80x10xf32>
    %cst_167 = arith.constant dense<0.000000e+00> : vector<1x10xf32>
    %209 = tpu.matmul %206, %208, %cst_167 {dimension_numbers = #tpu.dot_dimension_numbers<[1], [0], [0], [1], [0, 0, 1, 1], [], []>} : vector<1x80xf32>, vector<80x10xf32>, vector<1x10xf32> -> vector<1x10xf32>
    %210 = arith.addf %205, %209 : vector<1x10xf32>
    %cst_168 = arith.constant 0.000000e+00 : f32
    %211 = vector.broadcast %cst_168 : f32 to vector<1x10xf32>
    %212 = arith.maximumf %210, %211 : vector<1x10xf32>
    %cst_169 = arith.constant dense<0xFF800000> : vector<1xf32>
    %213 = vector.multi_reduction <maximumf>, %212, %cst_169 [1] : vector<1x10xf32> to vector<1xf32>
    %214 = vector.shape_cast %213 : vector<1xf32> to vector<1x1xf32>
    %215 = vector.broadcast %214 : vector<1x1xf32> to vector<1x10xf32>
    %216 = arith.subf %212, %215 : vector<1x10xf32>
    %217 = math.exp %216 : vector<1x10xf32>
    %cst_170 = arith.constant dense<0.000000e+00> : vector<1xf32>
    %218 = vector.multi_reduction <add>, %217, %cst_170 [1] : vector<1x10xf32> to vector<1xf32>
    %219 = vector.shape_cast %218 : vector<1xf32> to vector<1x1xf32>
    %220 = math.log %219 : vector<1x1xf32>
    %221 = arith.addf %220, %214 : vector<1x1xf32>
    %222 = vector.broadcast %221 : vector<1x1xf32> to vector<1x10xf32>
    %223 = arith.subf %212, %222 : vector<1x10xf32>
    %c1_171 = arith.constant 1 : index
    %c0_172 = arith.constant 0 : index
    %c0_173 = arith.constant 0 : index
    %224 = vector.load %arg16[%c1_171, %c0_172, %c0_173] : memref<2x1x10xf32, #tpu.memory_space<vmem>>, vector<1x1x10xf32>
    %225 = vector.shape_cast %224 : vector<1x1x10xf32> to vector<1x10xf32>
    %226 = vector.shape_cast %223 : vector<1x10xf32> to vector<1x1x10xf32>
    tpu.vector_store %arg16[%c1_171, %c0_172, %c0_173], %226 {strides = array<i32>} : memref<2x1x10xf32, #tpu.memory_space<vmem>>, vector<1x1x10xf32>,
    return
  }
  func.func @transform_0(%arg0: i32) -> (i32, i32, i32) {
    %c0_i32 = arith.constant 0 : i32
    %c0_i32_0 = arith.constant 0 : i32
    %c0_i32_1 = arith.constant 0 : i32
    return %arg0, %c0_i32, %c0_i32_0 : i32, i32, i32
  }
  func.func @transform_1(%arg0: i32) -> (i32, i32, i32) {
    %c0_i32 = arith.constant 0 : i32
    %c0_i32_0 = arith.constant 0 : i32
    %c0_i32_1 = arith.constant 0 : i32
    %c0_i32_2 = arith.constant 0 : i32
    return %c0_i32, %c0_i32_0, %c0_i32_1 : i32, i32, i32
  }
  func.func @transform_2(%arg0: i32) -> (i32, i32) {
    %c0_i32 = arith.constant 0 : i32
    %c0_i32_0 = arith.constant 0 : i32
    %c0_i32_1 = arith.constant 0 : i32
    return %c0_i32, %c0_i32_0 : i32, i32
  }
  func.func @transform_3(%arg0: i32) -> (i32, i32) {
    %c0_i32 = arith.constant 0 : i32
    %c0_i32_0 = arith.constant 0 : i32
    %c0_i32_1 = arith.constant 0 : i32
    return %c0_i32, %c0_i32_0 : i32, i32
  }
  func.func @transform_4(%arg0: i32) -> (i32, i32) {
    %c0_i32 = arith.constant 0 : i32
    %c0_i32_0 = arith.constant 0 : i32
    %c0_i32_1 = arith.constant 0 : i32
    return %c0_i32, %c0_i32_0 : i32, i32
  }
  func.func @transform_5(%arg0: i32) -> (i32, i32) {
    %c0_i32 = arith.constant 0 : i32
    %c0_i32_0 = arith.constant 0 : i32
    %c0_i32_1 = arith.constant 0 : i32
    return %c0_i32, %c0_i32_0 : i32, i32
  }
  func.func @transform_6(%arg0: i32) -> (i32, i32) {
    %c0_i32 = arith.constant 0 : i32
    %c0_i32_0 = arith.constant 0 : i32
    %c0_i32_1 = arith.constant 0 : i32
    return %c0_i32, %c0_i32_0 : i32, i32
  }
  func.func @transform_7(%arg0: i32) -> (i32, i32, i32) {
    %c0_i32 = arith.constant 0 : i32
    %c0_i32_0 = arith.constant 0 : i32
    %c0_i32_1 = arith.constant 0 : i32
    %c0_i32_2 = arith.constant 0 : i32
    return %c0_i32, %c0_i32_0, %c0_i32_1 : i32, i32, i32
  }
  func.func @transform_8(%arg0: i32) -> (i32, i32) {
    %c0_i32 = arith.constant 0 : i32
    %c0_i32_0 = arith.constant 0 : i32
    %c0_i32_1 = arith.constant 0 : i32
    return %c0_i32, %c0_i32_0 : i32, i32
  }
  func.func @transform_9(%arg0: i32) -> (i32, i32) {
    %c0_i32 = arith.constant 0 : i32
    %c0_i32_0 = arith.constant 0 : i32
    %c0_i32_1 = arith.constant 0 : i32
    return %c0_i32, %c0_i32_0 : i32, i32
  }
  func.func @transform_10(%arg0: i32) -> (i32, i32) {
    %c0_i32 = arith.constant 0 : i32
    %c0_i32_0 = arith.constant 0 : i32
    %c0_i32_1 = arith.constant 0 : i32
    return %c0_i32, %c0_i32_0 : i32, i32
  }
  func.func @transform_11(%arg0: i32) -> (i32, i32) {
    %c0_i32 = arith.constant 0 : i32
    %c0_i32_0 = arith.constant 0 : i32
    %c0_i32_1 = arith.constant 0 : i32
    return %c0_i32, %c0_i32_0 : i32, i32
  }
  func.func @transform_12(%arg0: i32) -> (i32, i32) {
    %c0_i32 = arith.constant 0 : i32
    %c0_i32_0 = arith.constant 0 : i32
    %c0_i32_1 = arith.constant 0 : i32
    return %c0_i32, %c0_i32_0 : i32, i32
  }
  func.func @transform_13(%arg0: i32) -> (i32, i32, i32) {
    %c0_i32 = arith.constant 0 : i32
    %c0_i32_0 = arith.constant 0 : i32
    %c0_i32_1 = arith.constant 0 : i32
    %c0_i32_2 = arith.constant 0 : i32
    return %c0_i32, %c0_i32_0, %c0_i32_1 : i32, i32, i32
  }
  func.func @transform_14(%arg0: i32) -> (i32, i32) {
    %c0_i32 = arith.constant 0 : i32
    %c0_i32_0 = arith.constant 0 : i32
    %c0_i32_1 = arith.constant 0 : i32
    return %c0_i32, %c0_i32_0 : i32, i32
  }
  func.func @transform_15(%arg0: i32) -> (i32, i32, i32) {
    %c0_i32 = arith.constant 0 : i32
    %c0_i32_0 = arith.constant 0 : i32
    %c0_i32_1 = arith.constant 0 : i32
    return %arg0, %c0_i32, %c0_i32_0 : i32, i32, i32
  }
}

</mosaic_0001>

<bundles_post_ra>
// kernel: net_forward.1
= control target key start
LH: loop header
LB: loop body
LE: loop exit
PB: predicated region body
PF: predicated region fallthrough
CT: control target
= control target key end

     0   :  { %vm100_vm0 = vcmask 1043456   ;;  %v6251_v7 = vmov 0.0   ;;  %vm6252_vm1 = vmmov 1   ;;  %v6253_v20 = vmov 0.0|0.0   ;;  %s8936_s0 = inlined_call_operand.vmem [shape: f32[2,28,28], index: 0, kind: input, shape index: {}]   ;;  %s8937_s1 = inlined_call_operand.vmem [shape: f32[5,28,240], index: 1, kind: input, shape index: {}]   ;;  %s8938_s2 = inlined_call_operand.vmem [shape: f32[1,240], index: 2, kind: input, shape index: {}]   ;;  %s8939_s3 = inlined_call_operand.vmem [shape: f32[240,120], index: 3, kind: input, shape index: {}]   ;;  %s8940_s4 = inlined_call_operand.vmem [shape: f32[240,120], index: 4, kind: input, shape index: {}]   ;;  %s8941_s5 = inlined_call_operand.vmem [shape: f32[12,24], index: 5, kind: input, shape index: {}]   ;;  %s8942_s6 = inlined_call_operand.vmem [shape: f32[12,24], index: 6, kind: input, shape index: {}]   ;;  %s8943_s7 = inlined_call_operand.vmem [shape: f32[5,120,160], index: 7, kind: input, shape index: {}]   ;;  %s8944_s8 = inlined_call_operand.vmem [shape: f32[1,160], index: 8, kind: input, shape index: {}]   ;;  %s8945_s9 = inlined_call_operand.vmem [shape: f32[160,80], index: 9, kind: input, shape index: {}]   ;;  %s8946_s10 = inlined_call_operand.vmem [shape: f32[160,80], index: 10, kind: input, shape index: {}]   ;;  %s8947_s11 = inlined_call_operand.vmem [shape: f32[4,8], index: 11, kind: input, shape index: {}]   ;;  %s8948_s12 = inlined_call_operand.vmem [shape: f32[4,8], index: 12, kind: input, shape index: {}]   ;;  %s8949_s13 = inlined_call_operand.vmem [shape: f32[4,80,10], index: 13, kind: input, shape index: {}]   ;;  %s8950_s14 = inlined_call_operand.vmem [shape: f32[1,10], index: 14, kind: input, shape index: {}]   ;;  %s8951_s15 = inlined_call_operand.hbm [shape: f32[2,1,10], index: 15, kind: output, shape index: {}]  }
   0x1   :  { %v4492_v0 = vld [vmem:[%s8937_s1 + $0x48] sm:$0xff]  ;;  %v4494_v1 = vld [vmem:[%s8937_s1 + $0x58] sm:$0xff]  ;;  %v4491_v2 = vld [vmem:[%s8937_s1 + $0x40] sm:$0xff]  ;;  %171 = vmatprep.mubr.f32.mxu0 %v6251_v7  ;;  %5361 = vmatprep.subr.bf16.mxu1 %v6253_v20  ;;  %vm85_vm3 = vcmask 1046528   ;;  %vm93_vm4 = vcmask 228352   ;;  %vm294_vm5 = vcmask 1045504  }
   0x2   :  { %v5311_v3 = vpack.c.bf16 %v4494_v1, %v4492_v0  ;;  %v4493_v4 = vld [vmem:[%s8937_s1 + $0x50] sm:$0xff]  ;;  %v4496_v5 = vld [vmem:[%s8937_s1 + $0x68] sm:$0xff]  ;;  %v4498_v6 = vld [vmem:[%s8937_s1 + $0x78] sm:$0xf] }
   0x3   :  { %v5313_v8 = vpack.c.bf16 %v4493_v4, %v4491_v2  ;;  %v5315_v9 = vpack.c.bf16 %v4498_v6, %v4496_v5  ;;  %vm6358_vm2 = vmpackc.low %vm100_vm0, %vm6252_vm1  ;;  %v4495_v11 = vld [vmem:[%s8937_s1 + $0x60] sm:$0xff]  ;;  %v4497_v12 = vld [vmem:[%s8937_s1 + $0x70] sm:$0xf] }
   0x4   :  { %5312 = vmatprep.subr.bf16.mxu0 %v5311_v3  ;;  %v6371_v13 = vld [vmem:[%s8936_s0] sm:$0xff]  ;;  %v6376_v14 = vld [vmem:[%s8936_s0 + $0x8] sm:$0xff]  ;;  %v5318_v15 = vpack.c.bf16 %v4497_v12, %v4495_v11  ;;  %v67_v19 = vld [vmem:[%s8937_s1 + $0x18] sm:$0xff] }
   0x5   :  { %5314 = vmatpush1.bf16.msra.mxu0 %v5313_v8  ;;  %v86_v16 = vrot.slane %v6371_v13, 1  ;;  %v87_v17 = vrot.slane %v6376_v14, 1  ;;  %v65_v18 = vld [vmem:[%s8937_s1 + $0x8] sm:$0xff]  ;;  %v6392_v21 = vld [vmem:[%s8936_s0 + $0x10] sm:$0xff]  ;;  %v64_v23 = vld [vmem:[%s8937_s1] sm:$0xff]  ;;  %v295_v3 = vrot.slane %v6371_v13, 2 }
   0x6   :  { %5317 = vmatprep.subr.msk.bf16.mxu0 %vm6358_vm2, %v5315_v9  ;;  %v5321_v22 = vpack.c.bf16 %v67_v19, %v65_v18  ;;  %v66_v24 = vld [vmem:[%s8937_s1 + $0x10] sm:$0xff]  ;;  %v69_v25 = vld [vmem:[%s8937_s1 + $0x28] sm:$0xff]  ;;  %v71_v26 = vld [vmem:[%s8937_s1 + $0x38] sm:$0xf]  ;;  %v89_v28 = vrot.slane %v6392_v21, 1  ;;  %v296_v4 = vrot.slane %v6376_v14, 2 }
   0x7   :  { %v88_v27 = vsel %vm85_vm3, %v86_v16, %v87_v17  ;;  %v5323_v29 = vpack.c.bf16 %v66_v24, %v64_v23  ;;  %v6413_v30 = vld [vmem:[%s8936_s0 + $0x18] sm:$0xf]  ;;  %v5325_v31 = vpack.c.bf16 %v71_v26, %v69_v25  ;;  %v68_v32 = vld [vmem:[%s8937_s1 + $0x20] sm:$0xff]  ;;  %v70_v33 = vld [vmem:[%s8937_s1 + $0x30] sm:$0xf] }
   0x8   :  { %v4510_v34 = vld [vmem:[%s8937_s1 + $0x88] sm:$0xff]  ;;  %v4512_v35 = vld [vmem:[%s8937_s1 + $0x98] sm:$0xff]  ;;  %v90_v36 = vsel %vm85_vm3, %v87_v17, %v89_v28  ;;  %v91_v37 = vrot.slane %v6413_v30, 1  ;;  %v5328_v38 = vpack.c.bf16 %v70_v33, %v68_v32  ;;  %v655_v40 = vld [vmem:[%s8939_s3] sm:$0xff]  ;;  %v297_v16 = vsel %vm294_vm5, %v295_v3, %v296_v4 }
   0x9   :  { %5320 = vmatpush1.bf16.msk.msra.mxu0 %vm6358_vm2, %v5318_v15  ;;  %v5331_v39 = vpack.c.bf16 %v4512_v35, %v4510_v34  ;;  %v656_v41 = vld [vmem:[%s8939_s3 + $0x8] sm:$0xff]  ;;  %v657_v44 = vld [vmem:[%s8939_s3 + $0x10] sm:$0xff]  ;;  %v658_v45 = vld [vmem:[%s8939_s3 + $0x18] sm:$0xff]  ;;  %v298_v17 = vrot.slane %v6392_v21, 2 }
   0xa   :  { %5322 = vmatprep.subr.bf16.mxu0 %v5321_v22  ;;  %v92_v42 = vsel %vm85_vm3, %v89_v28, %v91_v37  ;;  %v5362_v43 = vpack.c.bf16 %v656_v41, %v655_v40  ;;  %v4509_v46 = vld [vmem:[%s8937_s1 + $0x80] sm:$0xff]  ;;  %v4511_v47 = vld [vmem:[%s8937_s1 + $0x90] sm:$0xff]  ;;  %v4514_v48 = vld [vmem:[%s8937_s1 + $0xa8] sm:$0xff]  ;;  %v5365_v50 = vpack.c.bf16 %v658_v45, %v657_v44 }
   0xb   :  { %v4516_v49 = vld [vmem:[%s8937_s1 + $0xb8] sm:$0xf]  ;;  %v659_v51 = vld [vmem:[%s8939_s3 + $0x20] sm:$0xff]  ;;  %v660_v52 = vld [vmem:[%s8939_s3 + $0x28] sm:$0xff]  ;;  %v5333_v53 = vpack.c.bf16 %v4511_v47, %v4509_v46 }
   0xc   :  { %4501 = vmatmul.mubr.msk.f32.vlgmr.msra.gmra.mrb[0].mxu0 %vm93_vm4, %v88_v27  ;;  %5363 = vmatpush1.bf16.msra.mxu1 %v5362_v43  ;;  %v5335_v54 = vpack.c.bf16 %v4516_v49, %v4514_v48  ;;  %v4513_v55 = vld [vmem:[%s8937_s1 + $0xa0] sm:$0xff]  ;;  %v4515_v56 = vld [vmem:[%s8937_s1 + $0xb0] sm:$0xf]  ;;  %v4523_v57 = vld [vmem:[%s8937_s1 + $0xc8] sm:$0xff]  ;;  %v5368_v59 = vpack.c.bf16 %v660_v52, %v659_v51 }
   0xd   :  { %177 = vmatprep.mubr.f32.mxu0 %v6251_v7  ;;  %5324 = vmatpush1.bf16.msra.mxu0 %v5323_v29  ;;  %v4525_v58 = vld [vmem:[%s8937_s1 + $0xd8] sm:$0xff]  ;;  %v661_v60 = vld [vmem:[%s8939_s3 + $0x30] sm:$0xff]  ;;  %v5338_v62 = vpack.c.bf16 %v4515_v56, %v4513_v55  ;;  %v663_v1 = vld [vmem:[%s8939_s3 + $0x40] sm:$0xff] }
   0xe   :  { %5327 = vmatprep.subr.msk.bf16.mxu0 %vm6358_vm2, %v5325_v31  ;;  %5364 = vmatprep.subr.bf16.mxu1 %v6253_v20  ;;  %v662_v61 = vld [vmem:[%s8939_s3 + $0x38] sm:$0xff]  ;;  %v5341_v63 = vpack.c.bf16 %v4525_v58, %v4523_v57  ;;  %v664_v2 = vld [vmem:[%s8939_s3 + $0x48] sm:$0xff]  ;;  %v4522_v5 = vld [vmem:[%s8937_s1 + $0xc0] sm:$0xff] }
   0xf   :  { %v5371_v0 = vpack.c.bf16 %v662_v61, %v661_v60  ;;  %v4524_v6 = vld [vmem:[%s8937_s1 + $0xd0] sm:$0xff]  ;;  %v4527_v8 = vld [vmem:[%s8937_s1 + $0xe8] sm:$0xff]  ;;  %v4529_v9 = vld [vmem:[%s8937_s1 + $0xf8] sm:$0xf]  ;;  %v5374_v11 = vpack.c.bf16 %v664_v2, %v663_v1 }
  0x10   :  { %4502 = vmatmul.mubr.msk.f32.gmra.mrb[2].mxu0 %vm93_vm4, %v90_v36  ;;  %5366 = vmatpush1.bf16.msra.mxu1 %v5365_v50  ;;  %v665_v12 = vld [vmem:[%s8939_s3 + $0x50] sm:$0xff]  ;;  %v666_v15 = vld [vmem:[%s8939_s3 + $0x58] sm:$0xff]  ;;  %v5343_v18 = vpack.c.bf16 %v4524_v6, %v4522_v5  ;;  %v5345_v19 = vpack.c.bf16 %v4529_v9, %v4527_v8  ;;  %v4526_v22 = vld [vmem:[%s8937_s1 + $0xe0] sm:$0xff] }
  0x11   :  { %183 = vmatprep.mubr.f32.mxu0 %v6251_v7  ;;  %5330 = vmatpush1.bf16.msk.msra.mxu0 %vm6358_vm2, %v5328_v38  ;;  %v4528_v23 = vld [vmem:[%s8937_s1 + $0xf0] sm:$0xf]  ;;  %v4536_v24 = vld [vmem:[%s8937_s1 + $0x108] sm:$0xff]  ;;  %v4538_v25 = vld [vmem:[%s8937_s1 + $0x118] sm:$0xff]  ;;  %v5377_v26 = vpack.c.bf16 %v666_v15, %v665_v12 }
  0x12   :  { %5332 = vmatprep.subr.bf16.mxu0 %v5331_v39  ;;  %5367 = vmatprep.subr.bf16.mxu1 %v6253_v20 }
  0x14   :  { %4503 = vmatmul.mubr.msk.f32.gmra.mrb[4].mxu0 %vm93_vm4, %v92_v42  ;;  %5369 = vmatpush1.bf16.msra.mxu1 %v5368_v59 }
  0x15   :  { %266 = vmatprep.mubr.f32.mxu0 %v6251_v7  ;;  %5370 = vmatprep.subr.bf16.mxu1 %v6253_v20 }
  0x18   :  { %4506 = vmatmul.mubr.msk.f32.vlgmr.msra.gmra.mrb[0].mxu0 %vm93_vm4, %v6371_v13  ;;  %5372 = vmatpush1.bf16.msra.mxu1 %v5371_v0 }
  0x19   :  { %272 = vmatprep.mubr.f32.mxu0 %v6251_v7  ;;  %5334 = vmatpush1.bf16.msra.mxu0 %v5333_v53 }
  0x1a   :  { %5337 = vmatprep.subr.msk.bf16.mxu0 %vm6358_vm2, %v5335_v54  ;;  %5373 = vmatprep.subr.bf16.mxu1 %v6253_v20 }
  0x1c   :  { %4507 = vmatmul.mubr.msk.f32.gmra.mrb[2].mxu0 %vm93_vm4, %v6376_v14  ;;  %5375 = vmatpush1.bf16.msra.mxu1 %v5374_v11 }
  0x1d   :  { %278 = vmatprep.mubr.f32.mxu0 %v6251_v7  ;;  %5340 = vmatpush1.bf16.msk.msra.mxu0 %vm6358_vm2, %v5338_v62 }
  0x1e   :  { %5342 = vmatprep.subr.bf16.mxu0 %v5341_v63 }
  0x20   :  { %4508 = vmatmul.mubr.msk.f32.gmra.mrb[4].mxu0 %vm93_vm4, %v6392_v21 }
  0x21   :  { %378 = vmatprep.mubr.f32.mxu0 %v6251_v7 }
  0x22   :  { %20 = vsyncpa [#allocation3], 0  ;;  %5376 = vmatprep.subr.bf16.mxu1 %v6253_v20  ;;  %v667_v27 = vld [vmem:[%s8939_s3 + $0x60] sm:$0xff]  ;;  %v668_v28 = vld [vmem:[%s8939_s3 + $0x68] sm:$0xff]  ;;  %v299_v29 = vsel %vm294_vm5, %v296_v4, %v298_v17  ;;  %v300_v31 = vrot.slane %v6413_v30, 2  ;;  %v5348_v32 = vpack.c.bf16 %v4528_v23, %v4526_v22  ;;  %v5351_v33 = vpack.c.bf16 %v4538_v25, %v4536_v24 }
  0x23   :  { %5378 = vmatpush1.bf16.msra.mxu1 %v5377_v26  ;;  %v5380_v34 = vpack.c.bf16 %v668_v28, %v667_v27  ;;  %v669_v35 = vld [vmem:[%s8939_s3 + $0x70] sm:$0xff]  ;;  %v670_v36 = vld [vmem:[%s8939_s3 + $0x78] sm:$0xff]  ;;  %v413_v38 = vrot.slane %v6371_v13, 3  ;;  %v414_v39 = vrot.slane %v6376_v14, 3  ;;  %vm412_vm6 = vcmask 1044480   ;;  %v4535_v40 = vld [vmem:[%s8937_s1 + $0x100] sm:$0xff] }
  0x24   :  { %4519 = vmatmul.mubr.msk.f32.vlgmr.msra.gmra.mrb[0].mxu0 %vm93_vm4, %v297_v16  ;;  %5379 = vmatprep.subr.bf16.mxu1 %v6253_v20  ;;  %v301_v37 = vsel %vm294_vm5, %v298_v17, %v300_v31  ;;  %v4537_v41 = vld [vmem:[%s8937_s1 + $0x110] sm:$0xff]  ;;  %v4540_v42 = vld [vmem:[%s8937_s1 + $0x128] sm:$0xff]  ;;  %v4542_v43 = vld [vmem:[%s8937_s1 + $0x138] sm:$0xf]  ;;  %v5383_v44 = vpack.c.bf16 %v670_v36, %v669_v35  ;;  %v416_v48 = vrot.slane %v6392_v21, 3  ;;  %v418_v57 = vrot.slane %v6413_v30, 3 }
  0x25   :  { %384 = vmatprep.mubr.f32.mxu0 %v6251_v7  ;;  %5344 = vmatpush1.bf16.msra.mxu0 %v5343_v18  ;;  %v671_v45 = vld [vmem:[%s8939_s3 + $0x80] sm:$0xff]  ;;  %v672_v46 = vld [vmem:[%s8939_s3 + $0x88] sm:$0xff]  ;;  %v415_v47 = vsel %vm412_vm6, %v413_v38, %v414_v39  ;;  %v5353_v49 = vpack.c.bf16 %v4537_v41, %v4535_v40  ;;  %v5355_v50 = vpack.c.bf16 %v4542_v43, %v4540_v42  ;;  %v4541_v52 = vld [vmem:[%s8937_s1 + $0x130] sm:$0xf]  ;;  %v530_v63 = vrot.slane %v6371_v13, 4 }
  0x26   :  { %5347 = vmatprep.subr.msk.bf16.mxu0 %vm6358_vm2, %v5345_v19  ;;  %v4539_v51 = vld [vmem:[%s8937_s1 + $0x120] sm:$0xff]  ;;  %v5386_v53 = vpack.c.bf16 %v672_v46, %v671_v45  ;;  %v673_v54 = vld [vmem:[%s8939_s3 + $0x90] sm:$0xff]  ;;  %v674_v55 = vld [vmem:[%s8939_s3 + $0x98] sm:$0xff]  ;;  %v417_v56 = vsel %vm412_vm6, %v414_v39, %v416_v48  ;;  %v419_v62 = vsel %vm412_vm6, %v416_v48, %v418_v57  ;;  %v531_v0 = vrot.slane %v6376_v14, 4 }
  0x27   :  { %5381 = vmatpush1.bf16.msra.mxu1 %v5380_v34  ;;  %v5358_v58 = vpack.c.bf16 %v4541_v52, %v4539_v51  ;;  %v5389_v59 = vpack.c.bf16 %v674_v55, %v673_v54  ;;  %v675_v60 = vld [vmem:[%s8939_s3 + $0xa0] sm:$0xff]  ;;  %v676_v61 = vld [vmem:[%s8939_s3 + $0xa8] sm:$0xff]  ;;  %v677_v13 = vld [vmem:[%s8939_s3 + $0xb0] sm:$0xff]  ;;  %v533_v5 = vrot.slane %v6392_v21, 4  ;;  %v535_v16 = vrot.slane %v6413_v30, 4 }
  0x28   :  { %4520 = vmatmul.mubr.msk.f32.gmra.mrb[2].mxu0 %vm93_vm4, %v299_v29  ;;  %5382 = vmatprep.subr.bf16.mxu1 %v6253_v20  ;;  %v775_v1 = vld [vmem:[%s8940_s4] sm:$0xff]  ;;  %v776_v2 = vld [vmem:[%s8940_s4 + $0x8] sm:$0xff]  ;;  %v5392_v3 = vpack.c.bf16 %v676_v61, %v675_v60  ;;  %v678_v14 = vld [vmem:[%s8939_s3 + $0xb8] sm:$0xff]  ;;  %v532_v4 = vsel %vm100_vm0, %v530_v63, %v531_v0  ;;  %vm685_vm7 = vcmask 916480   ;;  %vm888_vm8 = vcmask 195584  }
  0x29   :  { %390 = vmatprep.mubr.f32.mxu0 %v6251_v7  ;;  %5350 = vmatpush1.bf16.msk.msra.mxu0 %vm6358_vm2, %v5348_v32  ;;  %v5407_v6 = vpack.c.bf16 %v776_v2, %v775_v1  ;;  %v777_v8 = vld [vmem:[%s8940_s4 + $0x10] sm:$0xff]  ;;  %v778_v9 = vld [vmem:[%s8940_s4 + $0x18] sm:$0xff]  ;;  %v5395_v11 = vpack.c.bf16 %v678_v14, %v677_v13  ;;  %v679_v12 = vld [vmem:[%s8939_s3 + $0xc0] sm:$0xff]  ;;  %v534_v15 = vsel %vm100_vm0, %v531_v0, %v533_v5  ;;  %vm1121_vm9 = vcmask 982016  }
  0x2a   :  { %5352 = vmatprep.subr.bf16.mxu0 %v5351_v33  ;;  %v680_v21 = vld [vmem:[%s8939_s3 + $0xc8] sm:$0xff]  ;;  %v5410_v17 = vpack.c.bf16 %v778_v9, %v777_v8  ;;  %v779_v18 = vld [vmem:[%s8940_s4 + $0x20] sm:$0xff]  ;;  %v681_v30 = vld [vmem:[%s8939_s3 + $0xd0] sm:$0xff]  ;;  %v536_v24 = vsel %vm100_vm0, %v533_v5, %v535_v16  ;;  %vm1628_vm10 = vcmask 261120   ;;  %vm6254_vm11 = vmmov 0  }
  0x2b   :  { %5384 = vmatpush1.bf16.msra.mxu1 %v5383_v44  ;;  %v780_v19 = vld [vmem:[%s8940_s4 + $0x28] sm:$0xff]  ;;  %v5398_v22 = vpack.c.bf16 %v680_v21, %v679_v12  ;;  %v682_v23 = vld [vmem:[%s8939_s3 + $0xd8] sm:$0xff]  ;;  %v781_v26 = vld [vmem:[%s8940_s4 + $0x30] sm:$0xff]  ;;  %vm1793_vm12 = vcmask 64512   ;;  %vm1952_vm13 = vcmask 654336   ;;  %vm2283_vm14 = vcmask 73728  }
  0x2c   :  { %4521 = vmatmul.mubr.msk.f32.gmra.mrb[4].mxu0 %vm93_vm4, %v301_v37  ;;  %5385 = vmatprep.subr.bf16.mxu1 %v6253_v20  ;;  %v5413_v25 = vpack.c.bf16 %v780_v19, %v779_v18  ;;  %v782_v27 = vld [vmem:[%s8940_s4 + $0x38] sm:$0xff]  ;;  %v5401_v28 = vpack.c.bf16 %v682_v23, %v681_v30  ;;  %v783_v31 = vld [vmem:[%s8940_s4 + $0x40] sm:$0xff]  ;;  %v784_v32 = vld [vmem:[%s8940_s4 + $0x48] sm:$0xff] }
  0x2d   :  { %496 = vmatprep.mubr.f32.mxu0 %v6251_v7  ;;  %v5416_v29 = vpack.c.bf16 %v782_v27, %v781_v26  ;;  %v5419_v33 = vpack.c.bf16 %v784_v32, %v783_v31  ;;  %v785_v34 = vld [vmem:[%s8940_s4 + $0x50] sm:$0xff]  ;;  %v786_v35 = vld [vmem:[%s8940_s4 + $0x58] sm:$0xff]  ;;  %v787_v37 = vld [vmem:[%s8940_s4 + $0x60] sm:$0xff] }
  0x2e   :  { %v5422_v36 = vpack.c.bf16 %v786_v35, %v785_v34  ;;  %v788_v38 = vld [vmem:[%s8940_s4 + $0x68] sm:$0xff]  ;;  %v789_v40 = vld [vmem:[%s8940_s4 + $0x70] sm:$0xff]  ;;  %v790_v41 = vld [vmem:[%s8940_s4 + $0x78] sm:$0xff] }
  0x2f   :  { %5387 = vmatpush1.bf16.msra.mxu1 %v5386_v53  ;;  %v5425_v39 = vpack.c.bf16 %v788_v38, %v787_v37  ;;  %v5428_v42 = vpack.c.bf16 %v790_v41, %v789_v40  ;;  %v791_v43 = vld [vmem:[%s8940_s4 + $0x80] sm:$0xff]  ;;  %v792_v44 = vld [vmem:[%s8940_s4 + $0x88] sm:$0xff]  ;;  %v793_v46 = vld [vmem:[%s8940_s4 + $0x90] sm:$0xff] }
  0x30   :  { %4532 = vmatmul.mubr.msk.f32.vlgmr.msra.gmra.mrb[0].mxu0 %vm93_vm4, %v415_v47  ;;  %5388 = vmatprep.subr.bf16.mxu1 %v6253_v20  ;;  %v5431_v45 = vpack.c.bf16 %v792_v44, %v791_v43  ;;  %v794_v47 = vld [vmem:[%s8940_s4 + $0x98] sm:$0xff]  ;;  %v797_v52 = vld [vmem:[%s8940_s4 + $0xb0] sm:$0xff]  ;;  %v799_v55 = vld [vmem:[%s8940_s4 + $0xc0] sm:$0xff] }
  0x31   :  { %502 = vmatprep.mubr.f32.mxu0 %v6251_v7  ;;  %5354 = vmatpush1.bf16.msra.mxu0 %v5353_v49  ;;  %v5434_v48 = vpack.c.bf16 %v794_v47, %v793_v46  ;;  %v795_v49 = vld [vmem:[%s8940_s4 + $0xa0] sm:$0xff]  ;;  %v798_v53 = vld [vmem:[%s8940_s4 + $0xb8] sm:$0xff]  ;;  %v804_v1 = vld [vmem:[%s8940_s4 + $0xe8] sm:$0xff] }
  0x32   :  { %5357 = vmatprep.subr.msk.bf16.mxu0 %vm6358_vm2, %v5355_v50  ;;  %v796_v50 = vld [vmem:[%s8940_s4 + $0xa8] sm:$0xff]  ;;  %v5440_v54 = vpack.c.bf16 %v798_v53, %v797_v52  ;;  %v683_v61 = vld [vmem:[%s8939_s3 + $0xe0] sm:$0xff]  ;;  %v4559_v44 = vld [vmem:[%s8943_s7 + $0xf8] sm:$0xff] }
  0x33   :  { %5390 = vmatpush1.bf16.msra.mxu1 %v5389_v59  ;;  %v5437_v51 = vpack.c.bf16 %v796_v50, %v795_v49  ;;  %v802_v59 = vld [vmem:[%s8940_s4 + $0xd8] sm:$0xff]  ;;  %v803_v63 = vld [vmem:[%s8940_s4 + $0xe0] sm:$0xff]  ;;  %v4558_v46 = vld [vmem:[%s8943_s7 + $0xf0] sm:$0xff] }
  0x34   :  { %4533 = vmatmul.mubr.msk.f32.gmra.mrb[2].mxu0 %vm93_vm4, %v417_v56  ;;  %5391 = vmatprep.subr.bf16.mxu1 %v6253_v20  ;;  %v800_v56 = vld [vmem:[%s8940_s4 + $0xc8] sm:$0xff]  ;;  %v5449_v2 = vpack.c.bf16 %v804_v1, %v803_v63  ;;  %v56_v43 = vld [vmem:[%s8942_s6] sm:$0xff] }
  0x35   :  { %508 = vmatprep.mubr.f32.mxu0 %v6251_v7  ;;  %5360 = vmatpush1.bf16.msk.msra.mxu0 %vm6358_vm2, %v5358_v58  ;;  %v5443_v57 = vpack.c.bf16 %v800_v56, %v799_v55  ;;  %v801_v58 = vld [vmem:[%s8940_s4 + $0xd0] sm:$0xff]  ;;  %v4560_v47 = vld [vmem:[%s8943_s7 + $0x100] sm:$0xff]  ;;  %v4565_v49 = vld [vmem:[%s8943_s7 + $0x128] sm:$0xff] }
  0x36   :  { %5406 = vmatprep.subr.bf16.mxu0 %v6253_v20  ;;  %v5446_v60 = vpack.c.bf16 %v802_v59, %v801_v58  ;;  %v5461_v52 = vpack.c.bf16 %v4560_v47, %v4558_v46  ;;  %v4564_v55 = vld [vmem:[%s8943_s7 + $0x120] sm:$0xff]  ;;  %v4567_v56 = vld [vmem:[%s8943_s7 + $0x138] sm:$0xff]  ;;  %v4573_v63 = vld [vmem:[%s8943_s7 + $0x168] sm:$0xff] }
  0x37   :  { %5393 = vmatpush1.bf16.msra.mxu1 %v5392_v3  ;;  %v639_v3 = vlaneseq }
  0x38   :  { %4534 = vmatmul.mubr.msk.f32.gmra.mrb[4].mxu0 %vm93_vm4, %v419_v62  ;;  %5394 = vmatprep.subr.bf16.mxu1 %v6253_v20  ;;  %v684_v62 = vld [vmem:[%s8939_s3 + $0xe8] sm:$0xff] }
  0x39   :  { %613 = vmatprep.mubr.f32.mxu0 %v6251_v7  ;;  %v5404_v0 = vpack.c.bf16 %v684_v62, %v683_v61  ;;  %v6775_v13 = vshrl.u32 %v639_v3, 7  ;;  %v4568_v61 = vld [vmem:[%s8943_s7 + $0x140] sm:$0xff]  ;;  %v4571_v62 = vld [vmem:[%s8943_s7 + $0x158] sm:$0xff] }
  0x3a   :  { %v5471_v1 = vpack.c.bf16 %v4573_v63, %v4571_v62  ;;  %v4572_v3 = vld [vmem:[%s8943_s7 + $0x160] sm:$0xff] }
  0x3b   :  { %5396 = vmatpush1.bf16.msra.mxu1 %v5395_v11  ;;  %v645_v14 = vsub.s32 1, %v6775_v13  ;;  %v641_v5 = vsub.s32 0, %v6775_v13  ;;  %v1704_v13 = vld [vmem:[%s8946_s10 + $0x10] sm:$0xff] }
  0x3c   :  { %4545 = vmatmul.mubr.msk.f32.vlgmr.msra.gmra.mrb[0].mxu0 %vm93_vm4, %v532_v4  ;;  %5397 = vmatprep.subr.bf16.mxu1 %v6253_v20  ;;  %v51_v4 = vld [vmem:[%s8938_s2] sm:$0x3] }
  0x3d   :  { %619 = vmatprep.mubr.f32.mxu0 %v6251_v7  ;;  %5408 = vmatpush1.bf16.msra.mxu0 %v5407_v6  ;;  %v6784_v6 = vrot.slane %v51_v4, %v645_v14  ;;  %v6788_v8 = vrot.slane %v51_v4, %v641_v5 }
  0x3e   :  { %5409 = vmatprep.subr.bf16.mxu0 %v6253_v20 }
  0x3f   :  { %5399 = vmatpush1.bf16.msra.mxu1 %v5398_v22 }
  0x40   :  { %4546 = vmatmul.mubr.msk.f32.gmra.mrb[2].mxu0 %vm93_vm4, %v534_v15  ;;  %5400 = vmatprep.subr.bf16.mxu1 %v6253_v20 }
  0x41   :  { %625 = vmatprep.mubr.f32.mxu0 %v6251_v7  ;;  %5411 = vmatpush1.bf16.msra.mxu0 %v5410_v17 }
  0x42   :  { %5412 = vmatprep.subr.bf16.mxu0 %v6253_v20 }
  0x43   :  { %5402 = vmatpush1.bf16.msra.mxu1 %v5401_v28 }
  0x44   :  { %4547 = vmatmul.mubr.msk.f32.gmra.mrb[4].mxu0 %vm93_vm4, %v536_v24  ;;  %5403 = vmatprep.subr.bf16.mxu1 %v6253_v20  ;;  %v54_v24 = vld [vmem:[%s8941_s5] sm:$0xff] }
  0x45   :  { %5414 = vmatpush1.bf16.msra.mxu0 %v5413_v25 }
  0x46   :  { %5415 = vmatprep.subr.bf16.mxu0 %v6253_v20 }
  0x47   :  { %5405 = vmatpush1.bf16.msra.mxu1 %v5404_v0 }
  0x49   :  { %5417 = vmatpush1.bf16.msra.mxu0 %v5416_v29 }
  0x4a   :  { %5418 = vmatprep.subr.bf16.mxu0 %v6253_v20 }
  0x4d   :  { %5420 = vmatpush1.bf16.msra.mxu0 %v5419_v33 }
  0x4e   :  { %5421 = vmatprep.subr.bf16.mxu0 %v6253_v20 }
  0x51   :  { %5423 = vmatpush1.bf16.msra.mxu0 %v5422_v36 }
  0x52   :  { %5424 = vmatprep.subr.bf16.mxu0 %v6253_v20 }
  0x55   :  { %5426 = vmatpush1.bf16.msra.mxu0 %v5425_v39 }
  0x56   :  { %5427 = vmatprep.subr.bf16.mxu0 %v6253_v20 }
  0x59   :  { %5429 = vmatpush1.bf16.msra.mxu0 %v5428_v42  ;;  %v55_v42 = vld [vmem:[%s8941_s5 + $0x8] sm:$0xf] }
  0x5a   :  { %5430 = vmatprep.subr.bf16.mxu0 %v6253_v20 }
  0x5d   :  { %5432 = vmatpush1.bf16.msra.mxu0 %v5431_v45  ;;  %v4561_v45 = vld [vmem:[%s8943_s7 + $0x108] sm:$0xff] }
  0x5e   :  { %5433 = vmatprep.subr.bf16.mxu0 %v6253_v20  ;;  %v5459_v50 = vpack.c.bf16 %v4561_v45, %v4559_v44  ;;  %v1609_v44 = vld [vmem:[%s8945_s9 + $0x8] sm:$0xff]  ;;  %v1610_v45 = vld [vmem:[%s8945_s9 + $0x10] sm:$0xff] }
  0x61   :  { %5435 = vmatpush1.bf16.msra.mxu0 %v5434_v48  ;;  %v4563_v48 = vld [vmem:[%s8943_s7 + $0x118] sm:$0xff] }
  0x62   :  { %5436 = vmatprep.subr.bf16.mxu0 %v6253_v20  ;;  %v5463_v53 = vpack.c.bf16 %v4565_v49, %v4563_v48  ;;  %v1611_v48 = vld [vmem:[%s8945_s9 + $0x18] sm:$0xff] }
  0x65   :  { %5438 = vmatpush1.bf16.msra.mxu0 %v5437_v51  ;;  %v57_v51 = vld [vmem:[%s8942_s6 + $0x8] sm:$0xf] }
  0x66   :  { %5439 = vmatprep.subr.bf16.mxu0 %v6253_v20 }
  0x69   :  { %5441 = vmatpush1.bf16.msra.mxu0 %v5440_v54  ;;  %v4562_v54 = vld [vmem:[%s8943_s7 + $0x110] sm:$0xff] }
  0x6a   :  { %5442 = vmatprep.subr.bf16.mxu0 %v6253_v20  ;;  %v5465_v58 = vpack.c.bf16 %v4564_v55, %v4562_v54  ;;  %v5603_v54 = vpack.c.bf16 %v1611_v48, %v1610_v45  ;;  %v1612_v55 = vld [vmem:[%s8945_s9 + $0x20] sm:$0xff] }
  0x6d   :  { %5444 = vmatpush1.bf16.msra.mxu0 %v5443_v57  ;;  %v4569_v57 = vld [vmem:[%s8943_s7 + $0x148] sm:$0xff] }
  0x6e   :  { %5445 = vmatprep.subr.bf16.mxu0 %v6253_v20  ;;  %v5467_v59 = vpack.c.bf16 %v4569_v57, %v4567_v56  ;;  %v1613_v56 = vld [vmem:[%s8945_s9 + $0x28] sm:$0xff] }
  0x71   :  { %5447 = vmatpush1.bf16.msra.mxu0 %v5446_v60  ;;  %v4566_v60 = vld [vmem:[%s8943_s7 + $0x130] sm:$0xff] }
  0x72   :  { %5448 = vmatprep.subr.bf16.mxu0 %v6253_v20  ;;  %v5469_v0 = vpack.c.bf16 %v4568_v61, %v4566_v60 }
  0x75   :  { %5450 = vmatpush1.bf16.msra.mxu0 %v5449_v2  ;;  %v4570_v2 = vld [vmem:[%s8943_s7 + $0x150] sm:$0xff] }
  0x76   :  { %5599 = vmatprep.subr.bf16.mxu0 %v6253_v20  ;;  %v5473_v4 = vpack.c.bf16 %v4572_v3, %v4570_v2  ;;  %v1059_v2 = vld [vmem:[%s8943_s7 + $0x20] sm:$0xff]  ;;  %v1061_v3 = vld [vmem:[%s8943_s7 + $0x30] sm:$0xff] }
 0x10f   :  { %v615_v9 = vpop.f32.mrb[0].mxu0 }
 0x110   :  { %v617_v11 = vpop.f32.mrb[1].mxu0  ;;  %v649_v21 = vadd.f32 %v6788_v8, %v615_v9  ;;  %v4575_v9 = vld [vmem:[%s8943_s7 + $0x178] sm:$0xff] }
 0x111   :  { %v650_v12 = vadd.f32 %v6784_v6, %v617_v11  ;;  %v4577_v11 = vld [vmem:[%s8943_s7 + $0x188] sm:$0xff] }
 0x113   :  { %v621_v15 = vpop.f32.mrb[2].mxu0  ;;  %4548 = vmatprep.mubr.msk.f32.mxu1 %vm685_vm7, %v650_v12  ;;  %4551 = vmatprep.mubr.msk.f32.mxu0 %vm685_vm7, %v650_v12  ;;  %v5475_v12 = vpack.c.bf16 %v4577_v11, %v4575_v9  ;;  %v1064_v11 = vld [vmem:[%s8943_s7 + $0x48] sm:$0xff] }
 0x114   :  { %v623_v16 = vpop.f32.mrb[3].mxu0  ;;  %760 = vmatmul.mubr.f32.vlgmr.msra.gmra.mrb[0].mxu1 %v649_v21  ;;  %870 = vmatmul.mubr.f32.vlgmr.msra.gmra.mrb[6].mxu0 %v649_v21  ;;  %v651_v18 = vadd.f32 %v6788_v8, %v621_v15  ;;  %v4574_v21 = vld [vmem:[%s8943_s7 + $0x170] sm:$0xff]  ;;  %v4576_v15 = vld [vmem:[%s8943_s7 + $0x180] sm:$0xff] }
 0x115   :  { %v652_v17 = vadd.f32 %v6784_v6, %v623_v16  ;;  %v5477_v16 = vpack.c.bf16 %v4576_v15, %v4574_v21 }
 0x117   :  { %v627_v19 = vpop.f32.mrb[4].mxu0  ;;  %4549 = vmatprep.mubr.msk.f32.mxu1 %vm685_vm7, %v652_v17  ;;  %4552 = vmatprep.mubr.msk.f32.mxu0 %vm685_vm7, %v652_v17  ;;  %v4579_v17 = vld [vmem:[%s8943_s7 + $0x198] sm:$0xff] }
 0x118   :  { %v629_v22 = vpop.f32.mrb[5].mxu0  ;;  %765 = vmatmul.mubr.f32.gmra.mrb[2].mxu1 %v651_v18  ;;  %875 = vmatmul.mubr.f32.gmra.mrb[8].mxu0 %v651_v18  ;;  %v653_v23 = vadd.f32 %v6788_v8, %v627_v19  ;;  %v4581_v18 = vld [vmem:[%s8943_s7 + $0x1a8] sm:$0xff]  ;;  %v4578_v19 = vld [vmem:[%s8943_s7 + $0x190] sm:$0xff] }
 0x119   :  { %v654_v30 = vadd.f32 %v6784_v6, %v629_v22  ;;  %v5479_v22 = vpack.c.bf16 %v4581_v18, %v4579_v17  ;;  %v1614_v17 = vld [vmem:[%s8945_s9 + $0x30] sm:$0xff]  ;;  %v1615_v18 = vld [vmem:[%s8945_s9 + $0x38] sm:$0xff] }
 0x11b   :  { %4550 = vmatprep.mubr.msk.f32.mxu1 %vm685_vm7, %v654_v30  ;;  %4553 = vmatprep.mubr.msk.f32.mxu0 %vm685_vm7, %v654_v30  ;;  %v4580_v30 = vld [vmem:[%s8943_s7 + $0x1a0] sm:$0xff] }
 0x11c   :  { %770 = vmatmul.mubr.f32.gmra.mrb[4].mxu1 %v653_v23  ;;  %880 = vmatmul.mubr.f32.gmra.mrb[10].mxu0 %v653_v23  ;;  %v5481_v23 = vpack.c.bf16 %v4580_v30, %v4578_v19  ;;  %v5493_v19 = vpack.c.bf16 %v1061_v3, %v1059_v2  ;;  %v1063_v30 = vld [vmem:[%s8943_s7 + $0x40] sm:$0xff]  ;;  %v1084_v2 = vld [vmem:[%s8943_s7 + $0xe8] sm:$0xff] }
 0x11d   :  { %5077 = vmatprep.mubr.msk.f32.mxu1 %vm888_vm8, %v54_v24  ;;  %v4583_v24 = vld [vmem:[%s8943_s7 + $0x1b8] sm:$0xff]  ;;  %v4591_v3 = vld [vmem:[%s8943_s7 + $0x1e8] sm:$0xff] }
 0x1e7   :  { %v761_v25 = vpop.f32.mrb[0].mxu1  ;;  %v871_v26 = vpop.f32.mrb[6].mxu0 }
 0x1e8   :  { %v885_v27 = vmax.f32 %v761_v25, %v871_v26  ;;  %v763_v28 = vpop.f32.mrb[1].mxu1  ;;  %v873_v29 = vpop.f32.mrb[7].mxu0  ;;  %v4585_v25 = vld [vmem:[%s8943_s7 + $0x1c8] sm:$0xff] }
 0x1e9   :  { %v5483_v26 = vpack.c.bf16 %v4585_v25, %v4583_v24  ;;  %v4584_v28 = vld [vmem:[%s8943_s7 + $0x1c0] sm:$0xff]  ;;  %v1068_v24 = vld [vmem:[%s8943_s7 + $0x68] sm:$0xff]  ;;  %v1070_v25 = vld [vmem:[%s8943_s7 + $0x78] sm:$0xff] }
 0x1eb   :  { %v766_v31 = vpop.f32.mrb[2].mxu1  ;;  %v876_v32 = vpop.f32.mrb[8].mxu0 }
 0x1ec   :  { %v886_v33 = vmax.f32 %v766_v31, %v876_v32  ;;  %v768_v34 = vpop.f32.mrb[3].mxu1  ;;  %v878_v35 = vpop.f32.mrb[9].mxu0  ;;  %v4587_v31 = vld [vmem:[%s8943_s7 + $0x1d8] sm:$0xff]  ;;  %v4586_v32 = vld [vmem:[%s8943_s7 + $0x1d0] sm:$0xff] }
 0x1ed   :  { %v1058_v34 = vld [vmem:[%s8943_s7 + $0x18] sm:$0xff] }
 0x1ee   :  { %v5451_v36 = vpack.c.bf16 %v886_v33, %v885_v27  ;;  %v4582_v27 = vld [vmem:[%s8943_s7 + $0x1b0] sm:$0xff]  ;;  %v1056_v33 = vld [vmem:[%s8943_s7 + $0x8] sm:$0xff] }
 0x1ef   :  { %v771_v37 = vpop.f32.mrb[4].mxu1  ;;  %v881_v38 = vpop.f32.mrb[10].mxu0  ;;  %v5485_v29 = vpack.c.bf16 %v4584_v28, %v4582_v27  ;;  %v5487_v35 = vpack.c.bf16 %v1058_v34, %v1056_v33  ;;  %v1616_v27 = vld [vmem:[%s8945_s9 + $0x40] sm:$0xff]  ;;  %v1617_v28 = vld [vmem:[%s8945_s9 + $0x48] sm:$0xff]  ;;  %v1069_v33 = vld [vmem:[%s8943_s7 + $0x70] sm:$0xff] }
 0x1f0   :  { %v887_v39 = vmax.f32 %v771_v37, %v881_v38  ;;  %v773_v40 = vpop.f32.mrb[5].mxu1  ;;  %v883_v41 = vpop.f32.mrb[11].mxu0  ;;  %5452 = vmatprep.subr.bf16.mxu1 %v5451_v36  ;;  %v1072_v34 = vld [vmem:[%s8943_s7 + $0x88] sm:$0xff] }
 0x1f1   :  { %5454 = vmatpush3.bf16.msra.mxu1 %v5451_v36  ;;  %v1057_v40 = vld [vmem:[%s8943_s7 + $0x10] sm:$0xff] }
 0x1f2   :  { %5075 = vmatprep.subr.mxu1 %v887_v39 }
 0x1f5   :  { %5076 = vmatpush3.msra.mxu1 %v887_v39 }
 0x1f6   :  { %5078 = vmatmul.mubr.msk.f32.vlgmr.msra.gmra.mrb[6].mxu1 %vm888_vm8, %v55_v42  ;;  %5456 = vmatprep.subr.bf16.mxu1 %v5451_v36 }
 0x1f7   :  { %5458 = vmatpush3.bf16.msra.mxu1 %v5451_v36  ;;  %5086 = vmatprep.mubr.msk.f32.mxu1 %vm888_vm8, %v56_v43  ;;  %v1608_v43 = vld [vmem:[%s8945_s9] sm:$0xff] }
 0x1f8   :  { %5084 = vmatprep.subr.mxu1 %v887_v39  ;;  %v5600_v47 = vpack.c.bf16 %v1609_v44, %v1608_v43  ;;  %v1076_v43 = vld [vmem:[%s8943_s7 + $0xa8] sm:$0xff]  ;;  %v1078_v44 = vld [vmem:[%s8943_s7 + $0xb8] sm:$0xff] }
 0x1fa   :  { %5601 = vmatpush1.bf16.msra.mxu0 %v5600_v47  ;;  %v1621_v47 = vld [vmem:[%s8945_s9 + $0x68] sm:$0xff] }
 0x1fb   :  { %5085 = vmatpush3.msra.mxu1 %v887_v39  ;;  %v1055_v39 = vld [vmem:[%s8943_s7] sm:$0xff]  ;;  %5602 = vmatprep.subr.bf16.mxu0 %v6253_v20 }
 0x1fc   :  { %5087 = vmatmul.mubr.msk.f32.vlgmr.msra.gmra.mrb[8].mxu1 %vm888_vm8, %v57_v51  ;;  %5460 = vmatprep.subr.bf16.mxu1 %v5459_v50  ;;  %v1060_v50 = vld [vmem:[%s8943_s7 + $0x28] sm:$0xff] }
 0x1fd   :  { %5462 = vmatpush1.bf16.msra.mxu1 %v5461_v52  ;;  %1188 = vmatprep.mubr.f32.mxu1 %v6251_v7  ;;  %v5489_v52 = vpack.c.bf16 %v1057_v40, %v1055_v39 }
 0x1fe   :  { %5464 = vmatprep.subr.bf16.mxu1 %v5463_v53  ;;  %v1062_v53 = vld [vmem:[%s8943_s7 + $0x38] sm:$0xff]  ;;  %5604 = vmatpush1.bf16.msra.mxu0 %v5603_v54 }
 0x1ff   :  { %5605 = vmatprep.subr.bf16.mxu0 %v6253_v20  ;;  %v1082_v54 = vld [vmem:[%s8943_s7 + $0xd8] sm:$0xff] }
 0x201   :  { %5466 = vmatpush1.bf16.msra.mxu1 %v5465_v58 }
 0x202   :  { %5468 = vmatprep.subr.bf16.mxu1 %v5467_v59 }
 0x205   :  { %5470 = vmatpush1.bf16.msra.mxu1 %v5469_v0 }
 0x206   :  { %5472 = vmatprep.subr.bf16.mxu1 %v5471_v1  ;;  %v5491_v1 = vpack.c.bf16 %v1062_v53, %v1060_v50  ;;  %v1075_v50 = vld [vmem:[%s8943_s7 + $0xa0] sm:$0xff]  ;;  %v1080_v53 = vld [vmem:[%s8943_s7 + $0xc8] sm:$0xff] }
 0x209   :  { %5474 = vmatpush1.bf16.msra.mxu1 %v5473_v4  ;;  %v5606_v4 = vpack.c.bf16 %v1613_v56, %v1612_v55  ;;  %v1622_v56 = vld [vmem:[%s8945_s9 + $0x70] sm:$0xff] }
 0x20a   :  { %5476 = vmatprep.subr.bf16.mxu1 %v5475_v12  ;;  %v1066_v12 = vld [vmem:[%s8943_s7 + $0x58] sm:$0xff] }
 0x20b   :  { %5607 = vmatpush1.bf16.msra.mxu0 %v5606_v4  ;;  %v4593_v4 = vld [vmem:[%s8943_s7 + $0x1f8] sm:$0xff] }
 0x20c   :  { %5608 = vmatprep.subr.bf16.mxu0 %v6253_v20 }
 0x20d   :  { %5478 = vmatpush1.bf16.msra.mxu1 %v5477_v16 }
 0x20e   :  { %5480 = vmatprep.subr.bf16.mxu1 %v5479_v22  ;;  %v5495_v22 = vpack.c.bf16 %v1066_v12, %v1064_v11  ;;  %v4590_v11 = vld [vmem:[%s8943_s7 + $0x1e0] sm:$0xff]  ;;  %v4592_v12 = vld [vmem:[%s8943_s7 + $0x1f0] sm:$0xff] }
 0x211   :  { %5482 = vmatpush1.bf16.msra.mxu1 %v5481_v23  ;;  %v1065_v23 = vld [vmem:[%s8943_s7 + $0x50] sm:$0xff] }
 0x212   :  { %5484 = vmatprep.subr.bf16.mxu1 %v5483_v26  ;;  %v5609_v26 = vpack.c.bf16 %v1615_v18, %v1614_v17  ;;  %v4595_v17 = vld [vmem:[%s8943_s7 + $0x208] sm:$0xff]  ;;  %v4597_v18 = vld [vmem:[%s8943_s7 + $0x218] sm:$0xff] }
 0x214   :  { %5610 = vmatpush1.bf16.msra.mxu0 %v5609_v26  ;;  %v4599_v26 = vld [vmem:[%s8943_s7 + $0x228] sm:$0xff] }
 0x215   :  { %5486 = vmatpush1.bf16.msra.mxu1 %v5485_v29  ;;  %v5497_v29 = vpack.c.bf16 %v1065_v23, %v1063_v30  ;;  %5611 = vmatprep.subr.bf16.mxu0 %v6253_v20  ;;  %v5517_v30 = vpack.c.bf16 %v4592_v12, %v4590_v11  ;;  %v5519_v23 = vpack.c.bf16 %v4597_v18, %v4595_v17  ;;  %v4627_v11 = vld [vmem:[%s8943_s7 + $0x300] sm:$0xff]  ;;  %v4630_v12 = vld [vmem:[%s8943_s7 + $0x318] sm:$0xff]  ;;  %v4632_v17 = vld [vmem:[%s8943_s7 + $0x328] sm:$0xff] }
 0x216   :  { %1152 = vmatprep.subr.mxu1 %v4587_v31  ;;  %v5499_v31 = vpack.c.bf16 %v1070_v25, %v1068_v24  ;;  %v4594_v24 = vld [vmem:[%s8943_s7 + $0x200] sm:$0xff]  ;;  %v4596_v25 = vld [vmem:[%s8943_s7 + $0x210] sm:$0xff] }
 0x219   :  { %1153 = vmatpush1.msra.mxu1 %v4586_v32  ;;  %v1067_v32 = vld [vmem:[%s8943_s7 + $0x60] sm:$0xff] }
 0x21a   :  { %5488 = vmatprep.subr.bf16.mxu1 %v5487_v35  ;;  %v1074_v35 = vld [vmem:[%s8943_s7 + $0x98] sm:$0xff]  ;;  %v5501_v39 = vpack.c.bf16 %v1069_v33, %v1067_v32  ;;  %v4600_v32 = vld [vmem:[%s8943_s7 + $0x230] sm:$0xff]  ;;  %v4603_v33 = vld [vmem:[%s8943_s7 + $0x248] sm:$0xff] }
 0x21b   :  { %v5503_v40 = vpack.c.bf16 %v1074_v35, %v1072_v34 }
 0x2c9   :  { %v5079_v36 = vpop.f32.mrb[6].mxu1 }
 0x2ca   :  { %v961_v37 = vpop.f32.mrb[7].mxu1 }
 0x2cf   :  { %v5088_v38 = vpop.f32.mrb[8].mxu1 }
 0x2d0   :  { %v1052_v41 = vmax.f32 %v5079_v36, %v5088_v38  ;;  %v1042_v42 = vpop.f32.mrb[9].mxu1  ;;  %v5612_v36 = vpack.c.bf16 %v1617_v28, %v1616_v27  ;;  %v1619_v38 = vld [vmem:[%s8945_s9 + $0x58] sm:$0xff]  ;;  %v5521_v28 = vpack.c.bf16 %v4596_v25, %v4594_v24 }
 0x2d1   :  { %v1051_v46 = vmax.f32 %v961_v37, %v1042_v42  ;;  %v1618_v37 = vld [vmem:[%s8945_s9 + $0x50] sm:$0xff]  ;;  %v4601_v27 = vld [vmem:[%s8943_s7 + $0x238] sm:$0xff] }
 0x2d2   :  { %v1054_v49 = vmax.f32 %v1052_v41, 0.0  ;;  %v1071_v41 = vld [vmem:[%s8943_s7 + $0x80] sm:$0xff]  ;;  %v1073_v42 = vld [vmem:[%s8943_s7 + $0x90] sm:$0xff]  ;;  %5613 = vmatpush1.bf16.msra.mxu0 %v5612_v36  ;;  %v5615_v45 = vpack.c.bf16 %v1619_v38, %v1618_v37  ;;  %v4607_v38 = vld [vmem:[%s8943_s7 + $0x268] sm:$0xff] }
 0x2d3   :  { %v6936_v51 = vmax.f32 %v1051_v46, 0.0  ;;  %5614 = vmatprep.subr.bf16.mxu0 %v6253_v20  ;;  %v1620_v46 = vld [vmem:[%s8945_s9 + $0x60] sm:$0xff]  ;;  %v5505_v48 = vpack.c.bf16 %v1073_v42, %v1071_v41  ;;  %v4604_v37 = vld [vmem:[%s8943_s7 + $0x250] sm:$0xff] }
 0x2d4   :  { %v1119_v57 = vrot.slane %v1054_v49, 1  ;;  %v1300_v58 = vrot.slane %v1054_v49, 2  ;;  %v1409_v59 = vrot.slane %v1054_v49, 3  ;;  %v1518_v60 = vrot.slane %v1054_v49, 4  ;;  %v4602_v36 = vld [vmem:[%s8943_s7 + $0x240] sm:$0xff] }
 0x2d5   :  { %v1118_v61 = vrot.slane %v6936_v51, 1  ;;  %v1299_v62 = vrot.slane %v6936_v51, 2  ;;  %v1408_v63 = vrot.slane %v6936_v51, 3  ;;  %v1517_v0 = vrot.slane %v6936_v51, 4  ;;  %v4606_v42 = vld [vmem:[%s8943_s7 + $0x260] sm:$0xff] }
 0x2d6   :  { %v5507_v49 = vpack.c.bf16 %v1078_v44, %v1076_v43  ;;  %5616 = vmatpush1.bf16.msra.mxu0 %v5615_v45  ;;  %v5618_v55 = vpack.c.bf16 %v1621_v47, %v1620_v46  ;;  %v4608_v43 = vld [vmem:[%s8943_s7 + $0x270] sm:$0xff]  ;;  %v4611_v44 = vld [vmem:[%s8943_s7 + $0x288] sm:$0xff]  ;;  %v4613_v45 = vld [vmem:[%s8943_s7 + $0x298] sm:$0xff] }
 0x2d7   :  { %v1120_v9 = vsel %vm85_vm3, %v1118_v61, %v1119_v57  ;;  %v6966_v21 = vsel %vm294_vm5, %v1299_v62, %v1300_v58  ;;  %v6969_v15 = vsel %vm412_vm6, %v1408_v63, %v1409_v59  ;;  %v6972_v16 = vsel %vm100_vm0, %v1517_v0, %v1518_v60  ;;  %5617 = vmatprep.subr.bf16.mxu0 %v6253_v20  ;;  %v1623_v57 = vld [vmem:[%s8945_s9 + $0x78] sm:$0xff]  ;;  %v1079_v60 = vld [vmem:[%s8943_s7 + $0xc0] sm:$0xff]  ;;  %v1081_v61 = vld [vmem:[%s8943_s7 + $0xd0] sm:$0xff] }
 0x2d8   :  { %4588 = vmatmul.mubr.msk.f32.vlgmr.msra.gmra.mrb[10].mxu1 %vm1121_vm9, %v1120_v9  ;;  %v5511_v59 = vpack.c.bf16 %v1082_v54, %v1080_v53  ;;  %v5621_v62 = vpack.c.bf16 %v1623_v57, %v1622_v56  ;;  %v1624_v63 = vld [vmem:[%s8945_s9 + $0x80] sm:$0xff]  ;;  %v1625_v0 = vld [vmem:[%s8945_s9 + $0x88] sm:$0xff]  ;;  %v5533_v46 = vpack.c.bf16 %v4608_v43, %v4606_v42  ;;  %v5535_v47 = vpack.c.bf16 %v4613_v45, %v4611_v44  ;;  %v4616_v56 = vld [vmem:[%s8943_s7 + $0x2b0] sm:$0xff] }
 0x2d9   :  { %5490 = vmatpush1.bf16.msra.mxu1 %v5489_v52  ;;  %1261 = vmatprep.mubr.f32.mxu1 %v6251_v7  ;;  %v1077_v52 = vld [vmem:[%s8943_s7 + $0xb0] sm:$0xff]  ;;  %v5624_v9 = vpack.c.bf16 %v1625_v0, %v1624_v63  ;;  %v4626_v63 = vld [vmem:[%s8943_s7 + $0x2f8] sm:$0xff]  ;;  %v4628_v0 = vld [vmem:[%s8943_s7 + $0x308] sm:$0xff] }
 0x2da   :  { %5492 = vmatprep.subr.bf16.mxu1 %v5491_v1  ;;  %v5509_v58 = vpack.c.bf16 %v1077_v52, %v1075_v50  ;;  %5619 = vmatpush1.bf16.msra.mxu0 %v5618_v55  ;;  %v5513_v1 = vpack.c.bf16 %v1081_v61, %v1079_v60  ;;  %v4615_v50 = vld [vmem:[%s8943_s7 + $0x2a8] sm:$0xff]  ;;  %v4617_v52 = vld [vmem:[%s8943_s7 + $0x2b8] sm:$0xff]  ;;  %v4614_v55 = vld [vmem:[%s8943_s7 + $0x2a0] sm:$0xff] }
 0x2db   :  { %5620 = vmatprep.subr.bf16.mxu0 %v6253_v20  ;;  %v5539_v54 = vpack.c.bf16 %v4617_v52, %v4615_v50  ;;  %v5541_v57 = vpack.c.bf16 %v4616_v56, %v4614_v55  ;;  %v4624_v60 = vld [vmem:[%s8943_s7 + $0x2e8] sm:$0xff]  ;;  %v4621_v61 = vld [vmem:[%s8943_s7 + $0x2d0] sm:$0xff]  ;;  %v4647_v45 = vld [vmem:[%s8943_s7 + $0x3a0] sm:$0xff] }
 0x2dc   :  { %v4645_v44 = vld [vmem:[%s8943_s7 + $0x390] sm:$0xff]  ;;  %v4652_v50 = vld [vmem:[%s8943_s7 + $0x3c0] sm:$0xff] }
 0x2dd   :  { %5494 = vmatpush1.bf16.msra.mxu1 %v5493_v19  ;;  %v1083_v19 = vld [vmem:[%s8943_s7 + $0xe0] sm:$0xff]  ;;  %v4654_v52 = vld [vmem:[%s8943_s7 + $0x3d0] sm:$0xff] }
 0x2de   :  { %5496 = vmatprep.subr.bf16.mxu1 %v5495_v22  ;;  %5622 = vmatpush1.bf16.msra.mxu0 %v5621_v62  ;;  %v5515_v22 = vpack.c.bf16 %v4593_v4, %v4591_v3  ;;  %v4623_v62 = vld [vmem:[%s8943_s7 + $0x2e0] sm:$0xff]  ;;  %v5547_v4 = vpack.c.bf16 %v4628_v0, %v4626_v63  ;;  %v4649_v55 = vld [vmem:[%s8943_s7 + $0x3b0] sm:$0xff] }
 0x2df   :  { %5623 = vmatprep.subr.bf16.mxu0 %v6253_v20  ;;  %v5545_v3 = vpack.c.bf16 %v4623_v62, %v4621_v61  ;;  %v4661_v61 = vld [vmem:[%s8943_s7 + $0x408] sm:$0xff]  ;;  %v4663_v62 = vld [vmem:[%s8943_s7 + $0x418] sm:$0xff] }
 0x2e0   :  { %v5579_v0 = vpack.c.bf16 %v4663_v62, %v4661_v61  ;;  %v1713_v61 = vld [vmem:[%s8946_s10 + $0x58] sm:$0xff] }
 0x2e1   :  { %5498 = vmatpush1.bf16.msra.mxu1 %v5497_v29  ;;  %v5523_v29 = vpack.c.bf16 %v4601_v27, %v4599_v26  ;;  %v4633_v26 = vld [vmem:[%s8943_s7 + $0x330] sm:$0xff]  ;;  %v4635_v27 = vld [vmem:[%s8943_s7 + $0x340] sm:$0xff] }
 0x2e2   :  { %5500 = vmatprep.subr.bf16.mxu1 %v5499_v31  ;;  %5625 = vmatpush1.bf16.msra.mxu0 %v5624_v9  ;;  %v4598_v31 = vld [vmem:[%s8943_s7 + $0x220] sm:$0xff]  ;;  %v4625_v9 = vld [vmem:[%s8943_s7 + $0x2f0] sm:$0xff] }
 0x2e3   :  { %5626 = vmatprep.subr.bf16.mxu0 %v6253_v20  ;;  %v5525_v34 = vpack.c.bf16 %v4600_v32, %v4598_v31  ;;  %v5549_v18 = vpack.c.bf16 %v4627_v11, %v4625_v9  ;;  %v5557_v31 = vpack.c.bf16 %v4635_v27, %v4633_v26  ;;  %v4664_v11 = vld [vmem:[%s8943_s7 + $0x420] sm:$0xff] }
 0x2e4   :  { %v4672_v27 = vld [vmem:[%s8943_s7 + $0x460] sm:$0xff] }
 0x2e5   :  { %5502 = vmatpush1.bf16.msra.mxu1 %v5501_v39  ;;  %v4609_v39 = vld [vmem:[%s8943_s7 + $0x278] sm:$0xff] }
 0x2e6   :  { %5504 = vmatprep.subr.bf16.mxu1 %v5503_v40  ;;  %v5529_v40 = vpack.c.bf16 %v4604_v37, %v4602_v36  ;;  %v5531_v41 = vpack.c.bf16 %v4609_v39, %v4607_v38  ;;  %v4641_v38 = vld [vmem:[%s8943_s7 + $0x370] sm:$0xff]  ;;  %v4643_v39 = vld [vmem:[%s8943_s7 + $0x380] sm:$0xff] }
 0x2e7   :  { %v5565_v42 = vpack.c.bf16 %v4643_v39, %v4641_v38  ;;  %v1626_v38 = vld [vmem:[%s8945_s9 + $0x90] sm:$0xff]  ;;  %v1627_v39 = vld [vmem:[%s8945_s9 + $0x98] sm:$0xff] }
 0x2e9   :  { %5506 = vmatpush1.bf16.msra.mxu1 %v5505_v48  ;;  %v4610_v48 = vld [vmem:[%s8943_s7 + $0x280] sm:$0xff] }
 0x2ea   :  { %5508 = vmatprep.subr.bf16.mxu1 %v5507_v49  ;;  %v4612_v49 = vld [vmem:[%s8943_s7 + $0x290] sm:$0xff] }
 0x2eb   :  { %v5537_v53 = vpack.c.bf16 %v4612_v49, %v4610_v48  ;;  %v4653_v48 = vld [vmem:[%s8943_s7 + $0x3c8] sm:$0xff]  ;;  %v4655_v49 = vld [vmem:[%s8943_s7 + $0x3d8] sm:$0xff] }
 0x2ec   :  { %v5571_v56 = vpack.c.bf16 %v4655_v49, %v4653_v48 }
 0x2ed   :  { %5510 = vmatpush1.bf16.msra.mxu1 %v5509_v58  ;;  %v4619_v58 = vld [vmem:[%s8943_s7 + $0x2c8] sm:$0xff] }
 0x2ee   :  { %5512 = vmatprep.subr.bf16.mxu1 %v5511_v59  ;;  %v4622_v59 = vld [vmem:[%s8943_s7 + $0x2d8] sm:$0xff] }
 0x2f1   :  { %5514 = vmatpush1.bf16.msra.mxu1 %v5513_v1  ;;  %v4618_v1 = vld [vmem:[%s8943_s7 + $0x2c0] sm:$0xff] }
 0x2f2   :  { %1225 = vmatprep.subr.mxu1 %v1084_v2  ;;  %v5543_v2 = vpack.c.bf16 %v4624_v60, %v4622_v59  ;;  %v4656_v59 = vld [vmem:[%s8943_s7 + $0x3e0] sm:$0xff]  ;;  %v4658_v60 = vld [vmem:[%s8943_s7 + $0x3f0] sm:$0xff] }
 0x2f3   :  { %v5577_v63 = vpack.c.bf16 %v4658_v60, %v4656_v59  ;;  %v1712_v60 = vld [vmem:[%s8946_s10 + $0x50] sm:$0xff] }
 0x2f4   :  { %v5645_v62 = vpack.c.bf16 %v1713_v61, %v1712_v60 }
 0x2f5   :  { %1226 = vmatpush1.msra.mxu1 %v1083_v19  ;;  %v5551_v19 = vpack.c.bf16 %v4632_v17, %v4630_v12  ;;  %v4666_v12 = vld [vmem:[%s8943_s7 + $0x430] sm:$0xff]  ;;  %v4669_v17 = vld [vmem:[%s8943_s7 + $0x448] sm:$0xff] }
 0x2f6   :  { %4589 = vmatmul.mubr.msk.f32.vlgmr.msra.gmra.mrb[10].mxu1 %vm1121_vm9, %v6936_v51  ;;  %5516 = vmatprep.subr.bf16.mxu1 %v5515_v22  ;;  %v4605_v51 = vld [vmem:[%s8943_s7 + $0x258] sm:$0xff]  ;;  %v4629_v22 = vld [vmem:[%s8943_s7 + $0x310] sm:$0xff] }
 0x2f7   :  { %5518 = vmatpush1.bf16.msra.mxu1 %v5517_v30  ;;  %1368 = vmatprep.mubr.f32.mxu1 %v6251_v7  ;;  %v5527_v35 = vpack.c.bf16 %v4605_v51, %v4603_v33  ;;  %v4631_v30 = vld [vmem:[%s8943_s7 + $0x320] sm:$0xff]  ;;  %v4637_v33 = vld [vmem:[%s8943_s7 + $0x350] sm:$0xff] }
 0x2f8   :  { %5520 = vmatprep.subr.bf16.mxu1 %v5519_v23  ;;  %v4634_v23 = vld [vmem:[%s8943_s7 + $0x338] sm:$0xff]  ;;  %v5553_v24 = vpack.c.bf16 %v4631_v30, %v4629_v22  ;;  %v4639_v51 = vld [vmem:[%s8943_s7 + $0x360] sm:$0xff] }
 0x2f9   :  { %v5561_v36 = vpack.c.bf16 %v4639_v51, %v4637_v33  ;;  %v4668_v30 = vld [vmem:[%s8943_s7 + $0x440] sm:$0xff] }
 0x2fa   :  { %v4676_v51 = vld [vmem:[%s8943_s7 + $0x480] sm:$0xff] }
 0x2fb   :  { %5522 = vmatpush1.bf16.msra.mxu1 %v5521_v28  ;;  %v4638_v28 = vld [vmem:[%s8943_s7 + $0x358] sm:$0xff] }
 0x2fc   :  { %5524 = vmatprep.subr.bf16.mxu1 %v5523_v29  ;;  %v4640_v29 = vld [vmem:[%s8943_s7 + $0x368] sm:$0xff] }
 0x2fd   :  { %v5559_v32 = vpack.c.bf16 %v4640_v29, %v4638_v28  ;;  %v4674_v28 = vld [vmem:[%s8943_s7 + $0x470] sm:$0xff]  ;;  %v4677_v29 = vld [vmem:[%s8943_s7 + $0x488] sm:$0xff] }
 0x2ff   :  { %5526 = vmatpush1.bf16.msra.mxu1 %v5525_v34  ;;  %v4642_v34 = vld [vmem:[%s8943_s7 + $0x378] sm:$0xff] }
 0x300   :  { %5528 = vmatprep.subr.bf16.mxu1 %v5527_v35  ;;  %v4644_v35 = vld [vmem:[%s8943_s7 + $0x388] sm:$0xff] }
 0x301   :  { %v5563_v37 = vpack.c.bf16 %v4644_v35, %v4642_v34  ;;  %v4678_v34 = vld [vmem:[%s8943_s7 + $0x490] sm:$0xff] }
 0x302   :  { %v5597_v35 = vpack.c.bf16 %v4678_v34, %v4676_v51 }
 0x303   :  { %5530 = vmatpush1.bf16.msra.mxu1 %v5529_v40  ;;  %v4646_v40 = vld [vmem:[%s8943_s7 + $0x398] sm:$0xff] }
 0x304   :  { %5532 = vmatprep.subr.bf16.mxu1 %v5531_v41  ;;  %v4648_v41 = vld [vmem:[%s8943_s7 + $0x3a8] sm:$0xff] }
 0x305   :  { %v5567_v43 = vpack.c.bf16 %v4648_v41, %v4646_v40  ;;  %v5627_v40 = vpack.c.bf16 %v1627_v39, %v1626_v38  ;;  %v52_v41 = vld [vmem:[%s8944_s8] sm:$0x3] }
 0x306   :  { %v2303_v39 = vld [vmem:[%s8937_s1] sm:$0xff] }
 0x307   :  { %5534 = vmatpush1.bf16.msra.mxu1 %v5533_v46  ;;  %v5569_v46 = vpack.c.bf16 %v4647_v45, %v4645_v44  ;;  %5628 = vmatpush1.bf16.msra.mxu0 %v5627_v40  ;;  %v1703_v44 = vld [vmem:[%s8946_s10 + $0x8] sm:$0xff]  ;;  %v2305_v40 = vld [vmem:[%s8937_s1 + $0x10] sm:$0xff] }
 0x308   :  { %5536 = vmatprep.subr.bf16.mxu1 %v5535_v47  ;;  %v4650_v47 = vld [vmem:[%s8943_s7 + $0x3b8] sm:$0xff]  ;;  %5629 = vmatprep.subr.bf16.mxu0 %v6253_v20 }
 0x30b   :  { %5538 = vmatpush1.bf16.msra.mxu1 %v5537_v53  ;;  %v4657_v53 = vld [vmem:[%s8943_s7 + $0x3e8] sm:$0xff] }
 0x30c   :  { %5540 = vmatprep.subr.bf16.mxu1 %v5539_v54  ;;  %v4659_v54 = vld [vmem:[%s8943_s7 + $0x3f8] sm:$0xff] }
 0x30f   :  { %5542 = vmatpush1.bf16.msra.mxu1 %v5541_v57  ;;  %v5573_v57 = vpack.c.bf16 %v4654_v52, %v4652_v50  ;;  %v1706_v50 = vld [vmem:[%s8946_s10 + $0x20] sm:$0xff]  ;;  %v1707_v52 = vld [vmem:[%s8946_s10 + $0x28] sm:$0xff] }
 0x310   :  { %1332 = vmatprep.subr.mxu1 %v4619_v58  ;;  %v5575_v58 = vpack.c.bf16 %v4659_v54, %v4657_v53  ;;  %v5636_v53 = vpack.c.bf16 %v1707_v52, %v1706_v50  ;;  %v1708_v54 = vld [vmem:[%s8946_s10 + $0x30] sm:$0xff] }
 0x313   :  { %1333 = vmatpush1.msra.mxu1 %v4618_v1  ;;  %v4660_v1 = vld [vmem:[%s8943_s7 + $0x400] sm:$0xff] }
 0x314   :  { %4620 = vmatmul.mubr.msk.f32.vlgmr.msra.gmra.mrb[10].mxu1 %vm1121_vm9, %v6966_v21  ;;  %5544 = vmatprep.subr.bf16.mxu1 %v5543_v2  ;;  %v4636_v21 = vld [vmem:[%s8943_s7 + $0x348] sm:$0xff]  ;;  %v4662_v2 = vld [vmem:[%s8943_s7 + $0x410] sm:$0xff] }
 0x315   :  { %5546 = vmatpush1.bf16.msra.mxu1 %v5545_v3  ;;  %1477 = vmatprep.mubr.f32.mxu1 %v6251_v7  ;;  %v5555_v25 = vpack.c.bf16 %v4636_v21, %v4634_v23  ;;  %v4665_v3 = vld [vmem:[%s8943_s7 + $0x428] sm:$0xff]  ;;  %v4670_v23 = vld [vmem:[%s8943_s7 + $0x450] sm:$0xff] }
 0x316   :  { %5548 = vmatprep.subr.bf16.mxu1 %v5547_v4  ;;  %v5581_v4 = vpack.c.bf16 %v4662_v2, %v4660_v1  ;;  %v4673_v21 = vld [vmem:[%s8943_s7 + $0x468] sm:$0xff]  ;;  %v1716_v2 = vld [vmem:[%s8946_s10 + $0x70] sm:$0xff] }
 0x319   :  { %5550 = vmatpush1.bf16.msra.mxu1 %v5549_v18  ;;  %v4671_v18 = vld [vmem:[%s8943_s7 + $0x458] sm:$0xff] }
 0x31a   :  { %5552 = vmatprep.subr.bf16.mxu1 %v5551_v19  ;;  %v5585_v19 = vpack.c.bf16 %v4666_v12, %v4664_v11  ;;  %v5587_v22 = vpack.c.bf16 %v4671_v18, %v4669_v17  ;;  %v1720_v12 = vld [vmem:[%s8946_s10 + $0x90] sm:$0xff]  ;;  %v1721_v17 = vld [vmem:[%s8946_s10 + $0x98] sm:$0xff] }
 0x31b   :  { %v5657_v18 = vpack.c.bf16 %v1721_v17, %v1720_v12  ;;  %v4761_v12 = vld [vmem:[%s8937_s1 + $0xe8] sm:$0xff]  ;;  %v4763_v17 = vld [vmem:[%s8937_s1 + $0xf8] sm:$0xf] }
 0x31d   :  { %5554 = vmatpush1.bf16.msra.mxu1 %v5553_v24  ;;  %v4675_v24 = vld [vmem:[%s8943_s7 + $0x478] sm:$0xff] }
 0x31e   :  { %5556 = vmatprep.subr.bf16.mxu1 %v5555_v25  ;;  %v5589_v25 = vpack.c.bf16 %v4670_v23, %v4668_v30  ;;  %v5591_v26 = vpack.c.bf16 %v4675_v24, %v4673_v21  ;;  %v4725_v30 = vld [vmem:[%s8937_s1 + $0x40] sm:$0xff]  ;;  %v4727_v21 = vld [vmem:[%s8937_s1 + $0x50] sm:$0xff]  ;;  %v4730_v24 = vld [vmem:[%s8937_s1 + $0x68] sm:$0xff] }
 0x321   :  { %5558 = vmatpush1.bf16.msra.mxu1 %v5557_v31  ;;  %v4679_v31 = vld [vmem:[%s8943_s7 + $0x498] sm:$0xff] }
 0x322   :  { %5560 = vmatprep.subr.bf16.mxu1 %v5559_v32  ;;  %v5593_v32 = vpack.c.bf16 %v4674_v28, %v4672_v27  ;;  %v5595_v33 = vpack.c.bf16 %v4679_v31, %v4677_v29  ;;  %v4729_v28 = vld [vmem:[%s8937_s1 + $0x60] sm:$0xff]  ;;  %v4731_v29 = vld [vmem:[%s8937_s1 + $0x70] sm:$0xf] }
 0x323   :  { %v7483_v31 = vld [vmem:[%s8936_s0 + $0x20] sm:$0xff]  ;;  %v5726_v51 = vpack.c.bf16 %v4731_v29, %v4729_v28 }
 0x324   :  { %v2323_v34 = vrot.slane %v7483_v31, 1 }
 0x325   :  { %5562 = vmatpush1.bf16.msra.mxu1 %v5561_v36  ;;  %v4681_v36 = vld [vmem:[%s8943_s7 + $0x4a8] sm:$0xff] }
 0x326   :  { %5564 = vmatprep.subr.bf16.mxu1 %v5563_v37  ;;  %v4680_v37 = vld [vmem:[%s8943_s7 + $0x4a0] sm:$0xff] }
 0x329   :  { %5566 = vmatpush1.bf16.msra.mxu1 %v5565_v42  ;;  %v7378_v42 = vrot.slane %v52_v41, %v641_v5  ;;  %v1705_v5 = vld [vmem:[%s8946_s10 + $0x18] sm:$0xff] }
 0x32a   :  { %5568 = vmatprep.subr.bf16.mxu1 %v5567_v43  ;;  %v1702_v43 = vld [vmem:[%s8946_s10] sm:$0xff]  ;;  %v5633_v49 = vpack.c.bf16 %v1705_v5, %v1704_v13  ;;  %v2309_v13 = vld [vmem:[%s8937_s1 + $0x30] sm:$0xf]  ;;  %v4744_v5 = vld [vmem:[%s8937_s1 + $0x88] sm:$0xff] }
 0x32b   :  { %v5630_v48 = vpack.c.bf16 %v1703_v44, %v1702_v43  ;;  %v2310_v43 = vld [vmem:[%s8937_s1 + $0x38] sm:$0xf] }
 0x32d   :  { %5570 = vmatpush1.bf16.msra.mxu1 %v5569_v46 }
 0x32e   :  { %1441 = vmatprep.subr.mxu1 %v4650_v47 }
 0x331   :  { %1442 = vmatpush1.msra.mxu1 %v4649_v55  ;;  %v1709_v55 = vld [vmem:[%s8946_s10 + $0x38] sm:$0xff] }
 0x332   :  { %4651 = vmatmul.mubr.msk.f32.vlgmr.msra.gmra.mrb[10].mxu1 %vm1121_vm9, %v6969_v15  ;;  %5572 = vmatprep.subr.bf16.mxu1 %v5571_v56  ;;  %v4667_v15 = vld [vmem:[%s8943_s7 + $0x438] sm:$0xff]  ;;  %v5639_v56 = vpack.c.bf16 %v1709_v55, %v1708_v54 }
 0x333   :  { %5574 = vmatpush1.bf16.msra.mxu1 %v5573_v57  ;;  %1586 = vmatprep.mubr.f32.mxu1 %v6251_v7  ;;  %v5583_v9 = vpack.c.bf16 %v4667_v15, %v4665_v3  ;;  %v1710_v57 = vld [vmem:[%s8946_s10 + $0x40] sm:$0xff]  ;;  %v1717_v3 = vld [vmem:[%s8946_s10 + $0x78] sm:$0xff] }
 0x334   :  { %5576 = vmatprep.subr.bf16.mxu1 %v5575_v58  ;;  %v1711_v58 = vld [vmem:[%s8946_s10 + $0x48] sm:$0xff]  ;;  %v5651_v15 = vpack.c.bf16 %v1717_v3, %v1716_v2 }
 0x335   :  { %v5642_v59 = vpack.c.bf16 %v1711_v58, %v1710_v57  ;;  %v4745_v57 = vld [vmem:[%s8937_s1 + $0x90] sm:$0xff]  ;;  %v4748_v58 = vld [vmem:[%s8937_s1 + $0xa8] sm:$0xff] }
 0x337   :  { %5578 = vmatpush1.bf16.msra.mxu1 %v5577_v63  ;;  %v1714_v63 = vld [vmem:[%s8946_s10 + $0x60] sm:$0xff] }
 0x338   :  { %5580 = vmatprep.subr.bf16.mxu1 %v5579_v0  ;;  %v1715_v0 = vld [vmem:[%s8946_s10 + $0x68] sm:$0xff] }
 0x339   :  { %v5648_v1 = vpack.c.bf16 %v1715_v0, %v1714_v63  ;;  %v4749_v63 = vld [vmem:[%s8937_s1 + $0xb0] sm:$0xf]  ;;  %v4757_v0 = vld [vmem:[%s8937_s1 + $0xc8] sm:$0xff] }
 0x33b   :  { %5582 = vmatpush1.bf16.msra.mxu1 %v5581_v4  ;;  %v1718_v4 = vld [vmem:[%s8946_s10 + $0x80] sm:$0xff] }
 0x33c   :  { %5584 = vmatprep.subr.bf16.mxu1 %v5583_v9  ;;  %v1719_v9 = vld [vmem:[%s8946_s10 + $0x88] sm:$0xff] }
 0x33d   :  { %v5654_v11 = vpack.c.bf16 %v1719_v9, %v1718_v4  ;;  %v4756_v9 = vld [vmem:[%s8937_s1 + $0xc0] sm:$0xff] }
 0x33f   :  { %5586 = vmatpush1.bf16.msra.mxu1 %v5585_v19  ;;  %v4726_v19 = vld [vmem:[%s8937_s1 + $0x48] sm:$0xff] }
 0x340   :  { %5588 = vmatprep.subr.bf16.mxu1 %v5587_v22  ;;  %v4728_v22 = vld [vmem:[%s8937_s1 + $0x58] sm:$0xff] }
 0x341   :  { %v5719_v23 = vpack.c.bf16 %v4728_v22, %v4726_v19 }
 0x343   :  { %5590 = vmatpush1.bf16.msra.mxu1 %v5589_v25  ;;  %v4732_v25 = vld [vmem:[%s8937_s1 + $0x78] sm:$0xf] }
 0x344   :  { %5592 = vmatprep.subr.bf16.mxu1 %v5591_v26  ;;  %v5721_v26 = vpack.c.bf16 %v4727_v21, %v4725_v30  ;;  %v5723_v27 = vpack.c.bf16 %v4732_v25, %v4730_v24  ;;  %v5753_v30 = vpack.c.bf16 %v4763_v17, %v4761_v12  ;;  %v4762_v21 = vld [vmem:[%s8937_s1 + $0xf0] sm:$0xf]  ;;  %v4770_v24 = vld [vmem:[%s8937_s1 + $0x108] sm:$0xff]  ;;  %v4772_v25 = vld [vmem:[%s8937_s1 + $0x118] sm:$0xff] }
 0x345   :  { %v5759_v29 = vpack.c.bf16 %v4772_v25, %v4770_v24  ;;  %v1951_v12 = vld [vmem:[%s8949_s13 + $0x48] sm:$0xff]  ;;  %v2997_v24 = vld [vmem:[%s8940_s4 + $0x20] sm:$0xff] }
 0x346   :  { %v2998_v25 = vld [vmem:[%s8940_s4 + $0x28] sm:$0xff] }
 0x347   :  { %5594 = vmatpush1.bf16.msra.mxu1 %v5593_v32  ;;  %v7488_v32 = vld [vmem:[%s8936_s0 + $0x28] sm:$0xff] }
 0x348   :  { %5596 = vmatprep.subr.bf16.mxu1 %v5595_v33  ;;  %v2304_v33 = vld [vmem:[%s8937_s1 + $0x8] sm:$0xff]  ;;  %v2529_v4 = vrot.slane %v7488_v32, 2 }
 0x34b   :  { %5598 = vmatpush1.bf16.msra.mxu1 %v5597_v35  ;;  %v2324_v35 = vrot.slane %v7488_v32, 1 }
 0x34c   :  { %1550 = vmatprep.subr.mxu1 %v4681_v36  ;;  %v2306_v36 = vld [vmem:[%s8937_s1 + $0x18] sm:$0xff] }
 0x34d   :  { %v5729_v38 = vpack.c.bf16 %v2306_v36, %v2304_v33  ;;  %v2325_v44 = vsel %vm85_vm3, %v2323_v34, %v2324_v35  ;;  %v2645_v34 = vrot.slane %v7488_v32, 3  ;;  %v4771_v36 = vld [vmem:[%s8937_s1 + $0x110] sm:$0xff] }
 0x34f   :  { %1551 = vmatpush1.msra.mxu1 %v4680_v37  ;;  %v7503_v37 = vld [vmem:[%s8936_s0 + $0x30] sm:$0xff] }
 0x350   :  { %4682 = vmatmul.mubr.msk.f32.vlgmr.msra.gmra.mrb[10].mxu1 %vm1121_vm9, %v6972_v16  ;;  %v7374_v16 = vrot.slane %v52_v41, %v645_v14  ;;  %5720 = vmatprep.subr.bf16.mxu1 %v5719_v23  ;;  %v2308_v41 = vld [vmem:[%s8937_s1 + $0x28] sm:$0xff]  ;;  %v2531_v19 = vrot.slane %v7503_v37, 2  ;;  %v4760_v23 = vld [vmem:[%s8937_s1 + $0xe0] sm:$0xff] }
 0x351   :  { %2406 = vmatprep.mubr.f32.mxu1 %v6251_v7  ;;  %5722 = vmatpush1.bf16.msra.mxu1 %v5721_v26  ;;  %v5756_v28 = vpack.c.bf16 %v4762_v21, %v4760_v23  ;;  %v2996_v23 = vld [vmem:[%s8940_s4 + $0x18] sm:$0xff] }
 0x352   :  { %5725 = vmatprep.subr.msk.bf16.mxu1 %vm6358_vm2, %v5723_v27  ;;  %v2532_v26 = vsel %vm294_vm5, %v2529_v4, %v2531_v19 }
 0x355   :  { %5728 = vmatpush1.bf16.msk.msra.mxu1 %vm6358_vm2, %v5726_v51  ;;  %v2644_v51 = vrot.slane %v7483_v31, 3 }
 0x356   :  { %5730 = vmatprep.subr.bf16.mxu1 %v5729_v38  ;;  %v4774_v38 = vld [vmem:[%s8937_s1 + $0x128] sm:$0xff] }
 0x358   :  { %4735 = vmatmul.mubr.msk.f32.vlgmr.msra.gmra.mrb[12].mxu1 %vm93_vm4, %v2325_v44 }
 0x359   :  { %2412 = vmatprep.mubr.f32.mxu1 %v6251_v7 }
 0x423   :  { %v1588_v45 = vpop.f32.mrb[10].mxu1 }
 0x424   :  { %v1590_v46 = vpop.f32.mrb[11].mxu1  ;;  %v1606_v14 = vadd.f32 %v7378_v42, %v1588_v45  ;;  %v2326_v45 = vrot.slane %v7503_v37, 1 }
 0x425   :  { %v1607_v47 = vadd.f32 %v7374_v16, %v1590_v46  ;;  %v5731_v46 = vpack.c.bf16 %v2305_v40, %v2303_v39  ;;  %v4776_v39 = vld [vmem:[%s8937_s1 + $0x138] sm:$0xf]  ;;  %v2646_v40 = vsel %vm412_vm6, %v2644_v51, %v2645_v34  ;;  %v3002_v51 = vld [vmem:[%s8940_s4 + $0x48] sm:$0xff] }
 0x426   :  { %v2327_v50 = vsel %vm85_vm3, %v2324_v35, %v2326_v45  ;;  %v4769_v35 = vld [vmem:[%s8937_s1 + $0x100] sm:$0xff]  ;;  %v5763_v44 = vpack.c.bf16 %v4776_v39, %v4774_v38 }
 0x427   :  { %4683 = vmatprep.mubr.msk.f32.mxu0 %vm1628_vm10, %v1607_v47  ;;  %5732 = vmatpush1.bf16.msra.mxu1 %v5731_v46  ;;  %v4775_v46 = vld [vmem:[%s8937_s1 + $0x130] sm:$0xf]  ;;  %v3005_v39 = vld [vmem:[%s8940_s4 + $0x60] sm:$0xff] }
 0x428   :  { %1697 = vmatmul.mubr.f32.vlgmr.msra.gmra.mrb[12].mxu0 %v1606_v14  ;;  %4736 = vmatmul.mubr.msk.f32.gmra.mrb[14].mxu1 %vm93_vm4, %v2327_v50  ;;  %v2761_v50 = vrot.slane %v7488_v32, 4 }
 0x429   :  { %5631 = vmatpush1.bf16.msra.mxu0 %v5630_v48  ;;  %4684 = vmatprep.mubr.msk.f32.mxu0 %vm1628_vm10, %v1607_v47  ;;  %v7524_v47 = vld [vmem:[%s8936_s0 + $0x38] sm:$0xf]  ;;  %v5733_v48 = vpack.c.bf16 %v2310_v43, %v2308_v41  ;;  %v2647_v41 = vrot.slane %v7503_v37, 3  ;;  %v5761_v43 = vpack.c.bf16 %v4771_v36, %v4769_v35  ;;  %v3003_v35 = vld [vmem:[%s8940_s4 + $0x50] sm:$0xff] }
 0x42a   :  { %5632 = vmatprep.subr.bf16.mxu0 %v6253_v20  ;;  %v2328_v52 = vrot.slane %v7524_v47, 1  ;;  %2418 = vmatprep.mubr.f32.mxu1 %v6251_v7  ;;  %v2533_v27 = vrot.slane %v7524_v47, 2  ;;  %v3004_v36 = vld [vmem:[%s8940_s4 + $0x58] sm:$0xff] }
 0x42b   :  { %5735 = vmatprep.subr.msk.bf16.mxu1 %vm6358_vm2, %v5733_v48  ;;  %v2648_v48 = vsel %vm412_vm6, %v2645_v34, %v2647_v41  ;;  %v5830_v38 = vpack.c.bf16 %v3004_v36, %v3003_v35  ;;  %v4696_v35 = vld [vmem:[%s8949_s13 + $0x90] sm:$0xff]  ;;  %v4697_v36 = vld [vmem:[%s8949_s13 + $0x98] sm:$0xff] }
 0x42c   :  { %v2329_v55 = vsel %vm85_vm3, %v2326_v45, %v2328_v52  ;;  %v2534_v33 = vsel %vm294_vm5, %v2531_v19, %v2533_v27  ;;  %v4773_v45 = vld [vmem:[%s8937_s1 + $0x120] sm:$0xff]  ;;  %v2994_v19 = vld [vmem:[%s8940_s4 + $0x8] sm:$0xff]  ;;  %v2999_v27 = vld [vmem:[%s8940_s4 + $0x30] sm:$0xff] }
 0x42d   :  { %5634 = vmatpush1.bf16.msra.mxu0 %v5633_v49  ;;  %v4746_v49 = vld [vmem:[%s8937_s1 + $0x98] sm:$0xff]  ;;  %4737 = vmatmul.mubr.msk.f32.gmra.mrb[16].mxu1 %vm93_vm4, %v2329_v55 }
 0x42e   :  { %5635 = vmatprep.subr.bf16.mxu0 %v6253_v20  ;;  %v5739_v54 = vpack.c.bf16 %v4746_v49, %v4744_v5  ;;  %2501 = vmatprep.mubr.f32.mxu1 %v6251_v7  ;;  %v2760_v49 = vrot.slane %v7483_v31, 4 }
 0x430   :  { %v2762_v52 = vsel %vm100_vm0, %v2760_v49, %v2761_v50 }
 0x431   :  { %5637 = vmatpush1.bf16.msra.mxu0 %v5636_v53 }
 0x432   :  { %5638 = vmatprep.subr.bf16.mxu0 %v6253_v20 }
 0x435   :  { %5640 = vmatpush1.bf16.msra.mxu0 %v5639_v56  ;;  %v4743_v56 = vld [vmem:[%s8937_s1 + $0x80] sm:$0xff] }
 0x436   :  { %5641 = vmatprep.subr.bf16.mxu0 %v6253_v20  ;;  %v5741_v60 = vpack.c.bf16 %v4745_v57, %v4743_v56 }
 0x439   :  { %5643 = vmatpush1.bf16.msra.mxu0 %v5642_v59  ;;  %v4750_v59 = vld [vmem:[%s8937_s1 + $0xb8] sm:$0xf] }
 0x43a   :  { %5644 = vmatprep.subr.bf16.mxu0 %v6253_v20  ;;  %v5743_v61 = vpack.c.bf16 %v4750_v59, %v4748_v58  ;;  %v58_v58 = vld [vmem:[%s8947_s11] sm:$0xf]  ;;  %v1943_v59 = vld [vmem:[%s8949_s13 + $0x8] sm:$0xff] }
 0x43d   :  { %5646 = vmatpush1.bf16.msra.mxu0 %v5645_v62  ;;  %v4747_v62 = vld [vmem:[%s8937_s1 + $0xa0] sm:$0xff] }
 0x43e   :  { %5647 = vmatprep.subr.bf16.mxu0 %v6253_v20  ;;  %v5746_v2 = vpack.c.bf16 %v4749_v63, %v4747_v62  ;;  %v1944_v62 = vld [vmem:[%s8949_s13 + $0x10] sm:$0xff]  ;;  %v1945_v63 = vld [vmem:[%s8949_s13 + $0x18] sm:$0xff] }
 0x441   :  { %5649 = vmatpush1.bf16.msra.mxu0 %v5648_v1  ;;  %v4759_v1 = vld [vmem:[%s8937_s1 + $0xd8] sm:$0xff] }
 0x442   :  { %5650 = vmatprep.subr.bf16.mxu0 %v6253_v20  ;;  %v5749_v3 = vpack.c.bf16 %v4759_v1, %v4757_v0  ;;  %v5663_v0 = vpack.c.bf16 %v1945_v63, %v1944_v62  ;;  %v1946_v1 = vld [vmem:[%s8949_s13 + $0x20] sm:$0xff]  ;;  %v3022_v62 = vld [vmem:[%s8940_s4 + $0xe8] sm:$0xff] }
 0x445   :  { %5652 = vmatpush1.bf16.msra.mxu0 %v5651_v15  ;;  %v2528_v15 = vrot.slane %v7483_v31, 2 }
 0x446   :  { %5653 = vmatprep.subr.bf16.mxu0 %v6253_v20 }
 0x449   :  { %5655 = vmatpush1.bf16.msra.mxu0 %v5654_v11  ;;  %v4758_v11 = vld [vmem:[%s8937_s1 + $0xd0] sm:$0xff] }
 0x44a   :  { %5656 = vmatprep.subr.bf16.mxu0 %v6253_v20  ;;  %v5751_v22 = vpack.c.bf16 %v4758_v11, %v4756_v9  ;;  %v1950_v11 = vld [vmem:[%s8949_s13 + $0x40] sm:$0xff] }
 0x44b   :  { %v5672_v17 = vpack.c.bf16 %v1951_v12, %v1950_v11 }
 0x44d   :  { %5658 = vmatpush1.bf16.msra.mxu0 %v5657_v18  ;;  %v2530_v18 = vsel %vm294_vm5, %v2528_v15, %v2529_v4  ;;  %v1948_v15 = vld [vmem:[%s8949_s13 + $0x30] sm:$0xff]  ;;  %v1949_v4 = vld [vmem:[%s8949_s13 + $0x38] sm:$0xff] }
 0x44e   :  { %5089 = vmatprep.subr.mxu0 %v6251_v7  ;;  %v5669_v9 = vpack.c.bf16 %v1949_v4, %v1948_v15 }
 0x450   :  { %1787 = vmatmul.mubr.f32.vlgmr.msra.gmra.mrb[14].mxu0 %v1606_v14  ;;  %v2307_v14 = vld [vmem:[%s8937_s1 + $0x20] sm:$0xff] }
 0x451   :  { %5091 = vmatprep.mubr.msk.f32.mxu0 %vm6254_vm11, %v6251_v7  ;;  %v5736_v53 = vpack.c.bf16 %v2309_v13, %v2307_v14  ;;  %v2649_v14 = vrot.slane %v7524_v47, 3  ;;  %v5766_v13 = vpack.c.bf16 %v4775_v46, %v4773_v45  ;;  %v3009_v46 = vld [vmem:[%s8940_s4 + $0x80] sm:$0xff] }
 0x453   :  { %5738 = vmatpush1.bf16.msk.msra.mxu1 %vm6358_vm2, %v5736_v53  ;;  %v2650_v5 = vsel %vm412_vm6, %v2647_v41, %v2649_v14  ;;  %v2763_v53 = vrot.slane %v7503_v37, 4 }
 0x454   :  { %5740 = vmatprep.subr.bf16.mxu1 %v5739_v54 }
 0x455   :  { %v2764_v10 = vsel %vm100_vm0, %v2761_v50, %v2763_v53  ;;  %v3013_v50 = vld [vmem:[%s8940_s4 + $0xa0] sm:$0xff] }
 0x456   :  { %4740 = vmatmul.mubr.msk.f32.vlgmr.msra.gmra.mrb[12].mxu1 %vm93_vm4, %v7483_v31  ;;  %v2765_v31 = vrot.slane %v7524_v47, 4  ;;  %v1942_v47 = vld [vmem:[%s8949_s13] sm:$0xff] }
 0x457   :  { %2507 = vmatprep.mubr.f32.mxu1 %v6251_v7  ;;  %5742 = vmatpush1.bf16.msra.mxu1 %v5741_v60  ;;  %v59_v60 = vld [vmem:[%s8948_s12] sm:$0xf] }
 0x458   :  { %5745 = vmatprep.subr.msk.bf16.mxu1 %vm6358_vm2, %v5743_v61  ;;  %v5660_v61 = vpack.c.bf16 %v1943_v59, %v1942_v47 }
 0x45a   :  { %4741 = vmatmul.mubr.msk.f32.gmra.mrb[14].mxu1 %vm93_vm4, %v7488_v32  ;;  %v2766_v32 = vsel %vm100_vm0, %v2763_v53, %v2765_v31  ;;  %v3016_v31 = vld [vmem:[%s8940_s4 + $0xb8] sm:$0xff] }
 0x45b   :  { %2513 = vmatprep.mubr.f32.mxu1 %v6251_v7  ;;  %5748 = vmatpush1.bf16.msk.msra.mxu1 %vm6358_vm2, %v5746_v2  ;;  %v1947_v2 = vld [vmem:[%s8949_s13 + $0x28] sm:$0xff] }
 0x45c   :  { %5750 = vmatprep.subr.bf16.mxu1 %v5749_v3  ;;  %v5666_v3 = vpack.c.bf16 %v1947_v2, %v1946_v1 }
 0x45e   :  { %4742 = vmatmul.mubr.msk.f32.gmra.mrb[16].mxu1 %vm93_vm4, %v7503_v37 }
 0x45f   :  { %2611 = vmatprep.mubr.f32.mxu1 %v6251_v7 }
 0x462   :  { %4753 = vmatmul.mubr.msk.f32.vlgmr.msra.gmra.mrb[12].mxu1 %vm93_vm4, %v2530_v18  ;;  %v2993_v18 = vld [vmem:[%s8940_s4] sm:$0xff] }
 0x463   :  { %2617 = vmatprep.mubr.f32.mxu1 %v6251_v7  ;;  %5752 = vmatpush1.bf16.msra.mxu1 %v5751_v22  ;;  %v5815_v22 = vpack.c.bf16 %v2994_v19, %v2993_v18  ;;  %v4688_v19 = vld [vmem:[%s8949_s13 + $0x50] sm:$0xff] }
 0x464   :  { %5755 = vmatprep.subr.msk.bf16.mxu1 %vm6358_vm2, %v5753_v30  ;;  %v2995_v30 = vld [vmem:[%s8940_s4 + $0x10] sm:$0xff] }
 0x465   :  { %v5818_v21 = vpack.c.bf16 %v2996_v23, %v2995_v30 }
 0x466   :  { %4754 = vmatmul.mubr.msk.f32.gmra.mrb[14].mxu1 %vm93_vm4, %v2532_v26  ;;  %v5821_v26 = vpack.c.bf16 %v2998_v25, %v2997_v24  ;;  %v4690_v24 = vld [vmem:[%s8949_s13 + $0x60] sm:$0xff]  ;;  %v4691_v25 = vld [vmem:[%s8949_s13 + $0x68] sm:$0xff] }
 0x467   :  { %2623 = vmatprep.mubr.f32.mxu1 %v6251_v7  ;;  %5758 = vmatpush1.bf16.msk.msra.mxu1 %vm6358_vm2, %v5756_v28  ;;  %v3000_v28 = vld [vmem:[%s8940_s4 + $0x38] sm:$0xff] }
 0x468   :  { %5760 = vmatprep.subr.bf16.mxu1 %v5759_v29  ;;  %v5824_v29 = vpack.c.bf16 %v3000_v28, %v2999_v27  ;;  %v4692_v27 = vld [vmem:[%s8949_s13 + $0x70] sm:$0xff]  ;;  %v4693_v28 = vld [vmem:[%s8949_s13 + $0x78] sm:$0xff] }
 0x46a   :  { %4755 = vmatmul.mubr.msk.f32.gmra.mrb[16].mxu1 %vm93_vm4, %v2534_v33  ;;  %v3001_v33 = vld [vmem:[%s8940_s4 + $0x40] sm:$0xff] }
 0x46b   :  { %2727 = vmatprep.mubr.f32.mxu1 %v6251_v7  ;;  %v5827_v34 = vpack.c.bf16 %v3002_v51, %v3001_v33  ;;  %v4694_v33 = vld [vmem:[%s8949_s13 + $0x80] sm:$0xff]  ;;  %v4695_v51 = vld [vmem:[%s8949_s13 + $0x88] sm:$0xff] }
 0x46e   :  { %4766 = vmatmul.mubr.msk.f32.vlgmr.msra.gmra.mrb[12].mxu1 %vm93_vm4, %v2646_v40  ;;  %v3006_v40 = vld [vmem:[%s8940_s4 + $0x68] sm:$0xff] }
 0x46f   :  { %2733 = vmatprep.mubr.f32.mxu1 %v6251_v7  ;;  %5762 = vmatpush1.bf16.msra.mxu1 %v5761_v43  ;;  %v5833_v41 = vpack.c.bf16 %v3006_v40, %v3005_v39  ;;  %v3007_v43 = vld [vmem:[%s8940_s4 + $0x70] sm:$0xff]  ;;  %v4699_v39 = vld [vmem:[%s8949_s13 + $0xa0] sm:$0xff]  ;;  %v4700_v40 = vld [vmem:[%s8949_s13 + $0xa8] sm:$0xff] }
 0x470   :  { %5765 = vmatprep.subr.msk.bf16.mxu1 %vm6358_vm2, %v5763_v44  ;;  %v3008_v44 = vld [vmem:[%s8940_s4 + $0x78] sm:$0xff] }
 0x471   :  { %v5836_v45 = vpack.c.bf16 %v3008_v44, %v3007_v43  ;;  %v4701_v44 = vld [vmem:[%s8949_s13 + $0xb0] sm:$0xff] }
 0x472   :  { %4767 = vmatmul.mubr.msk.f32.gmra.mrb[14].mxu1 %vm93_vm4, %v2648_v48  ;;  %v3010_v48 = vld [vmem:[%s8940_s4 + $0x88] sm:$0xff] }
 0x473   :  { %2739 = vmatprep.mubr.f32.mxu1 %v6251_v7  ;;  %5768 = vmatpush1.bf16.msk.msra.mxu1 %vm6358_vm2, %v5766_v13  ;;  %v5839_v14 = vpack.c.bf16 %v3010_v48, %v3009_v46  ;;  %v3011_v13 = vld [vmem:[%s8940_s4 + $0x90] sm:$0xff]  ;;  %v4703_v48 = vld [vmem:[%s8949_s13 + $0xc0] sm:$0xff] }
 0x474   :  { %5814 = vmatprep.subr.bf16.mxu1 %v6253_v20 }
 0x476   :  { %4768 = vmatmul.mubr.msk.f32.gmra.mrb[16].mxu1 %vm93_vm4, %v2650_v5  ;;  %v3012_v5 = vld [vmem:[%s8940_s4 + $0x98] sm:$0xff] }
 0x477   :  { %2843 = vmatprep.mubr.f32.mxu1 %v6251_v7  ;;  %v5842_v49 = vpack.c.bf16 %v3012_v5, %v3011_v13  ;;  %v4705_v5 = vld [vmem:[%s8949_s13 + $0xd0] sm:$0xff] }
 0x47a   :  { %4779 = vmatmul.mubr.msk.f32.vlgmr.msra.gmra.mrb[12].mxu1 %vm93_vm4, %v2762_v52  ;;  %v3014_v52 = vld [vmem:[%s8940_s4 + $0xa8] sm:$0xff] }
 0x47b   :  { %2849 = vmatprep.mubr.f32.mxu1 %v6251_v7  ;;  %5816 = vmatpush1.bf16.msra.mxu1 %v5815_v22  ;;  %v5845_v53 = vpack.c.bf16 %v3014_v52, %v3013_v50  ;;  %v4707_v52 = vld [vmem:[%s8949_s13 + $0xe0] sm:$0xff] }
 0x47c   :  { %5817 = vmatprep.subr.bf16.mxu1 %v6253_v20 }
 0x47e   :  { %4780 = vmatmul.mubr.msk.f32.gmra.mrb[14].mxu1 %vm93_vm4, %v2764_v10  ;;  %v3015_v10 = vld [vmem:[%s8940_s4 + $0xb0] sm:$0xff] }
 0x47f   :  { %2855 = vmatprep.mubr.f32.mxu1 %v6251_v7  ;;  %5819 = vmatpush1.bf16.msra.mxu1 %v5818_v21 }
 0x480   :  { %5820 = vmatprep.subr.bf16.mxu1 %v6253_v20 }
 0x482   :  { %4781 = vmatmul.mubr.msk.f32.gmra.mrb[16].mxu1 %vm93_vm4, %v2766_v32  ;;  %v5848_v32 = vpack.c.bf16 %v3016_v31, %v3015_v10  ;;  %v4710_v31 = vld [vmem:[%s8949_s13 + $0xf0] sm:$0xff] }
 0x483   :  { %5822 = vmatpush1.bf16.msra.mxu1 %v5821_v26  ;;  %v5678_v26 = vpack.c.bf16 %v4691_v25, %v4690_v24  ;;  %v2880_v24 = vld [vmem:[%s8939_s3 + $0x30] sm:$0xff] }
 0x484   :  { %5823 = vmatprep.subr.bf16.mxu1 %v6253_v20 }
 0x487   :  { %5825 = vmatpush1.bf16.msra.mxu1 %v5824_v29  ;;  %v5681_v29 = vpack.c.bf16 %v4693_v28, %v4692_v27  ;;  %v2883_v27 = vld [vmem:[%s8939_s3 + $0x48] sm:$0xff] }
 0x488   :  { %5826 = vmatprep.subr.bf16.mxu1 %v6253_v20 }
 0x48b   :  { %5828 = vmatpush1.bf16.msra.mxu1 %v5827_v34  ;;  %v5684_v34 = vpack.c.bf16 %v4695_v51, %v4694_v33  ;;  %v2885_v33 = vld [vmem:[%s8939_s3 + $0x58] sm:$0xff] }
 0x48c   :  { %5829 = vmatprep.subr.bf16.mxu1 %v6253_v20 }
 0x48f   :  { %5831 = vmatpush1.bf16.msra.mxu1 %v5830_v38  ;;  %v5687_v38 = vpack.c.bf16 %v4697_v36, %v4696_v35  ;;  %v2887_v35 = vld [vmem:[%s8939_s3 + $0x68] sm:$0xff] }
 0x490   :  { %5832 = vmatprep.subr.bf16.mxu1 %v6253_v20 }
 0x493   :  { %5834 = vmatpush1.bf16.msra.mxu1 %v5833_v41  ;;  %v5690_v41 = vpack.c.bf16 %v4700_v40, %v4699_v39  ;;  %v2889_v39 = vld [vmem:[%s8939_s3 + $0x78] sm:$0xff] }
 0x494   :  { %5835 = vmatprep.subr.bf16.mxu1 %v6253_v20 }
 0x497   :  { %5837 = vmatpush1.bf16.msra.mxu1 %v5836_v45  ;;  %v4702_v45 = vld [vmem:[%s8949_s13 + $0xb8] sm:$0xff] }
 0x498   :  { %5838 = vmatprep.subr.bf16.mxu1 %v6253_v20  ;;  %v5693_v46 = vpack.c.bf16 %v4702_v45, %v4701_v44  ;;  %v2892_v45 = vld [vmem:[%s8939_s3 + $0x90] sm:$0xff] }
 0x49b   :  { %5840 = vmatpush1.bf16.msra.mxu1 %v5839_v14  ;;  %v4704_v14 = vld [vmem:[%s8949_s13 + $0xc8] sm:$0xff] }
 0x49c   :  { %5841 = vmatprep.subr.bf16.mxu1 %v6253_v20  ;;  %v5696_v13 = vpack.c.bf16 %v4704_v14, %v4703_v48  ;;  %v2894_v14 = vld [vmem:[%s8939_s3 + $0xa0] sm:$0xff] }
 0x49f   :  { %5843 = vmatpush1.bf16.msra.mxu1 %v5842_v49  ;;  %v4706_v49 = vld [vmem:[%s8949_s13 + $0xd8] sm:$0xff] }
 0x4a0   :  { %5844 = vmatprep.subr.bf16.mxu1 %v6253_v20  ;;  %v5699_v50 = vpack.c.bf16 %v4706_v49, %v4705_v5  ;;  %v2896_v49 = vld [vmem:[%s8939_s3 + $0xb0] sm:$0xff] }
 0x4a3   :  { %5846 = vmatpush1.bf16.msra.mxu1 %v5845_v53  ;;  %v4708_v53 = vld [vmem:[%s8949_s13 + $0xe8] sm:$0xff] }
 0x4a4   :  { %5847 = vmatprep.subr.bf16.mxu1 %v6253_v20  ;;  %v5702_v10 = vpack.c.bf16 %v4708_v53, %v4707_v52  ;;  %v2898_v53 = vld [vmem:[%s8939_s3 + $0xc0] sm:$0xff] }
 0x4a7   :  { %5849 = vmatpush1.bf16.msra.mxu1 %v5848_v32  ;;  %v4711_v32 = vld [vmem:[%s8949_s13 + $0xf8] sm:$0xff] }
 0x4a8   :  { %5850 = vmatprep.subr.bf16.mxu1 %v6253_v20 }
 0x4fb   :  { %v1698_v54 = vpop.f32.mrb[12].mxu0 }
 0x4fc   :  { %v1700_v55 = vpop.f32.mrb[13].mxu0 }
 0x4fd   :  { %v3018_v55 = vld [vmem:[%s8940_s4 + $0xc8] sm:$0xff] }
 0x523   :  { %v1788_v56 = vpop.f32.mrb[14].mxu0 }
 0x524   :  { %v1792_v37 = vmax.f32 %v1698_v54, %v1788_v56  ;;  %v1790_v57 = vpop.f32.mrb[15].mxu0  ;;  %v3017_v54 = vld [vmem:[%s8940_s4 + $0xc0] sm:$0xff] }
 0x525   :  { %v5851_v56 = vpack.c.bf16 %v3018_v55, %v3017_v54  ;;  %v3020_v57 = vld [vmem:[%s8940_s4 + $0xd8] sm:$0xff]  ;;  %v5705_v54 = vpack.c.bf16 %v4711_v32, %v4710_v31  ;;  %v2900_v32 = vld [vmem:[%s8939_s3 + $0xd0] sm:$0xff] }
 0x526   :  { %5090 = vmatpush3.msra.mxu0 %v1792_v37 }
 0x527   :  { %5092 = vmatmul.mubr.msk.f32.vlgmr.msra.gmra.mrb[16].mxu0 %vm1793_vm12, %v58_v58  ;;  %5094 = vmatprep.subr.mxu0 %v6251_v7 }
 0x528   :  { %5095 = vmatpush3.msra.mxu0 %v1792_v37  ;;  %5096 = vmatprep.mubr.msk.f32.mxu0 %vm6254_vm11, %v6251_v7  ;;  %v3019_v37 = vld [vmem:[%s8940_s4 + $0xd0] sm:$0xff] }
 0x529   :  { %5659 = vmatprep.subr.bf16.mxu0 %v6253_v20  ;;  %5852 = vmatpush1.bf16.msra.mxu1 %v5851_v56  ;;  %v5854_v58 = vpack.c.bf16 %v3020_v57, %v3019_v37  ;;  %v4712_v56 = vld [vmem:[%s8949_s13 + $0x100] sm:$0xff]  ;;  %v4713_v37 = vld [vmem:[%s8949_s13 + $0x108] sm:$0xff] }
 0x52a   :  { %5853 = vmatprep.subr.bf16.mxu1 %v6253_v20  ;;  %v5708_v57 = vpack.c.bf16 %v4713_v37, %v4712_v56  ;;  %v2902_v56 = vld [vmem:[%s8939_s3 + $0xe0] sm:$0xff]  ;;  %v2903_v37 = vld [vmem:[%s8939_s3 + $0xe8] sm:$0xff] }
 0x52b   :  { %5097 = vmatmul.mubr.msk.f32.vlgmr.msra.gmra.mrb[18].mxu0 %vm1793_vm12, %v59_v60 }
 0x52c   :  { %5661 = vmatpush3.bf16.msra.mxu0 %v5660_v61  ;;  %5119 = vmatprep.mubr.msk.f32.mxu0 %vm6254_vm11, %v6251_v7  ;;  %v3021_v61 = vld [vmem:[%s8940_s4 + $0xe0] sm:$0xff] }
 0x52d   :  { %5662 = vmatprep.subr.bf16.mxu0 %v6253_v20  ;;  %5855 = vmatpush1.bf16.msra.mxu1 %v5854_v58  ;;  %v5857_v63 = vpack.c.bf16 %v3022_v62, %v3021_v61  ;;  %v4714_v58 = vld [vmem:[%s8949_s13 + $0x110] sm:$0xff]  ;;  %v4716_v61 = vld [vmem:[%s8949_s13 + $0x120] sm:$0xff]  ;;  %v4717_v62 = vld [vmem:[%s8949_s13 + $0x128] sm:$0xff] }
 0x52e   :  { %5856 = vmatprep.subr.bf16.mxu1 %v6253_v20 }
 0x530   :  { %5664 = vmatpush3.bf16.msra.mxu0 %v5663_v0 }
 0x531   :  { %5665 = vmatprep.subr.bf16.mxu0 %v6253_v20  ;;  %5858 = vmatpush1.bf16.msra.mxu1 %v5857_v63  ;;  %v5714_v63 = vpack.c.bf16 %v4717_v62, %v4716_v61 }
 0x532   :  { %6007 = vmatprep.subr.bf16.mxu1 %v6253_v20 }
 0x534   :  { %5667 = vmatpush3.bf16.msra.mxu0 %v5666_v3 }
 0x535   :  { %5668 = vmatprep.subr.bf16.mxu0 %v6253_v20 }
 0x538   :  { %5670 = vmatpush3.bf16.msra.mxu0 %v5669_v9 }
 0x539   :  { %5671 = vmatprep.subr.bf16.mxu0 %v6253_v20 }
 0x53c   :  { %5673 = vmatpush3.bf16.msra.mxu0 %v5672_v17 }
 0x53d   :  { %5674 = vmatprep.subr.bf16.mxu0 %v6253_v20 }
 0x54d   :  { %v2845_v47 = vpop.f32.mrb[12].mxu1 }
 0x54e   :  { %v2847_v59 = vpop.f32.mrb[13].mxu1  ;;  %v7834_v0 = vadd.f32 %v2845_v47, %v6788_v8  ;;  %v4715_v47 = vld [vmem:[%s8949_s13 + $0x118] sm:$0xff] }
 0x54f   :  { %v7824_v60 = vadd.f32 %v2847_v59, %v6784_v6  ;;  %v5711_v59 = vpack.c.bf16 %v4715_v47, %v4714_v58  ;;  %v6220_v58 = vld [vmem:[%s8941_s5] sm:$0xff] }
 0x551   :  { %v2851_v1 = vpop.f32.mrb[14].mxu1  ;;  %4785 = vmatprep.mubr.msk.f32.mxu1 %vm685_vm7, %v7824_v60 }
 0x552   :  { %v2853_v2 = vpop.f32.mrb[15].mxu1  ;;  %v7843_v15 = vadd.f32 %v2851_v1, %v6788_v8  ;;  %3088 = vmatmul.mubr.f32.vlgmr.msra.gmra.mrb[18].mxu1 %v7834_v0  ;;  %v4718_v1 = vld [vmem:[%s8949_s13 + $0x130] sm:$0xff] }
 0x553   :  { %v7839_v3 = vadd.f32 %v2853_v2, %v6784_v6  ;;  %v4719_v2 = vld [vmem:[%s8949_s13 + $0x138] sm:$0xff] }
 0x555   :  { %v2857_v4 = vpop.f32.mrb[16].mxu1  ;;  %4786 = vmatprep.mubr.msk.f32.mxu1 %vm685_vm7, %v7839_v3 }
 0x556   :  { %v2859_v9 = vpop.f32.mrb[17].mxu1  ;;  %v7852_v12 = vadd.f32 %v2857_v4, %v6788_v8  ;;  %3093 = vmatmul.mubr.f32.gmra.mrb[20].mxu1 %v7843_v15  ;;  %v5717_v4 = vpack.c.bf16 %v4719_v2, %v4718_v1 }
 0x557   :  { %v7849_v11 = vadd.f32 %v2859_v9, %v6784_v6  ;;  %v4689_v6 = vld [vmem:[%s8949_s13 + $0x58] sm:$0xff]  ;;  %v2874_v9 = vld [vmem:[%s8939_s3] sm:$0xff] }
 0x558   :  { %v5675_v23 = vpack.c.bf16 %v4689_v6, %v4688_v19  ;;  %v2876_v6 = vld [vmem:[%s8939_s3 + $0x10] sm:$0xff] }
 0x559   :  { %4787 = vmatprep.mubr.msk.f32.mxu1 %vm685_vm7, %v7849_v11 }
 0x55a   :  { %3098 = vmatmul.mubr.f32.gmra.mrb[22].mxu1 %v7852_v12 }
 0x5fa   :  { %v1863_v17 = vpop.f32.mrb[16].mxu0 }
 0x5fb   :  { %v5093_v18 = vpop.f32.mrb[17].mxu0 }
 0x5fe   :  { %v1936_v22 = vpop.f32.mrb[18].mxu0 }
 0x5ff   :  { %v1940_v8 = vmax.f32 %v1863_v17, %v1936_v22  ;;  %v5098_v30 = vpop.f32.mrb[19].mxu0  ;;  %v2875_v17 = vld [vmem:[%s8939_s3 + $0x8] sm:$0xff]  ;;  %v2877_v22 = vld [vmem:[%s8939_s3 + $0x18] sm:$0xff] }
 0x600   :  { %v5770_v18 = vpack.c.bf16 %v2875_v17, %v2874_v9  ;;  %v2878_v30 = vld [vmem:[%s8939_s3 + $0x20] sm:$0xff] }
 0x601   :  { %v7864_v21 = vmax.f32 %v1940_v8, 0.0  ;;  %v5773_v8 = vpack.c.bf16 %v2877_v22, %v2876_v6 }
 0x603   :  { %5120 = vmatmul.mubr.msk.f32.vlgmr.msra.gmra.mrb[20].mxu0 %vm1952_vm13, %v7864_v21  ;;  %v2038_v43 = vrot.slane %v7864_v21, 1  ;;  %v2123_v55 = vrot.slane %v7864_v21, 2  ;;  %v2208_v19 = vrot.slane %v7864_v21, 3 }
 0x604   :  { %5676 = vmatpush3.bf16.msra.mxu0 %v5675_v23  ;;  %5142 = vmatprep.mubr.msk.f32.mxu0 %vm6254_vm11, %v6251_v7  ;;  %v2879_v23 = vld [vmem:[%s8939_s3 + $0x28] sm:$0xff] }
 0x605   :  { %5677 = vmatprep.subr.bf16.mxu0 %v6253_v20  ;;  %v5776_v21 = vpack.c.bf16 %v2879_v23, %v2878_v30 }
 0x608   :  { %5679 = vmatpush3.bf16.msra.mxu0 %v5678_v26  ;;  %v2882_v26 = vld [vmem:[%s8939_s3 + $0x40] sm:$0xff] }
 0x609   :  { %5680 = vmatprep.subr.bf16.mxu0 %v6253_v20  ;;  %v5782_v28 = vpack.c.bf16 %v2883_v27, %v2882_v26  ;;  %v4794_v26 = vld [vmem:[%s8943_s7 + $0x100] sm:$0xff] }
 0x60a   :  { %v6222_v27 = vld [vmem:[%s8942_s6] sm:$0xff] }
 0x60c   :  { %5682 = vmatpush3.bf16.msra.mxu0 %v5681_v29  ;;  %v2884_v29 = vld [vmem:[%s8939_s3 + $0x50] sm:$0xff] }
 0x60d   :  { %5683 = vmatprep.subr.bf16.mxu0 %v6253_v20  ;;  %v5785_v51 = vpack.c.bf16 %v2885_v33, %v2884_v29  ;;  %v4799_v29 = vld [vmem:[%s8943_s7 + $0x128] sm:$0xff] }
 0x610   :  { %5685 = vmatpush3.bf16.msra.mxu0 %v5684_v34  ;;  %v2886_v34 = vld [vmem:[%s8939_s3 + $0x60] sm:$0xff] }
 0x611   :  { %5686 = vmatprep.subr.bf16.mxu0 %v6253_v20  ;;  %v5788_v36 = vpack.c.bf16 %v2887_v35, %v2886_v34  ;;  %v4796_v35 = vld [vmem:[%s8943_s7 + $0x110] sm:$0xff] }
 0x614   :  { %5688 = vmatpush3.bf16.msra.mxu0 %v5687_v38  ;;  %v2888_v38 = vld [vmem:[%s8939_s3 + $0x70] sm:$0xff] }
 0x615   :  { %5689 = vmatprep.subr.bf16.mxu0 %v6253_v20  ;;  %v5791_v40 = vpack.c.bf16 %v2889_v39, %v2888_v38  ;;  %v4801_v38 = vld [vmem:[%s8943_s7 + $0x138] sm:$0xff]  ;;  %v4803_v39 = vld [vmem:[%s8943_s7 + $0x148] sm:$0xff] }
 0x617   :  { %5143 = vmatmul.mubr.msk.f32.vlgmr.msra.gmra.mrb[20].mxu0 %vm1952_vm13, %v2038_v43  ;;  %v2891_v43 = vld [vmem:[%s8939_s3 + $0x88] sm:$0xff] }
 0x618   :  { %5691 = vmatpush3.bf16.msra.mxu0 %v5690_v41  ;;  %5165 = vmatprep.mubr.msk.f32.mxu0 %vm6254_vm11, %v6251_v7  ;;  %v2890_v41 = vld [vmem:[%s8939_s3 + $0x80] sm:$0xff] }
 0x619   :  { %5692 = vmatprep.subr.bf16.mxu0 %v6253_v20  ;;  %v5794_v44 = vpack.c.bf16 %v2891_v43, %v2890_v41  ;;  %v5875_v43 = vpack.c.bf16 %v4803_v39, %v4801_v38  ;;  %v3267_v38 = vld [vmem:[%s8943_s7 + $0x38] sm:$0xff] }
 0x61c   :  { %5694 = vmatpush3.bf16.msra.mxu0 %v5693_v46  ;;  %v2893_v46 = vld [vmem:[%s8939_s3 + $0x98] sm:$0xff] }
 0x61d   :  { %5695 = vmatprep.subr.bf16.mxu0 %v6253_v20  ;;  %v5797_v48 = vpack.c.bf16 %v2893_v46, %v2892_v45  ;;  %v4802_v45 = vld [vmem:[%s8943_s7 + $0x140] sm:$0xff]  ;;  %v4805_v46 = vld [vmem:[%s8943_s7 + $0x158] sm:$0xff] }
 0x620   :  { %5697 = vmatpush3.bf16.msra.mxu0 %v5696_v13  ;;  %v2895_v13 = vld [vmem:[%s8939_s3 + $0xa8] sm:$0xff] }
 0x621   :  { %5698 = vmatprep.subr.bf16.mxu0 %v6253_v20  ;;  %v5800_v5 = vpack.c.bf16 %v2895_v13, %v2894_v14 }
 0x624   :  { %5700 = vmatpush3.bf16.msra.mxu0 %v5699_v50  ;;  %v2897_v50 = vld [vmem:[%s8939_s3 + $0xb8] sm:$0xff] }
 0x625   :  { %5701 = vmatprep.subr.bf16.mxu0 %v6253_v20  ;;  %v5803_v52 = vpack.c.bf16 %v2897_v50, %v2896_v49  ;;  %v3089_v47 = vpop.f32.mrb[18].mxu1  ;;  %v4806_v49 = vld [vmem:[%s8943_s7 + $0x160] sm:$0xff]  ;;  %v4809_v50 = vld [vmem:[%s8943_s7 + $0x178] sm:$0xff] }
 0x628   :  { %5703 = vmatpush3.bf16.msra.mxu0 %v5702_v10  ;;  %v2899_v10 = vld [vmem:[%s8939_s3 + $0xc8] sm:$0xff] }
 0x629   :  { %5704 = vmatprep.subr.bf16.mxu0 %v6253_v20  ;;  %v5806_v31 = vpack.c.bf16 %v2899_v10, %v2898_v53 }
 0x62b   :  { %5166 = vmatmul.mubr.msk.f32.vlgmr.msra.gmra.mrb[20].mxu0 %vm1952_vm13, %v2123_v55 }
 0x62c   :  { %5706 = vmatpush3.bf16.msra.mxu0 %v5705_v54  ;;  %5188 = vmatprep.mubr.msk.f32.mxu0 %vm6254_vm11, %v6251_v7  ;;  %v2901_v54 = vld [vmem:[%s8939_s3 + $0xd8] sm:$0xff] }
 0x62d   :  { %5707 = vmatprep.subr.bf16.mxu0 %v6253_v20  ;;  %v5809_v55 = vpack.c.bf16 %v2901_v54, %v2900_v32  ;;  %v4810_v32 = vld [vmem:[%s8943_s7 + $0x180] sm:$0xff] }
 0x630   :  { %5709 = vmatpush3.bf16.msra.mxu0 %v5708_v57  ;;  %v5812_v57 = vpack.c.bf16 %v2903_v37, %v2902_v56 }
 0x631   :  { %5710 = vmatprep.subr.bf16.mxu0 %v6253_v20 }
 0x634   :  { %5712 = vmatpush3.bf16.msra.mxu0 %v5711_v59  ;;  %v3091_v59 = vpop.f32.mrb[19].mxu1 }
 0x635   :  { %5713 = vmatprep.subr.bf16.mxu0 %v6253_v20  ;;  %v3094_v61 = vpop.f32.mrb[20].mxu1 }
 0x638   :  { %5715 = vmatpush3.bf16.msra.mxu0 %v5714_v63 }
 0x639   :  { %5716 = vmatprep.subr.bf16.mxu0 %v6253_v20 }
 0x63c   :  { %5718 = vmatpush3.bf16.msra.mxu0 %v5717_v4 }
 0x63d   :  { %5769 = vmatprep.subr.bf16.mxu0 %v6253_v20 }
 0x63f   :  { %5189 = vmatmul.mubr.msk.f32.vlgmr.msra.gmra.mrb[20].mxu0 %vm1952_vm13, %v2208_v19 }
 0x640   :  { %5771 = vmatpush1.bf16.msra.mxu0 %v5770_v18  ;;  %4782 = vmatprep.mubr.msk.f32.mxu0 %vm685_vm7, %v7824_v60  ;;  %v2881_v60 = vld [vmem:[%s8939_s3 + $0x38] sm:$0xff] }
 0x641   :  { %5772 = vmatprep.subr.bf16.mxu0 %v6253_v20  ;;  %v5779_v25 = vpack.c.bf16 %v2881_v60, %v2880_v24  ;;  %v4795_v24 = vld [vmem:[%s8943_s7 + $0x108] sm:$0xff] }
 0x642   :  { %v6221_v60 = vld [vmem:[%s8941_s5 + $0x8] sm:$0xf] }
 0x644   :  { %5774 = vmatpush1.bf16.msra.mxu0 %v5773_v8 }
 0x645   :  { %5775 = vmatprep.subr.bf16.mxu0 %v6253_v20 }
 0x648   :  { %5777 = vmatpush1.bf16.msra.mxu0 %v5776_v21  ;;  %v4793_v21 = vld [vmem:[%s8943_s7 + $0xf8] sm:$0xff] }
 0x649   :  { %5778 = vmatprep.subr.bf16.mxu0 %v6253_v20  ;;  %v5867_v33 = vpack.c.bf16 %v4795_v24, %v4793_v21  ;;  %v3262_v21 = vld [vmem:[%s8943_s7 + $0x10] sm:$0xff] }
 0x64c   :  { %5780 = vmatpush1.bf16.msra.mxu0 %v5779_v25  ;;  %v4792_v25 = vld [vmem:[%s8943_s7 + $0xf0] sm:$0xff] }
 0x64d   :  { %5781 = vmatprep.subr.bf16.mxu0 %v6253_v20 }
 0x650   :  { %5783 = vmatpush1.bf16.msra.mxu0 %v5782_v28  ;;  %v4797_v28 = vld [vmem:[%s8943_s7 + $0x118] sm:$0xff] }
 0x651   :  { %5784 = vmatprep.subr.bf16.mxu0 %v6253_v20  ;;  %v5871_v34 = vpack.c.bf16 %v4799_v29, %v4797_v28 }
 0x654   :  { %5786 = vmatpush1.bf16.msra.mxu0 %v5785_v51  ;;  %v5869_v51 = vpack.c.bf16 %v4794_v26, %v4792_v25  ;;  %v3797_v25 = vld [vmem:[%s8945_s9] sm:$0xff]  ;;  %v3798_v26 = vld [vmem:[%s8945_s9 + $0x8] sm:$0xff] }
 0x655   :  { %5787 = vmatprep.subr.bf16.mxu0 %v6253_v20  ;;  %v6008_v29 = vpack.c.bf16 %v3798_v26, %v3797_v25  ;;  %v3283_v25 = vld [vmem:[%s8943_s7 + $0xb8] sm:$0xff] }
 0x657   :  { %6009 = vmatpush1.bf16.msra.mxu1 %v6008_v29 }
 0x658   :  { %5789 = vmatpush1.bf16.msra.mxu0 %v5788_v36  ;;  %v4798_v36 = vld [vmem:[%s8943_s7 + $0x120] sm:$0xff]  ;;  %6010 = vmatprep.subr.bf16.mxu1 %v6253_v20 }
 0x659   :  { %5790 = vmatprep.subr.bf16.mxu0 %v6253_v20  ;;  %v5873_v41 = vpack.c.bf16 %v4798_v36, %v4796_v35 }
 0x65c   :  { %5792 = vmatpush1.bf16.msra.mxu0 %v5791_v40  ;;  %v6223_v40 = vld [vmem:[%s8942_s6 + $0x8] sm:$0xf] }
 0x65d   :  { %5793 = vmatprep.subr.bf16.mxu0 %v6253_v20 }
 0x660   :  { %5795 = vmatpush1.bf16.msra.mxu0 %v5794_v44  ;;  %v4800_v44 = vld [vmem:[%s8943_s7 + $0x130] sm:$0xff] }
 0x661   :  { %5796 = vmatprep.subr.bf16.mxu0 %v6253_v20  ;;  %v5877_v14 = vpack.c.bf16 %v4802_v45, %v4800_v44 }
 0x664   :  { %5798 = vmatpush1.bf16.msra.mxu0 %v5797_v48  ;;  %v4807_v48 = vld [vmem:[%s8943_s7 + $0x168] sm:$0xff] }
 0x665   :  { %5799 = vmatprep.subr.bf16.mxu0 %v6253_v20  ;;  %v5879_v13 = vpack.c.bf16 %v4807_v48, %v4805_v46 }
 0x668   :  { %5801 = vmatpush1.bf16.msra.mxu0 %v5800_v5  ;;  %v4804_v5 = vld [vmem:[%s8943_s7 + $0x150] sm:$0xff] }
 0x669   :  { %5802 = vmatprep.subr.bf16.mxu0 %v6253_v20  ;;  %v5881_v53 = vpack.c.bf16 %v4806_v49, %v4804_v5 }
 0x66c   :  { %5804 = vmatpush1.bf16.msra.mxu0 %v5803_v52  ;;  %v4811_v52 = vld [vmem:[%s8943_s7 + $0x188] sm:$0xff] }
 0x66d   :  { %5805 = vmatprep.subr.bf16.mxu0 %v6253_v20  ;;  %v5883_v10 = vpack.c.bf16 %v4811_v52, %v4809_v50  ;;  %v3264_v50 = vld [vmem:[%s8943_s7 + $0x20] sm:$0xff]  ;;  %v3266_v52 = vld [vmem:[%s8943_s7 + $0x30] sm:$0xff] }
 0x670   :  { %5807 = vmatpush1.bf16.msra.mxu0 %v5806_v31  ;;  %v4808_v31 = vld [vmem:[%s8943_s7 + $0x170] sm:$0xff] }
 0x671   :  { %5808 = vmatprep.subr.bf16.mxu0 %v6253_v20  ;;  %v5885_v54 = vpack.c.bf16 %v4810_v32, %v4808_v31  ;;  %v3269_v31 = vld [vmem:[%s8943_s7 + $0x48] sm:$0xff]  ;;  %v3271_v32 = vld [vmem:[%s8943_s7 + $0x58] sm:$0xff] }
 0x674   :  { %5810 = vmatpush1.bf16.msra.mxu0 %v5809_v55 }
 0x675   :  { %5811 = vmatprep.subr.bf16.mxu0 %v6253_v20 }
 0x678   :  { %5813 = vmatpush1.bf16.msra.mxu0 %v5812_v57  ;;  %v4813_v57 = vld [vmem:[%s8943_s7 + $0x198] sm:$0xff] }
 0x67b   :  { %2978 = vmatmul.mubr.f32.vlgmr.msra.gmra.mrb[22].mxu0 %v7834_v0  ;;  %v3096_v0 = vpop.f32.mrb[21].mxu1 }
 0x67c   :  { %4783 = vmatprep.mubr.msk.f32.mxu0 %vm685_vm7, %v7839_v3  ;;  %v3099_v62 = vpop.f32.mrb[22].mxu1  ;;  %v53_v3 = vld [vmem:[%s8950_s14] sm:$0x1] }
 0x67d   :  { %v3101_v63 = vpop.f32.mrb[23].mxu1 }
 0x67f   :  { %2983 = vmatmul.mubr.f32.gmra.mrb[24].mxu0 %v7843_v15 }
 0x680   :  { %4784 = vmatprep.mubr.msk.f32.mxu0 %vm685_vm7, %v7849_v11 }
 0x683   :  { %2988 = vmatmul.mubr.f32.gmra.mrb[26].mxu0 %v7852_v12 }
 0x684   :  { %5197 = vmatprep.mubr.msk.f32.mxu0 %vm888_vm8, %v6220_v58  ;;  %v4815_v58 = vld [vmem:[%s8943_s7 + $0x1a8] sm:$0xff] }
 0x685   :  { %v5887_v59 = vpack.c.bf16 %v4815_v58, %v4813_v57  ;;  %v3803_v57 = vld [vmem:[%s8945_s9 + $0x30] sm:$0xff]  ;;  %v3804_v58 = vld [vmem:[%s8945_s9 + $0x38] sm:$0xff] }
 0x712   :  { %v2277_v15 = vpop.f32.mrb[20].mxu0 }
 0x713   :  { %v6127_v11 = vadd.f32 %v2277_v15, %v53_v3  ;;  %v5190_v1 = vpop.f32.mrb[21].mxu0  ;;  %v4817_v3 = vld [vmem:[%s8943_s7 + $0x1b8] sm:$0xff]  ;;  %v4819_v15 = vld [vmem:[%s8943_s7 + $0x1c8] sm:$0xff] }
 0x714   :  { %v4816_v1 = vld [vmem:[%s8943_s7 + $0x1b0] sm:$0xff] }
 0x715   :  { %v8099_v12 = vmax.f32 %v6127_v11, 0.0  ;;  %v5891_v11 = vpack.c.bf16 %v4819_v15, %v4817_v3  ;;  %v6017_v3 = vpack.c.bf16 %v3804_v58, %v3803_v57  ;;  %v4826_v57 = vld [vmem:[%s8943_s7 + $0x1f0] sm:$0xff]  ;;  %v4829_v58 = vld [vmem:[%s8943_s7 + $0x208] sm:$0xff] }
 0x717   :  { %v2284_v2 = vsel %vm2283_vm14, %v8099_v12, -inf }
 0x718   :  { %2285 = vmax.xlane.f32.xlu0 %v2284_v2  ;;  %v4818_v2 = vld [vmem:[%s8943_s7 + $0x1c0] sm:$0xff] }
 0x74e   :  { %v2979_v4 = vpop.f32.mrb[22].mxu0 }
 0x74f   :  { %v3103_v9 = vmax.f32 %v2979_v4, %v3089_v47  ;;  %v2981_v17 = vpop.f32.mrb[23].mxu0  ;;  %v4812_v47 = vld [vmem:[%s8943_s7 + $0x190] sm:$0xff]  ;;  %v5893_v4 = vpack.c.bf16 %v4818_v2, %v4816_v1  ;;  %v3806_v1 = vld [vmem:[%s8945_s9 + $0x48] sm:$0xff] }
 0x750   :  { %v4820_v17 = vld [vmem:[%s8943_s7 + $0x1d0] sm:$0xff] }
 0x752   :  { %v2984_v18 = vpop.f32.mrb[24].mxu0 }
 0x753   :  { %v3104_v19 = vmax.f32 %v2984_v18, %v3094_v61  ;;  %v2986_v6 = vpop.f32.mrb[25].mxu0  ;;  %v4814_v61 = vld [vmem:[%s8943_s7 + $0x1a0] sm:$0xff]  ;;  %v3261_v18 = vld [vmem:[%s8943_s7 + $0x8] sm:$0xff] }
 0x754   :  { %v5889_v0 = vpack.c.bf16 %v4814_v61, %v4812_v47  ;;  %v5901_v47 = vpack.c.bf16 %v3266_v52, %v3264_v50  ;;  %v3268_v61 = vld [vmem:[%s8943_s7 + $0x40] sm:$0xff]  ;;  %v3814_v50 = vld [vmem:[%s8945_s9 + $0x88] sm:$0xff] }
 0x755   :  { %v5859_v22 = vpack.c.bf16 %v3104_v19, %v3103_v9  ;;  %v4821_v9 = vld [vmem:[%s8943_s7 + $0x1d8] sm:$0xff] }
 0x756   :  { %v2989_v8 = vpop.f32.mrb[26].mxu0  ;;  %v3263_v19 = vld [vmem:[%s8943_s7 + $0x18] sm:$0xff] }
 0x757   :  { %v3105_v30 = vmax.f32 %v2989_v8, %v3099_v62  ;;  %v2991_v23 = vpop.f32.mrb[27].mxu0  ;;  %5860 = vmatprep.subr.bf16.mxu0 %v5859_v22  ;;  %v5895_v6 = vpack.c.bf16 %v3263_v19, %v3261_v18  ;;  %v3277_v18 = vld [vmem:[%s8943_s7 + $0x88] sm:$0xff]  ;;  %v3279_v19 = vld [vmem:[%s8943_s7 + $0x98] sm:$0xff] }
 0x758   :  { %5862 = vmatpush3.bf16.msra.mxu0 %v5859_v22  ;;  %v3260_v23 = vld [vmem:[%s8943_s7] sm:$0xff] }
 0x759   :  { %5195 = vmatprep.subr.mxu0 %v3105_v30  ;;  %v5897_v36 = vpack.c.bf16 %v3262_v21, %v3260_v23  ;;  %v5911_v23 = vpack.c.bf16 %v3279_v19, %v3277_v18  ;;  %v3276_v21 = vld [vmem:[%s8943_s7 + $0x80] sm:$0xff] }
 0x75c   :  { %5196 = vmatpush3.msra.mxu0 %v3105_v30 }
 0x75d   :  { %5864 = vmatprep.subr.bf16.mxu0 %v5859_v22  ;;  %5198 = vmatmul.mubr.msk.f32.vlgmr.msra.gmra.mrb[28].mxu0 %vm888_vm8, %v6221_v60 }
 0x75e   :  { %5866 = vmatpush3.bf16.msra.mxu0 %v5859_v22  ;;  %5206 = vmatprep.mubr.msk.f32.mxu0 %vm888_vm8, %v6222_v27  ;;  %v3799_v27 = vld [vmem:[%s8945_s9 + $0x10] sm:$0xff] }
 0x75f   :  { %5204 = vmatprep.subr.mxu0 %v3105_v30 }
 0x762   :  { %5205 = vmatpush3.msra.mxu0 %v3105_v30 }
 0x763   :  { %5207 = vmatmul.mubr.msk.f32.vlgmr.msra.gmra.mrb[30].mxu0 %vm888_vm8, %v6223_v40  ;;  %5868 = vmatprep.subr.bf16.mxu0 %v5867_v33  ;;  %v3800_v33 = vld [vmem:[%s8945_s9 + $0x18] sm:$0xff]  ;;  %v3801_v40 = vld [vmem:[%s8945_s9 + $0x20] sm:$0xff] }
 0x764   :  { %5870 = vmatpush1.bf16.msra.mxu0 %v5869_v51  ;;  %3391 = vmatprep.mubr.f32.mxu0 %v6251_v7  ;;  %v6011_v39 = vpack.c.bf16 %v3800_v33, %v3799_v27  ;;  %v3809_v27 = vld [vmem:[%s8945_s9 + $0x60] sm:$0xff] }
 0x765   :  { %5872 = vmatprep.subr.bf16.mxu0 %v5871_v34  ;;  %v3265_v34 = vld [vmem:[%s8943_s7 + $0x28] sm:$0xff] }
 0x766   :  { %v5899_v49 = vpack.c.bf16 %v3267_v38, %v3265_v34  ;;  %6012 = vmatpush1.bf16.msra.mxu1 %v6011_v39  ;;  %v3282_v34 = vld [vmem:[%s8943_s7 + $0xb0] sm:$0xff]  ;;  %v3285_v38 = vld [vmem:[%s8943_s7 + $0xc8] sm:$0xff]  ;;  %v3287_v39 = vld [vmem:[%s8943_s7 + $0xd8] sm:$0xff] }
 0x767   :  { %6013 = vmatprep.subr.bf16.mxu1 %v6253_v20 }
 0x768   :  { %5874 = vmatpush1.bf16.msra.mxu0 %v5873_v41  ;;  %v3802_v41 = vld [vmem:[%s8945_s9 + $0x28] sm:$0xff] }
 0x769   :  { %5876 = vmatprep.subr.bf16.mxu0 %v5875_v43 }
 0x76c   :  { %5878 = vmatpush1.bf16.msra.mxu0 %v5877_v14 }
 0x76d   :  { %5880 = vmatprep.subr.bf16.mxu0 %v5879_v13 }
 0x770   :  { %5882 = vmatpush1.bf16.msra.mxu0 %v5881_v53  ;;  %v6014_v53 = vpack.c.bf16 %v3802_v41, %v3801_v40 }
 0x771   :  { %5884 = vmatprep.subr.bf16.mxu0 %v5883_v10 }
 0x772   :  { %6015 = vmatpush1.bf16.msra.mxu1 %v6014_v53  ;;  %v3289_v53 = vld [vmem:[%s8943_s7 + $0xe8] sm:$0xff] }
 0x773   :  { %6016 = vmatprep.subr.bf16.mxu1 %v6253_v20 }
 0x774   :  { %5886 = vmatpush1.bf16.msra.mxu0 %v5885_v54 }
 0x775   :  { %5888 = vmatprep.subr.bf16.mxu0 %v5887_v59  ;;  %v5903_v59 = vpack.c.bf16 %v3271_v32, %v3269_v31  ;;  %v4824_v32 = vld [vmem:[%s8943_s7 + $0x1e0] sm:$0xff] }
 0x776   :  { %6018 = vmatpush1.bf16.msra.mxu1 %v6017_v3  ;;  %v4830_v3 = vld [vmem:[%s8943_s7 + $0x210] sm:$0xff] }
 0x777   :  { %6019 = vmatprep.subr.bf16.mxu1 %v6253_v20 }
 0x778   :  { %5890 = vmatpush1.bf16.msra.mxu0 %v5889_v0  ;;  %v3270_v0 = vld [vmem:[%s8943_s7 + $0x50] sm:$0xff] }
 0x779   :  { %5892 = vmatprep.subr.bf16.mxu0 %v5891_v11  ;;  %v3805_v11 = vld [vmem:[%s8945_s9 + $0x40] sm:$0xff]  ;;  %v5905_v2 = vpack.c.bf16 %v3270_v0, %v3268_v61  ;;  %v5925_v0 = vpack.c.bf16 %v4826_v57, %v4824_v32  ;;  %v4863_v57 = vld [vmem:[%s8943_s7 + $0x310] sm:$0xff] }
 0x77c   :  { %5894 = vmatpush1.bf16.msra.mxu0 %v5893_v4 }
 0x77d   :  { %3355 = vmatprep.subr.mxu0 %v4821_v9  ;;  %v3272_v9 = vld [vmem:[%s8943_s7 + $0x60] sm:$0xff] }
 0x780   :  { %3356 = vmatpush1.msra.mxu0 %v4820_v17  ;;  %v3274_v17 = vld [vmem:[%s8943_s7 + $0x70] sm:$0xff] }
 0x781   :  { %5896 = vmatprep.subr.bf16.mxu0 %v5895_v6  ;;  %v6020_v6 = vpack.c.bf16 %v3806_v1, %v3805_v11  ;;  %v4835_v11 = vld [vmem:[%s8943_s7 + $0x238] sm:$0xff] }
 0x783   :  { %6021 = vmatpush1.bf16.msra.mxu1 %v6020_v6  ;;  %v4836_v6 = vld [vmem:[%s8943_s7 + $0x240] sm:$0xff] }
 0x784   :  { %6022 = vmatprep.subr.bf16.mxu1 %v6253_v20 }
 0x7a5   :  { %v8176_v55 = vpop.xlane.xlu0 %2285 }
 0x7a6   :  { %v2287_v56 = vsub.f32 %v8099_v12, %v8176_v55 }
 0x7a8   :  { %v2288_v37 = vmul.f32 1.442695, %v2287_v56 }
 0x7aa   :  { %6212 = vpow2.f32 %v2288_v37 }
 0x7b4   :  { %v6213_v62 = vpop.eup %6212 }
 0x7b5   :  { %v2290_v63 = vsel %vm2283_vm14, %v6213_v62, 0.0  ;;  %v3273_v62 = vld [vmem:[%s8943_s7 + $0x68] sm:$0xff] }
 0x7b6   :  { %2291 = vadd.xlane.f32.xlu1 %v2290_v63  ;;  %v3275_v63 = vld [vmem:[%s8943_s7 + $0x78] sm:$0xff] }
 0x7b7   :  { %v5907_v4 = vpack.c.bf16 %v3275_v63, %v3273_v62  ;;  %v4828_v63 = vld [vmem:[%s8943_s7 + $0x200] sm:$0xff] }
 0x7b8   :  { %v5929_v1 = vpack.c.bf16 %v4830_v3, %v4828_v63  ;;  %v4872_v63 = vld [vmem:[%s8943_s7 + $0x358] sm:$0xff]  ;;  %v4874_v3 = vld [vmem:[%s8943_s7 + $0x368] sm:$0xff] }
 0x830   :  { %v5199_v22 = vpop.f32.mrb[28].mxu0 }
 0x831   :  { %v3172_v8 = vpop.f32.mrb[29].mxu0 }
 0x836   :  { %v5208_v30 = vpop.f32.mrb[30].mxu0 }
 0x837   :  { %v3257_v24 = vmax.f32 %v5199_v22, %v5208_v30  ;;  %v3247_v60 = vpop.f32.mrb[31].mxu0  ;;  %v3807_v22 = vld [vmem:[%s8945_s9 + $0x50] sm:$0xff]  ;;  %v5909_v30 = vpack.c.bf16 %v3274_v17, %v3272_v9  ;;  %v4837_v17 = vld [vmem:[%s8943_s7 + $0x248] sm:$0xff] }
 0x838   :  { %v3256_v28 = vmax.f32 %v3172_v8, %v3247_v60  ;;  %v3808_v8 = vld [vmem:[%s8945_s9 + $0x58] sm:$0xff]  ;;  %v3281_v60 = vld [vmem:[%s8943_s7 + $0xa8] sm:$0xff]  ;;  %v4834_v9 = vld [vmem:[%s8943_s7 + $0x230] sm:$0xff] }
 0x839   :  { %v3259_v51 = vmax.f32 %v3257_v24, 0.0  ;;  %v3278_v24 = vld [vmem:[%s8943_s7 + $0x90] sm:$0xff]  ;;  %v6023_v26 = vpack.c.bf16 %v3808_v8, %v3807_v22  ;;  %v5915_v33 = vpack.c.bf16 %v3283_v25, %v3281_v60  ;;  %v4841_v8 = vld [vmem:[%s8943_s7 + $0x268] sm:$0xff] }
 0x83a   :  { %v8238_v35 = vmax.f32 %v3256_v28, 0.0  ;;  %v3810_v28 = vld [vmem:[%s8945_s9 + $0x68] sm:$0xff]  ;;  %v5913_v29 = vpack.c.bf16 %v3278_v24, %v3276_v21  ;;  %v4838_v22 = vld [vmem:[%s8943_s7 + $0x250] sm:$0xff]  ;;  %v4840_v24 = vld [vmem:[%s8943_s7 + $0x260] sm:$0xff] }
 0x83b   :  { %v3323_v43 = vrot.slane %v3259_v51, 1  ;;  %v3502_v44 = vrot.slane %v3259_v51, 2  ;;  %v3610_v45 = vrot.slane %v3259_v51, 3  ;;  %v3718_v46 = vrot.slane %v3259_v51, 4  ;;  %v3280_v51 = vld [vmem:[%s8943_s7 + $0xa0] sm:$0xff]  ;;  %6024 = vmatpush1.bf16.msra.mxu1 %v6023_v26  ;;  %v4842_v60 = vld [vmem:[%s8943_s7 + $0x270] sm:$0xff] }
 0x83c   :  { %v3322_v48 = vrot.slane %v8238_v35, 1  ;;  %v3501_v14 = vrot.slane %v8238_v35, 2  ;;  %v3609_v13 = vrot.slane %v8238_v35, 3  ;;  %v3717_v5 = vrot.slane %v8238_v35, 4  ;;  %6025 = vmatprep.subr.bf16.mxu1 %v6253_v20  ;;  %v4845_v25 = vld [vmem:[%s8943_s7 + $0x288] sm:$0xff]  ;;  %v4847_v26 = vld [vmem:[%s8943_s7 + $0x298] sm:$0xff] }
 0x83d   :  { %v6026_v40 = vpack.c.bf16 %v3810_v28, %v3809_v27  ;;  %v5941_v27 = vpack.c.bf16 %v4842_v60, %v4840_v24  ;;  %v5943_v28 = vpack.c.bf16 %v4847_v26, %v4845_v25  ;;  %v4884_v60 = vld [vmem:[%s8943_s7 + $0x3b8] sm:$0xff]  ;;  %v4887_v25 = vld [vmem:[%s8943_s7 + $0x3c8] sm:$0xff] }
 0x83e   :  { %v3324_v10 = vsel %vm85_vm3, %v3322_v48, %v3323_v43  ;;  %v8268_v54 = vsel %vm294_vm5, %v3501_v14, %v3502_v44  ;;  %v8271_v56 = vsel %vm412_vm6, %v3609_v13, %v3610_v45  ;;  %v8274_v37 = vsel %vm100_vm0, %v3717_v5, %v3718_v46  ;;  %v3811_v43 = vld [vmem:[%s8945_s9 + $0x70] sm:$0xff]  ;;  %v3812_v44 = vld [vmem:[%s8945_s9 + $0x78] sm:$0xff]  ;;  %v3284_v14 = vld [vmem:[%s8943_s7 + $0xc0] sm:$0xff] }
 0x83f   :  { %4822 = vmatmul.mubr.msk.f32.vlgmr.msra.gmra.mrb[32].mxu0 %vm1121_vm9, %v3324_v10  ;;  %v5917_v45 = vpack.c.bf16 %v3282_v34, %v3280_v51  ;;  %v5919_v48 = vpack.c.bf16 %v3287_v39, %v3285_v38  ;;  %v3286_v13 = vld [vmem:[%s8943_s7 + $0xd0] sm:$0xff]  ;;  %6027 = vmatpush1.bf16.msra.mxu1 %v6026_v40  ;;  %v6029_v5 = vpack.c.bf16 %v3812_v44, %v3811_v43  ;;  %v4827_v10 = vld [vmem:[%s8943_s7 + $0x1f8] sm:$0xff]  ;;  %v4849_v51 = vld [vmem:[%s8943_s7 + $0x2a8] sm:$0xff] }
 0x840   :  { %5898 = vmatpush1.bf16.msra.mxu0 %v5897_v36  ;;  %3464 = vmatprep.mubr.f32.mxu0 %v6251_v7  ;;  %v5921_v52 = vpack.c.bf16 %v3286_v13, %v3284_v14  ;;  %v4851_v34 = vld [vmem:[%s8943_s7 + $0x2b8] sm:$0xff]  ;;  %v4848_v39 = vld [vmem:[%s8943_s7 + $0x2a0] sm:$0xff]  ;;  %v4850_v40 = vld [vmem:[%s8943_s7 + $0x2b0] sm:$0xff] }
 0x841   :  { %5900 = vmatprep.subr.bf16.mxu0 %v5899_v49  ;;  %6028 = vmatprep.subr.bf16.mxu1 %v6253_v20  ;;  %v5947_v38 = vpack.c.bf16 %v4851_v34, %v4849_v51  ;;  %v4853_v43 = vld [vmem:[%s8943_s7 + $0x2c8] sm:$0xff]  ;;  %v4856_v44 = vld [vmem:[%s8943_s7 + $0x2d8] sm:$0xff]  ;;  %v4883_v51 = vld [vmem:[%s8943_s7 + $0x3b0] sm:$0xff] }
 0x842   :  { %v4860_v14 = vld [vmem:[%s8943_s7 + $0x2f8] sm:$0xff]  ;;  %v4862_v13 = vld [vmem:[%s8943_s7 + $0x308] sm:$0xff] }
 0x843   :  { %v2292_v15 = vpop.xlane.xlu1 %2291  ;;  %6030 = vmatpush1.bf16.msra.mxu1 %v6029_v5  ;;  %v4852_v5 = vld [vmem:[%s8943_s7 + $0x2c0] sm:$0xff]  ;;  %v4889_v26 = vld [vmem:[%s8943_s7 + $0x3d8] sm:$0xff] }
 0x844   :  { %6214 = vlog2.f32 %v2292_v15  ;;  %5902 = vmatpush1.bf16.msra.mxu0 %v5901_v47  ;;  %6031 = vmatprep.subr.bf16.mxu1 %v6253_v20  ;;  %v4831_v47 = vld [vmem:[%s8943_s7 + $0x218] sm:$0xff]  ;;  %v4833_v15 = vld [vmem:[%s8943_s7 + $0x228] sm:$0xff]  ;;  %v5979_v34 = vpack.c.bf16 %v4889_v26, %v4887_v25 }
 0x845   :  { %5904 = vmatprep.subr.bf16.mxu0 %v5903_v59  ;;  %v3288_v59 = vld [vmem:[%s8943_s7 + $0xe0] sm:$0xff]  ;;  %v5927_v62 = vpack.c.bf16 %v4831_v47, %v4829_v58  ;;  %v4868_v47 = vld [vmem:[%s8943_s7 + $0x338] sm:$0xff] }
 0x846   :  { %v4865_v58 = vld [vmem:[%s8943_s7 + $0x320] sm:$0xff]  ;;  %v3897_v25 = vld [vmem:[%s8946_s10 + $0x38] sm:$0xff] }
 0x848   :  { %5906 = vmatpush1.bf16.msra.mxu0 %v5905_v2  ;;  %v5931_v2 = vpack.c.bf16 %v4835_v11, %v4833_v15  ;;  %v5967_v11 = vpack.c.bf16 %v4874_v3, %v4872_v63  ;;  %v4910_v3 = vld [vmem:[%s8943_s7 + $0x480] sm:$0xff] }
 0x849   :  { %5908 = vmatprep.subr.bf16.mxu0 %v5907_v4  ;;  %v4832_v4 = vld [vmem:[%s8943_s7 + $0x220] sm:$0xff] }
 0x84a   :  { %v5933_v18 = vpack.c.bf16 %v4834_v9, %v4832_v4  ;;  %v4876_v4 = vld [vmem:[%s8943_s7 + $0x378] sm:$0xff]  ;;  %v4878_v9 = vld [vmem:[%s8943_s7 + $0x388] sm:$0xff] }
 0x84c   :  { %5910 = vmatpush1.bf16.msra.mxu0 %v5909_v30  ;;  %v4843_v30 = vld [vmem:[%s8943_s7 + $0x278] sm:$0xff] }
 0x84d   :  { %5912 = vmatprep.subr.bf16.mxu0 %v5911_v23  ;;  %v5937_v23 = vpack.c.bf16 %v4838_v22, %v4836_v6  ;;  %v5939_v21 = vpack.c.bf16 %v4843_v30, %v4841_v8  ;;  %v4880_v6 = vld [vmem:[%s8943_s7 + $0x398] sm:$0xff]  ;;  %v4882_v22 = vld [vmem:[%s8943_s7 + $0x3a8] sm:$0xff] }
 0x84e   :  { %v6215_v36 = vpop.eup %6214  ;;  %v5975_v30 = vpack.c.bf16 %v4882_v22, %v4880_v6 }
 0x84f   :  { %v2294_v41 = vmul.f32 0.6931472, %v6215_v36 }
 0x850   :  { %5914 = vmatpush1.bf16.msra.mxu0 %v5913_v29  ;;  %v4844_v29 = vld [vmem:[%s8943_s7 + $0x280] sm:$0xff] }
 0x851   :  { %v2295_v46 = vadd.f32 %v2294_v41, %v8176_v55  ;;  %5916 = vmatprep.subr.bf16.mxu0 %v5915_v33  ;;  %v3813_v55 = vld [vmem:[%s8945_s9 + $0x80] sm:$0xff]  ;;  %v4846_v33 = vld [vmem:[%s8943_s7 + $0x290] sm:$0xff]  ;;  %v5949_v41 = vpack.c.bf16 %v4850_v40, %v4848_v39 }
 0x852   :  { %v6032_v31 = vpack.c.bf16 %v3814_v50, %v3813_v55  ;;  %v5945_v36 = vpack.c.bf16 %v4846_v33, %v4844_v29  ;;  %v5955_v50 = vpack.c.bf16 %v4862_v13, %v4860_v14  ;;  %v4891_v29 = vld [vmem:[%s8943_s7 + $0x3e8] sm:$0xff]  ;;  %v4893_v33 = vld [vmem:[%s8943_s7 + $0x3f8] sm:$0xff]  ;;  %v4890_v39 = vld [vmem:[%s8943_s7 + $0x3e0] sm:$0xff] }
 0x853   :  { %v2296_v49 = vsub.f32 %v8099_v12, %v2295_v46  ;;  %v4825_v12 = vld [vmem:[%s8943_s7 + $0x1e8] sm:$0xff]  ;;  %v4855_v46 = vld [vmem:[%s8943_s7 + $0x2d0] sm:$0xff] }
 0x854   :  { %5918 = vmatpush1.bf16.msra.mxu0 %v5917_v45  ;;  %v5923_v61 = vpack.c.bf16 %v4827_v10, %v4825_v12  ;;  %6033 = vmatpush1.bf16.msra.mxu1 %v6032_v31  ;;  %v4858_v45 = vld [vmem:[%s8943_s7 + $0x2e8] sm:$0xff]  ;;  %v4864_v12 = vld [vmem:[%s8943_s7 + $0x318] sm:$0xff]  ;;  %v4892_v40 = vld [vmem:[%s8943_s7 + $0x3f0] sm:$0xff] }
 0x855   :  { %2297 = vst.msk [vmem:[#allocation2] sm:$0x1] %vm2283_vm14, %v2296_v49  ;;  %5920 = vmatprep.subr.bf16.mxu0 %v5919_v48  ;;  %6034 = vmatprep.subr.bf16.mxu1 %v6253_v20  ;;  %v4857_v48 = vld [vmem:[%s8943_s7 + $0x2e0] sm:$0xff]  ;;  %v5951_v49 = vpack.c.bf16 %v4858_v45, %v4856_v44  ;;  %v4866_v10 = vld [vmem:[%s8943_s7 + $0x328] sm:$0xff]  ;;  %v5985_v44 = vpack.c.bf16 %v4892_v40, %v4890_v39  ;;  %v3904_v40 = vld [vmem:[%s8946_s10 + $0x70] sm:$0xff] }
 0x856   :  { %v5953_v55 = vpack.c.bf16 %v4857_v48, %v4855_v46  ;;  %v5959_v32 = vpack.c.bf16 %v4866_v10, %v4864_v12  ;;  %v4894_v46 = vld [vmem:[%s8943_s7 + $0x400] sm:$0xff]  ;;  %v4896_v48 = vld [vmem:[%s8943_s7 + $0x410] sm:$0xff]  ;;  %v4899_v14 = vld [vmem:[%s8943_s7 + $0x428] sm:$0xff] }
 0x857   :  { %v5989_v13 = vpack.c.bf16 %v4896_v48, %v4894_v46  ;;  %v4902_v10 = vld [vmem:[%s8943_s7 + $0x440] sm:$0xff]  ;;  %v3908_v48 = vld [vmem:[%s8946_s10 + $0x90] sm:$0xff] }
 0x858   :  { %5922 = vmatpush1.bf16.msra.mxu0 %v5921_v52  ;;  %v4859_v52 = vld [vmem:[%s8943_s7 + $0x2f0] sm:$0xff] }
 0x859   :  { %3428 = vmatprep.subr.mxu0 %v3289_v53  ;;  %v4861_v53 = vld [vmem:[%s8943_s7 + $0x300] sm:$0xff] }
 0x85a   :  { %v5957_v31 = vpack.c.bf16 %v4861_v53, %v4859_v52  ;;  %v4905_v52 = vld [vmem:[%s8943_s7 + $0x458] sm:$0xff] }
 0x85c   :  { %3429 = vmatpush1.msra.mxu0 %v3288_v59  ;;  %v5961_v59 = vpack.c.bf16 %v4865_v58, %v4863_v57  ;;  %v4909_v57 = vld [vmem:[%s8943_s7 + $0x478] sm:$0xff] }
 0x85d   :  { %4823 = vmatmul.mubr.msk.f32.vlgmr.msra.gmra.mrb[32].mxu0 %vm1121_vm9, %v8238_v35  ;;  %5924 = vmatprep.subr.bf16.mxu0 %v5923_v61  ;;  %v4839_v35 = vld [vmem:[%s8943_s7 + $0x258] sm:$0xff] }
 0x85e   :  { %5926 = vmatpush1.bf16.msra.mxu0 %v5925_v0  ;;  %3570 = vmatprep.mubr.f32.mxu0 %v6251_v7  ;;  %v5935_v19 = vpack.c.bf16 %v4839_v35, %v4837_v17  ;;  %v4867_v0 = vld [vmem:[%s8943_s7 + $0x330] sm:$0xff]  ;;  %v5971_v35 = vpack.c.bf16 %v4878_v9, %v4876_v4  ;;  %v3816_v9 = vld [vmem:[%s8945_s9 + $0x98] sm:$0xff] }
 0x85f   :  { %5928 = vmatprep.subr.bf16.mxu0 %v5927_v62  ;;  %v4869_v62 = vld [vmem:[%s8943_s7 + $0x340] sm:$0xff]  ;;  %v3815_v4 = vld [vmem:[%s8945_s9 + $0x90] sm:$0xff] }
 0x860   :  { %v5965_v15 = vpack.c.bf16 %v4869_v62, %v4867_v0  ;;  %v4913_v0 = vld [vmem:[%s8943_s7 + $0x498] sm:$0xff] }
 0x862   :  { %5930 = vmatpush1.bf16.msra.mxu0 %v5929_v1  ;;  %v4871_v1 = vld [vmem:[%s8943_s7 + $0x350] sm:$0xff] }
 0x863   :  { %5932 = vmatprep.subr.bf16.mxu0 %v5931_v2  ;;  %v4873_v2 = vld [vmem:[%s8943_s7 + $0x360] sm:$0xff] }
 0x864   :  { %v5969_v17 = vpack.c.bf16 %v4873_v2, %v4871_v1  ;;  %v4915_v1 = vld [vmem:[%s8943_s7 + $0x4a8] sm:$0xff]  ;;  %v4914_v2 = vld [vmem:[%s8943_s7 + $0x4a0] sm:$0xff] }
 0x866   :  { %5934 = vmatpush1.bf16.msra.mxu0 %v5933_v18  ;;  %v4875_v18 = vld [vmem:[%s8943_s7 + $0x370] sm:$0xff] }
 0x867   :  { %5936 = vmatprep.subr.bf16.mxu0 %v5935_v19  ;;  %v4877_v19 = vld [vmem:[%s8943_s7 + $0x380] sm:$0xff] }
 0x868   :  { %v5973_v8 = vpack.c.bf16 %v4877_v19, %v4875_v18 }
 0x86a   :  { %5938 = vmatpush1.bf16.msra.mxu0 %v5937_v23  ;;  %v4879_v23 = vld [vmem:[%s8943_s7 + $0x390] sm:$0xff] }
 0x86b   :  { %5940 = vmatprep.subr.bf16.mxu0 %v5939_v21  ;;  %v4881_v21 = vld [vmem:[%s8943_s7 + $0x3a0] sm:$0xff] }
 0x86c   :  { %v5977_v24 = vpack.c.bf16 %v4881_v21, %v4879_v23  ;;  %v3893_v23 = vld [vmem:[%s8946_s10 + $0x18] sm:$0xff] }
 0x86e   :  { %5942 = vmatpush1.bf16.msra.mxu0 %v5941_v27  ;;  %v4886_v27 = vld [vmem:[%s8943_s7 + $0x3c0] sm:$0xff] }
 0x86f   :  { %5944 = vmatprep.subr.bf16.mxu0 %v5943_v28  ;;  %v4888_v28 = vld [vmem:[%s8943_s7 + $0x3d0] sm:$0xff] }
 0x872   :  { %5946 = vmatpush1.bf16.msra.mxu0 %v5945_v36  ;;  %v5981_v36 = vpack.c.bf16 %v4888_v28, %v4886_v27  ;;  %v3898_v27 = vld [vmem:[%s8946_s10 + $0x40] sm:$0xff]  ;;  %v3899_v28 = vld [vmem:[%s8946_s10 + $0x48] sm:$0xff] }
 0x873   :  { %5948 = vmatprep.subr.bf16.mxu0 %v5947_v38  ;;  %v5983_v38 = vpack.c.bf16 %v4893_v33, %v4891_v29  ;;  %v6050_v29 = vpack.c.bf16 %v3899_v28, %v3898_v27  ;;  %v3900_v33 = vld [vmem:[%s8946_s10 + $0x50] sm:$0xff]  ;;  %v4934_v27 = vld [vmem:[%s8949_s13 + $0xa8] sm:$0xff] }
 0x876   :  { %5950 = vmatpush1.bf16.msra.mxu0 %v5949_v41  ;;  %v4895_v41 = vld [vmem:[%s8943_s7 + $0x408] sm:$0xff] }
 0x877   :  { %3534 = vmatprep.subr.mxu0 %v4853_v43  ;;  %v4897_v43 = vld [vmem:[%s8943_s7 + $0x418] sm:$0xff] }
 0x878   :  { %v5987_v45 = vpack.c.bf16 %v4897_v43, %v4895_v41  ;;  %v3905_v41 = vld [vmem:[%s8946_s10 + $0x78] sm:$0xff] }
 0x879   :  { %v6059_v43 = vpack.c.bf16 %v3905_v41, %v3904_v40  ;;  %v4939_v40 = vld [vmem:[%s8949_s13 + $0xd0] sm:$0xff]  ;;  %v4940_v41 = vld [vmem:[%s8949_s13 + $0xd8] sm:$0xff] }
 0x87a   :  { %3535 = vmatpush1.msra.mxu0 %v4852_v5 }
 0x87b   :  { %4854 = vmatmul.mubr.msk.f32.vlgmr.msra.gmra.mrb[32].mxu0 %vm1121_vm9, %v8268_v54  ;;  %5952 = vmatprep.subr.bf16.mxu0 %v5951_v49  ;;  %v4870_v54 = vld [vmem:[%s8943_s7 + $0x348] sm:$0xff]  ;;  %v4898_v49 = vld [vmem:[%s8943_s7 + $0x420] sm:$0xff] }
 0x87c   :  { %5954 = vmatpush1.bf16.msra.mxu0 %v5953_v55  ;;  %3678 = vmatprep.mubr.f32.mxu0 %v6251_v7  ;;  %v5963_v61 = vpack.c.bf16 %v4870_v54, %v4868_v47  ;;  %v4900_v55 = vld [vmem:[%s8943_s7 + $0x430] sm:$0xff]  ;;  %v4906_v54 = vld [vmem:[%s8943_s7 + $0x460] sm:$0xff] }
 0x87d   :  { %5956 = vmatprep.subr.bf16.mxu0 %v5955_v50  ;;  %v4903_v50 = vld [vmem:[%s8943_s7 + $0x448] sm:$0xff]  ;;  %v5993_v53 = vpack.c.bf16 %v4900_v55, %v4898_v49 }
 0x87e   :  { %v5995_v12 = vpack.c.bf16 %v4905_v52, %v4903_v50  ;;  %v4123_v52 = vld [vmem:[%s8949_s13] sm:$0xff] }
 0x880   :  { %5958 = vmatpush1.bf16.msra.mxu0 %v5957_v31  ;;  %v4904_v31 = vld [vmem:[%s8943_s7 + $0x450] sm:$0xff] }
 0x881   :  { %5960 = vmatprep.subr.bf16.mxu0 %v5959_v32  ;;  %v4907_v32 = vld [vmem:[%s8943_s7 + $0x468] sm:$0xff]  ;;  %v5997_v58 = vpack.c.bf16 %v4904_v31, %v4902_v10  ;;  %v4125_v31 = vld [vmem:[%s8949_s13 + $0x10] sm:$0xff] }
 0x882   :  { %v5999_v47 = vpack.c.bf16 %v4909_v57, %v4907_v32  ;;  %v4126_v32 = vld [vmem:[%s8949_s13 + $0x18] sm:$0xff]  ;;  %v6225_v57 = vld [vmem:[%s8948_s12] sm:$0xf] }
 0x884   :  { %5962 = vmatpush1.bf16.msra.mxu0 %v5961_v59  ;;  %v4908_v59 = vld [vmem:[%s8943_s7 + $0x470] sm:$0xff] }
 0x885   :  { %5964 = vmatprep.subr.bf16.mxu0 %v5963_v61  ;;  %v4911_v61 = vld [vmem:[%s8943_s7 + $0x488] sm:$0xff]  ;;  %v6001_v62 = vpack.c.bf16 %v4908_v59, %v4906_v54 }
 0x886   :  { %v6003_v63 = vpack.c.bf16 %v4913_v0, %v4911_v61  ;;  %v4128_v54 = vld [vmem:[%s8949_s13 + $0x28] sm:$0xff]  ;;  %v4129_v61 = vld [vmem:[%s8949_s13 + $0x30] sm:$0xff]  ;;  %v4130_v0 = vld [vmem:[%s8949_s13 + $0x38] sm:$0xff] }
 0x888   :  { %5966 = vmatpush1.bf16.msra.mxu0 %v5965_v15  ;;  %v4912_v15 = vld [vmem:[%s8943_s7 + $0x490] sm:$0xff] }
 0x889   :  { %5968 = vmatprep.subr.bf16.mxu0 %v5967_v11  ;;  %v6005_v11 = vpack.c.bf16 %v4912_v15, %v4910_v3  ;;  %v4132_v3 = vld [vmem:[%s8949_s13 + $0x48] sm:$0xff] }
 0x88c   :  { %5970 = vmatpush1.bf16.msra.mxu0 %v5969_v17  ;;  %v6035_v17 = vpack.c.bf16 %v3816_v9, %v3815_v4  ;;  %v4923_v4 = vld [vmem:[%s8949_s13 + $0x58] sm:$0xff] }
 0x88d   :  { %5972 = vmatprep.subr.bf16.mxu0 %v5971_v35  ;;  %v3890_v35 = vld [vmem:[%s8946_s10] sm:$0xff] }
 0x88e   :  { %6036 = vmatpush1.bf16.msra.mxu1 %v6035_v17 }
 0x88f   :  { %6037 = vmatprep.subr.bf16.mxu1 %v6253_v20 }
 0x890   :  { %5974 = vmatpush1.bf16.msra.mxu0 %v5973_v8 }
 0x891   :  { %5976 = vmatprep.subr.bf16.mxu0 %v5975_v30  ;;  %v3892_v30 = vld [vmem:[%s8946_s10 + $0x10] sm:$0xff] }
 0x892   :  { %v6041_v21 = vpack.c.bf16 %v3893_v23, %v3892_v30  ;;  %v4927_v30 = vld [vmem:[%s8949_s13 + $0x78] sm:$0xff] }
 0x894   :  { %5978 = vmatpush1.bf16.msra.mxu0 %v5977_v24 }
 0x895   :  { %3642 = vmatprep.subr.mxu0 %v4884_v60  ;;  %v3896_v60 = vld [vmem:[%s8946_s10 + $0x30] sm:$0xff] }
 0x896   :  { %v6047_v26 = vpack.c.bf16 %v3897_v25, %v3896_v60  ;;  %v4931_v60 = vld [vmem:[%s8949_s13 + $0x98] sm:$0xff] }
 0x898   :  { %3643 = vmatpush1.msra.mxu0 %v4883_v51  ;;  %v3901_v51 = vld [vmem:[%s8946_s10 + $0x58] sm:$0xff] }
 0x899   :  { %4885 = vmatmul.mubr.msk.f32.vlgmr.msra.gmra.mrb[32].mxu0 %vm1121_vm9, %v8271_v56  ;;  %5980 = vmatprep.subr.bf16.mxu0 %v5979_v34  ;;  %v4901_v56 = vld [vmem:[%s8943_s7 + $0x438] sm:$0xff]  ;;  %v6053_v34 = vpack.c.bf16 %v3901_v51, %v3900_v33  ;;  %v4935_v33 = vld [vmem:[%s8949_s13 + $0xb0] sm:$0xff] }
 0x89a   :  { %5982 = vmatpush1.bf16.msra.mxu0 %v5981_v36  ;;  %3786 = vmatprep.mubr.f32.mxu0 %v6251_v7  ;;  %v5991_v5 = vpack.c.bf16 %v4901_v56, %v4899_v14  ;;  %v3902_v36 = vld [vmem:[%s8946_s10 + $0x60] sm:$0xff]  ;;  %v3909_v14 = vld [vmem:[%s8946_s10 + $0x98] sm:$0xff] }
 0x89b   :  { %5984 = vmatprep.subr.bf16.mxu0 %v5983_v38  ;;  %v3903_v38 = vld [vmem:[%s8946_s10 + $0x68] sm:$0xff]  ;;  %v6065_v56 = vpack.c.bf16 %v3909_v14, %v3908_v48  ;;  %v4936_v51 = vld [vmem:[%s8949_s13 + $0xb8] sm:$0xff]  ;;  %v4944_v48 = vld [vmem:[%s8949_s13 + $0xf0] sm:$0xff] }
 0x89c   :  { %v6056_v39 = vpack.c.bf16 %v3903_v38, %v3902_v36  ;;  %v4937_v36 = vld [vmem:[%s8949_s13 + $0xc0] sm:$0xff]  ;;  %v4938_v38 = vld [vmem:[%s8949_s13 + $0xc8] sm:$0xff]  ;;  %v4945_v14 = vld [vmem:[%s8949_s13 + $0xf8] sm:$0xff] }
 0x89e   :  { %5986 = vmatpush1.bf16.msra.mxu0 %v5985_v44  ;;  %v3906_v44 = vld [vmem:[%s8946_s10 + $0x80] sm:$0xff] }
 0x89f   :  { %5988 = vmatprep.subr.bf16.mxu0 %v5987_v45  ;;  %v3907_v45 = vld [vmem:[%s8946_s10 + $0x88] sm:$0xff] }
 0x8a0   :  { %v6062_v46 = vpack.c.bf16 %v3907_v45, %v3906_v44  ;;  %v4941_v44 = vld [vmem:[%s8949_s13 + $0xe0] sm:$0xff]  ;;  %v4942_v45 = vld [vmem:[%s8949_s13 + $0xe8] sm:$0xff] }
 0x8a2   :  { %5990 = vmatpush1.bf16.msra.mxu0 %v5989_v13 }
 0x8a3   :  { %5992 = vmatprep.subr.bf16.mxu0 %v5991_v5 }
 0x8a6   :  { %5994 = vmatpush1.bf16.msra.mxu0 %v5993_v53  ;;  %v4124_v53 = vld [vmem:[%s8949_s13 + $0x8] sm:$0xff] }
 0x8a7   :  { %5996 = vmatprep.subr.bf16.mxu0 %v5995_v12  ;;  %v6224_v12 = vld [vmem:[%s8947_s11] sm:$0xf]  ;;  %v6068_v10 = vpack.c.bf16 %v4124_v53, %v4123_v52  ;;  %v4949_v52 = vld [vmem:[%s8949_s13 + $0x118] sm:$0xff] }
 0x8aa   :  { %5998 = vmatpush1.bf16.msra.mxu0 %v5997_v58  ;;  %v6071_v58 = vpack.c.bf16 %v4126_v32, %v4125_v31  ;;  %v4952_v31 = vld [vmem:[%s8949_s13 + $0x130] sm:$0xff]  ;;  %v4953_v32 = vld [vmem:[%s8949_s13 + $0x138] sm:$0xff] }
 0x8ab   :  { %6000 = vmatprep.subr.bf16.mxu0 %v5999_v47  ;;  %v4127_v47 = vld [vmem:[%s8949_s13 + $0x20] sm:$0xff] }
 0x8ac   :  { %v6074_v59 = vpack.c.bf16 %v4128_v54, %v4127_v47  ;;  %v6226_v54 = vld [vmem:[%s8950_s14] sm:$0x1] }
 0x8ae   :  { %6002 = vmatpush1.bf16.msra.mxu0 %v6001_v62  ;;  %v6077_v62 = vpack.c.bf16 %v4130_v0, %v4129_v61 }
 0x8af   :  { %6004 = vmatprep.subr.bf16.mxu0 %v6003_v63  ;;  %v4131_v63 = vld [vmem:[%s8949_s13 + $0x40] sm:$0xff] }
 0x8b0   :  { %v6080_v15 = vpack.c.bf16 %v4132_v3, %v4131_v63 }
 0x8b2   :  { %6006 = vmatpush1.bf16.msra.mxu0 %v6005_v11 }
 0x8b3   :  { %3750 = vmatprep.subr.mxu0 %v4915_v1 }
 0x8b6   :  { %3751 = vmatpush1.msra.mxu0 %v4914_v2  ;;  %v4922_v2 = vld [vmem:[%s8949_s13 + $0x50] sm:$0xff] }
 0x8b7   :  { %4916 = vmatmul.mubr.msk.f32.vlgmr.msra.gmra.mrb[32].mxu0 %vm1121_vm9, %v8274_v37  ;;  %v3891_v37 = vld [vmem:[%s8946_s10 + $0x8] sm:$0xff] }
 0x8b8   :  { %v6038_v22 = vpack.c.bf16 %v3891_v37, %v3890_v35  ;;  %v6083_v37 = vpack.c.bf16 %v4923_v4, %v4922_v2 }
 0x98a   :  { %v3788_v18 = vpop.f32.mrb[32].mxu0 }
 0x98b   :  { %v3790_v19 = vpop.f32.mrb[33].mxu0  ;;  %v3795_v8 = vadd.f32 %v3788_v18, %v7378_v42  ;;  %v3895_v42 = vld [vmem:[%s8946_s10 + $0x28] sm:$0xff] }
 0x98c   :  { %v3796_v6 = vadd.f32 %v3790_v19, %v7374_v16  ;;  %v3894_v16 = vld [vmem:[%s8946_s10 + $0x20] sm:$0xff] }
 0x98d   :  { %v6044_v24 = vpack.c.bf16 %v3895_v42, %v3894_v16  ;;  %v4924_v19 = vld [vmem:[%s8949_s13 + $0x60] sm:$0xff]  ;;  %v4929_v16 = vld [vmem:[%s8949_s13 + $0x88] sm:$0xff] }
 0x98e   :  { %4917 = vmatprep.mubr.msk.f32.mxu1 %vm1628_vm10, %v3796_v6 }
 0x98f   :  { %3885 = vmatmul.mubr.f32.vlgmr.msra.gmra.mrb[24].mxu1 %v3795_v8 }
 0x990   :  { %6039 = vmatpush1.bf16.msra.mxu1 %v6038_v22  ;;  %4918 = vmatprep.mubr.msk.f32.mxu1 %vm1628_vm10, %v3796_v6  ;;  %v4925_v6 = vld [vmem:[%s8949_s13 + $0x68] sm:$0xff] }
 0x991   :  { %6040 = vmatprep.subr.bf16.mxu1 %v6253_v20  ;;  %v6086_v22 = vpack.c.bf16 %v4925_v6, %v4924_v19 }
 0x994   :  { %6042 = vmatpush1.bf16.msra.mxu1 %v6041_v21  ;;  %v4928_v21 = vld [vmem:[%s8949_s13 + $0x80] sm:$0xff] }
 0x995   :  { %6043 = vmatprep.subr.bf16.mxu1 %v6253_v20  ;;  %v6092_v42 = vpack.c.bf16 %v4929_v16, %v4928_v21 }
 0x998   :  { %6045 = vmatpush1.bf16.msra.mxu1 %v6044_v24  ;;  %v4930_v24 = vld [vmem:[%s8949_s13 + $0x90] sm:$0xff] }
 0x999   :  { %6046 = vmatprep.subr.bf16.mxu1 %v6253_v20  ;;  %v6095_v25 = vpack.c.bf16 %v4931_v60, %v4930_v24 }
 0x99c   :  { %6048 = vmatpush1.bf16.msra.mxu1 %v6047_v26  ;;  %v4933_v26 = vld [vmem:[%s8949_s13 + $0xa0] sm:$0xff] }
 0x99d   :  { %6049 = vmatprep.subr.bf16.mxu1 %v6253_v20  ;;  %v6098_v28 = vpack.c.bf16 %v4934_v27, %v4933_v26 }
 0x9a0   :  { %6051 = vmatpush1.bf16.msra.mxu1 %v6050_v29 }
 0x9a1   :  { %6052 = vmatprep.subr.bf16.mxu1 %v6253_v20 }
 0x9a4   :  { %6054 = vmatpush1.bf16.msra.mxu1 %v6053_v34  ;;  %v6101_v34 = vpack.c.bf16 %v4936_v51, %v4935_v33 }
 0x9a5   :  { %6055 = vmatprep.subr.bf16.mxu1 %v6253_v20 }
 0x9a8   :  { %6057 = vmatpush1.bf16.msra.mxu1 %v6056_v39  ;;  %v6104_v39 = vpack.c.bf16 %v4938_v38, %v4937_v36 }
 0x9a9   :  { %6058 = vmatprep.subr.bf16.mxu1 %v6253_v20 }
 0x9ac   :  { %6060 = vmatpush1.bf16.msra.mxu1 %v6059_v43  ;;  %v6107_v43 = vpack.c.bf16 %v4940_v41, %v4939_v40 }
 0x9ad   :  { %6061 = vmatprep.subr.bf16.mxu1 %v6253_v20 }
 0x9b0   :  { %6063 = vmatpush1.bf16.msra.mxu1 %v6062_v46  ;;  %v6110_v46 = vpack.c.bf16 %v4942_v45, %v4941_v44 }
 0x9b1   :  { %6064 = vmatprep.subr.bf16.mxu1 %v6253_v20 }
 0x9b4   :  { %6066 = vmatpush1.bf16.msra.mxu1 %v6065_v56  ;;  %v6113_v56 = vpack.c.bf16 %v4945_v14, %v4944_v48 }
 0x9b5   :  { %5209 = vmatprep.subr.mxu1 %v6251_v7 }
 0x9b7   :  { %3975 = vmatmul.mubr.f32.vlgmr.msra.gmra.mrb[26].mxu1 %v3795_v8  ;;  %v4926_v8 = vld [vmem:[%s8949_s13 + $0x70] sm:$0xff] }
 0x9b8   :  { %5211 = vmatprep.mubr.msk.f32.mxu1 %vm6254_vm11, %v6251_v7  ;;  %v6089_v23 = vpack.c.bf16 %v4927_v30, %v4926_v8 }
 0xa62   :  { %v3886_v13 = vpop.f32.mrb[24].mxu1 }
 0xa63   :  { %v3888_v5 = vpop.f32.mrb[25].mxu1 }
 0xa64   :  { %v4946_v5 = vld [vmem:[%s8949_s13 + $0x100] sm:$0xff] }
 0xa8a   :  { %v3976_v49 = vpop.f32.mrb[26].mxu1 }
 0xa8b   :  { %v3980_v55 = vmax.f32 %v3886_v13, %v3976_v49  ;;  %v3978_v50 = vpop.f32.mrb[27].mxu1  ;;  %v4947_v49 = vld [vmem:[%s8949_s13 + $0x108] sm:$0xff] }
 0xa8c   :  { %v4948_v50 = vld [vmem:[%s8949_s13 + $0x110] sm:$0xff] }
 0xa8d   :  { %5210 = vmatpush3.msra.mxu1 %v3980_v55  ;;  %v6119_v53 = vpack.c.bf16 %v4949_v52, %v4948_v50 }
 0xa8e   :  { %5212 = vmatmul.mubr.msk.f32.vlgmr.msra.gmra.mrb[28].mxu1 %vm1793_vm12, %v6224_v12  ;;  %5214 = vmatprep.subr.mxu1 %v6251_v7  ;;  %v4950_v12 = vld [vmem:[%s8949_s13 + $0x120] sm:$0xff] }
 0xa8f   :  { %5215 = vmatpush3.msra.mxu1 %v3980_v55  ;;  %5216 = vmatprep.mubr.msk.f32.mxu1 %vm6254_vm11, %v6251_v7  ;;  %v6116_v55 = vpack.c.bf16 %v4947_v49, %v4946_v5 }
 0xa90   :  { %6067 = vmatprep.subr.bf16.mxu1 %v6253_v20 }
 0xa92   :  { %5217 = vmatmul.mubr.msk.f32.vlgmr.msra.gmra.mrb[30].mxu1 %vm1793_vm12, %v6225_v57  ;;  %v6125_v57 = vpack.c.bf16 %v4953_v32, %v4952_v31 }
 0xa93   :  { %6069 = vmatpush3.bf16.msra.mxu1 %v6068_v10  ;;  %5239 = vmatprep.mubr.msk.f32.mxu1 %vm6254_vm11, %v6251_v7 }
 0xa94   :  { %6070 = vmatprep.subr.bf16.mxu1 %v6253_v20 }
 0xa97   :  { %6072 = vmatpush3.bf16.msra.mxu1 %v6071_v58 }
 0xa98   :  { %6073 = vmatprep.subr.bf16.mxu1 %v6253_v20 }
 0xa9b   :  { %6075 = vmatpush3.bf16.msra.mxu1 %v6074_v59 }
 0xa9c   :  { %6076 = vmatprep.subr.bf16.mxu1 %v6253_v20 }
 0xa9f   :  { %6078 = vmatpush3.bf16.msra.mxu1 %v6077_v62 }
 0xaa0   :  { %6079 = vmatprep.subr.bf16.mxu1 %v6253_v20 }
 0xaa3   :  { %6081 = vmatpush3.bf16.msra.mxu1 %v6080_v15 }
 0xaa4   :  { %6082 = vmatprep.subr.bf16.mxu1 %v6253_v20 }
 0xb61   :  { %v4047_v11 = vpop.f32.mrb[28].mxu1 }
 0xb62   :  { %v5213_v1 = vpop.f32.mrb[29].mxu1 }
 0xb65   :  { %v4117_v9 = vpop.f32.mrb[30].mxu1 }
 0xb66   :  { %v4121_v17 = vmax.f32 %v4047_v11, %v4117_v9  ;;  %v5218_v35 = vpop.f32.mrb[31].mxu1 }
 0xb68   :  { %v8804_v18 = vmax.f32 %v4121_v17, 0.0 }
 0xb6a   :  { %5240 = vmatmul.mubr.msk.f32.vlgmr.msra.gmra.mrb[32].mxu1 %vm1952_vm13, %v8804_v18  ;;  %v4217_v29 = vrot.slane %v8804_v18, 1  ;;  %v4301_v13 = vrot.slane %v8804_v18, 2  ;;  %v4385_v58 = vrot.slane %v8804_v18, 3 }
 0xb6b   :  { %6084 = vmatpush3.bf16.msra.mxu1 %v6083_v37  ;;  %5262 = vmatprep.mubr.msk.f32.mxu1 %vm6254_vm11, %v6251_v7 }
 0xb6c   :  { %6085 = vmatprep.subr.bf16.mxu1 %v6253_v20 }
 0xb6f   :  { %6087 = vmatpush3.bf16.msra.mxu1 %v6086_v22 }
 0xb70   :  { %6088 = vmatprep.subr.bf16.mxu1 %v6253_v20 }
 0xb73   :  { %6090 = vmatpush3.bf16.msra.mxu1 %v6089_v23 }
 0xb74   :  { %6091 = vmatprep.subr.bf16.mxu1 %v6253_v20 }
 0xb77   :  { %6093 = vmatpush3.bf16.msra.mxu1 %v6092_v42 }
 0xb78   :  { %6094 = vmatprep.subr.bf16.mxu1 %v6253_v20 }
 0xb7b   :  { %6096 = vmatpush3.bf16.msra.mxu1 %v6095_v25 }
 0xb7c   :  { %6097 = vmatprep.subr.bf16.mxu1 %v6253_v20 }
 0xb7e   :  { %5263 = vmatmul.mubr.msk.f32.vlgmr.msra.gmra.mrb[32].mxu1 %vm1952_vm13, %v4217_v29 }
 0xb7f   :  { %6099 = vmatpush3.bf16.msra.mxu1 %v6098_v28  ;;  %5285 = vmatprep.mubr.msk.f32.mxu1 %vm6254_vm11, %v6251_v7 }
 0xb80   :  { %6100 = vmatprep.subr.bf16.mxu1 %v6253_v20 }
 0xb83   :  { %6102 = vmatpush3.bf16.msra.mxu1 %v6101_v34 }
 0xb84   :  { %6103 = vmatprep.subr.bf16.mxu1 %v6253_v20 }
 0xb87   :  { %6105 = vmatpush3.bf16.msra.mxu1 %v6104_v39 }
 0xb88   :  { %6106 = vmatprep.subr.bf16.mxu1 %v6253_v20 }
 0xb8b   :  { %6108 = vmatpush3.bf16.msra.mxu1 %v6107_v43 }
 0xb8c   :  { %6109 = vmatprep.subr.bf16.mxu1 %v6253_v20 }
 0xb8f   :  { %6111 = vmatpush3.bf16.msra.mxu1 %v6110_v46 }
 0xb90   :  { %6112 = vmatprep.subr.bf16.mxu1 %v6253_v20 }
 0xb92   :  { %5286 = vmatmul.mubr.msk.f32.vlgmr.msra.gmra.mrb[32].mxu1 %vm1952_vm13, %v4301_v13 }
 0xb93   :  { %6114 = vmatpush3.bf16.msra.mxu1 %v6113_v56  ;;  %5308 = vmatprep.mubr.msk.f32.mxu1 %vm6254_vm11, %v6251_v7  ;;  %v4951_v7 = vld [vmem:[%s8949_s13 + $0x128] sm:$0xff]  ;;  %s6255_s13 = smov [#allocation2]  }
 0xb94   :  { %6115 = vmatprep.subr.bf16.mxu1 %v6253_v20  ;;  %v6122_v10 = vpack.c.bf16 %v4951_v7, %v4950_v12  ;;  %s4480_s14 = sshll.u32 %s6255_s13, 4  ;;  %s4481_s14 = int_to_ptr.vmem [resolvable:$true] %s4480_s14 }
 0xb95   :  { %s6227_s10 = scalar_lea.vmem %s4481_s14, 32  ;;  %p6232_p1 = scmp.lt.s32.totalorder %s4481_s14, %s4481_s14 }
 0xb96   :  { %p6228_p0 = scmp.ne.s32.totalorder %s4481_s14, %s6227_s10  ;;  %p6233_p2 = scmp.lt.s32.totalorder %s6227_s10, %s6227_s10 }
 0xb97   :  { %6117 = vmatpush3.bf16.msra.mxu1 %v6116_v55 }
 0xb98   :  { %6118 = vmatprep.subr.bf16.mxu1 %v6253_v20  ;;  %p6234_p3 = por %p6233_p2, %p6232_p1 }
 0xb9a   :  { %p6235_p4 = pnand %p6234_p3, %p6228_p0 }
 0xb9b   :  { %6120 = vmatpush3.bf16.msra.mxu1 %v6119_v53 }
 0xb9c   :  { %6121 = vmatprep.subr.bf16.mxu1 %v6253_v20 }
 0xb9f   :  { %6123 = vmatpush3.bf16.msra.mxu1 %v6122_v10 }
 0xba0   :  { %6124 = vmatprep.subr.bf16.mxu1 %v6253_v20 }
 0xba3   :  { %6126 = vmatpush3.bf16.msra.mxu1 %v6125_v57 }
 0xba6   :  { %5309 = vmatmul.mubr.msk.f32.vlgmr.msra.gmra.mrb[32].mxu1 %vm1952_vm13, %v4385_v58 }
 0xc79   :  { %v4454_v47 = vpop.f32.mrb[32].mxu1 }
 0xc7a   :  { %v6128_v59 = vadd.f32 %v6226_v54, %v4454_v47  ;;  %v5310_v61 = vpop.f32.mrb[33].mxu1 }
 0xc7c   :  { %v4459_v0 = vmax.f32 %v6128_v59, 0.0 }
 0xc7e   :  { %v4460_v62 = vsel %vm2283_vm14, %v4459_v0, -inf }
 0xc7f   :  { %4461 = vmax.xlane.f32.xlu0 %v4460_v62 }
 0xd0c   :  { %v4462_v63 = vpop.xlane.xlu0 %4461 }
 0xd0d   :  { %v4463_v3 = vsub.f32 %v4459_v0, %v4462_v63 }
 0xd0f   :  { %v4464_v15 = vmul.f32 1.442695, %v4463_v3 }
 0xd11   :  { %6216 = vpow2.f32 %v4464_v15 }
 0xd1b   :  { %v6217_v20 = vpop.eup %6216 }
 0xd1c   :  { %v4466_v11 = vsel %vm2283_vm14, %v6217_v20, 0.0 }
 0xd1d   :  { %4467 = vadd.xlane.f32.xlu1 %v4466_v11 }
 0xdaa   :  { %v4468_v1 = vpop.xlane.xlu1 %4467 }
 0xdab   :  { %6218 = vlog2.f32 %v4468_v1 }
 0xdb5   :  { %v6219_v2 = vpop.eup %6218 }
 0xdb6   :  { %v4470_v4 = vmul.f32 0.6931472, %v6219_v2 }
 0xdb8   :  { %v4471_v9 = vadd.f32 %v4470_v4, %v4462_v63 }
 0xdba   :  { %v4472_v17 = vsub.f32 %v4459_v0, %v4471_v9 }
 0xdbc   :  { %4474 = vst.msk [vmem:[#allocation2 + $0x1] sm:$0x1] %vm2283_vm14, %v4472_v17 }
 0xdbd   :  { %6238 = shalt.err (!%p6235_p4)
}
 0xdbe   :  { %s6239_s4 = scalar_lea.hbm %s8951_s15, 32 }
 0xdbf   :  { %p6240_p5 = scmp.ne.s32.totalorder %s8951_s15, %s6239_s4  ;;  %p6243_p6 = scmp.lt.u32.totalorder %s6239_s4, %s8951_s15 }
 0xdc1   :  { %p6245_p7 = pnand %p6243_p6, %p6240_p5 }
 0xdc3   :  { %6248 = shalt.err (!%p6245_p7)
}
 0xdc4   :  { %s6256_s11 = smov 16   ;;  %s6257_s0 = smov 1  }
 0xdc5   :  { %4486 = dma.vmem_to_hbm [thread:$0]  %s4481_s14, 32, %s8951_s15, [#allocation3], %s6256_s11, %s6256_s11, %s6257_s0  }
 0xdc6   :  { %6249 = dma.done.wait [#allocation3], 32  }
 0xdc7   :  { %6250 = vsyncadd [#allocation3], 4294967264 }
 0xdc8   :  { %4490 = vsyncpa [#allocation3], 1 }

</bundles_post_ra>
